<compile_context>
chip_gen: v5e
topology: v5e:2x2
jax: 0.10.0
libtpu: 0.0.40
codegen_flags: <defaults>
</compile_context>

<pallas_src>
import functools

import jax
import jax.numpy as jnp
from jax.experimental import pallas as pl
from jax.experimental.pallas import tpu as pltpu


# ----------------------------- Pallas kernel ------------------------------ #
def _convlstm_kernel(xh_ref, w_ref, b_ref, c_ref, h_out_ref, c_out_ref, *,
                     ksize, n_kpad):
    # xh_ref  : (TH+k-1, Wp, C)  compute_dtype  halo'd row tile of padded [x,h]
    # w_ref   : (G, Kp)          compute_dtype  im2col weight, K padded to 128
    # b_ref   : (G, 1)           f32            conv bias
    # c_ref   : (Hd, S)          f32            current cell state (S = TH*W)
    # h_out_ref: (Hd, S)         h_out_dtype
    # c_out_ref: (Hd, S)         f32
    k = ksize
    THk, Wp, C = xh_ref.shape
    Hd, S = c_ref.shape
    TH = THk - (k - 1)
    W = Wp - (k - 1)

    # --- im2col patch as a value: k*k shifted taps side by side on the lane
    #     axis, column order (di, dj, c) to match the wrapper's weight layout,
    #     plus a zero piece padding the contraction dim to Kp (=128). ---
    pieces = []
    for di in range(k):
        for dj in range(k):
            pieces.append(xh_ref[di:di + TH, dj:dj + W, :].reshape(TH * W, C))
    if n_kpad:
        pieces.append(jnp.zeros((TH * W, n_kpad), dtype=xh_ref.dtype))
    patch = jnp.concatenate(pieces, axis=-1)                 # (S, Kp)

    # One deep matmul, spatial on the lane axis of the result: (G, S).
    gates = jax.lax.dot_general(
        w_ref[...], patch,
        dimension_numbers=(((1,), (1,)), ((), ())),
        preferred_element_type=jnp.float32)                  # (G, S) f32
    gates = gates + b_ref[...]                               # (G,1) lane bcast

    # Gate order matches torch.chunk(4, dim=1): i, f, g, o.  Aligned sublane
    # slices; all elementwise math on fully packed (Hd, S) vregs in f32.
    i_gate = jax.nn.sigmoid(gates[0 * Hd:1 * Hd, :])
    f_gate = jax.nn.sigmoid(gates[1 * Hd:2 * Hd, :])
    g_gate = jnp.tanh(gates[2 * Hd:3 * Hd, :])
    o_gate = jax.nn.sigmoid(gates[3 * Hd:4 * Hd, :])

    c_cur = c_ref[...]
    c_next = f_gate * c_cur + i_gate * g_gate
    h_next = o_gate * jnp.tanh(c_next)

    c_out_ref[...] = c_next
    h_out_ref[...] = h_next.astype(h_out_ref.dtype)


# ------------------------------- Wrapper ----------------------------------- #
def conv_lstm_cell_forward(x_nchw, h_nchw, c_nchw, weight, bias, *,
                           kernel_size, row_tile=None,
                           compute_dtype=jnp.bfloat16,
                           h_out_dtype=jnp.bfloat16,
                           target_pixels_per_step=2048):
    """Pallas ConvLSTMCell forward.

    x_nchw : (B, Cin, H, W)
    h_nchw : (B, Hd,  H, W)
    c_nchw : (B, Hd,  H, W)
    weight : (4*Hd, Cin+Hd, k, k)   (PyTorch Conv2d layout)
    bias   : (4*Hd,)
    returns (h_next, c_next) in NCHW (h_next in h_out_dtype, c_next f32).
    """
    B, Cin, H, W = x_nchw.shape
    Hd = h_nchw.shape[1]
    k = kernel_size
    if k % 2 == 0:
        raise ValueError("conv_lstm_cell_forward: only odd kernel_size supported")
    pad = k // 2
    C = Cin + Hd
    G = 4 * Hd
    kkC = k * k * C
    Kp = ((kkC + 127) // 128) * 128        # pad contraction dim to MXU depth

    # ---- row-tile selection: TH output rows per grid step.  Tiles must be
    #      lane-dense (TH*W % 128 == 0) unless they cover the whole image.
    #      Explicit errors instead of silent whole-image fallback. ----
    if row_tile is None:
        cands = [d for d in range(1, H + 1)
                 if H % d == 0 and (d == H or (d * W) % 128 == 0)]
        fitting = [d for d in cands if d * W <= target_pixels_per_step]
        TH = max(fitting) if fitting else min(cands)
    else:
        TH = row_tile
        if H % TH != 0:
            raise ValueError("row_tile must divide H")
        if TH != H and (TH * W) % 128 != 0:
            raise ValueError("row_tile*W must be a multiple of 128 (or row_tile == H)")
    nt = H // TH
    THk = TH + k - 1
    Wp = W + 2 * pad
    S = TH * W

    # ---- wrapper glue (layout only; all FLOPs happen inside the kernel) ----
    # Conv input (x, h) in channels-last for im2col; spatially padded once.
    x = jnp.transpose(x_nchw, (0, 2, 3, 1))
    h = jnp.transpose(h_nchw, (0, 2, 3, 1))
    xh = jnp.concatenate([x, h], axis=-1).astype(compute_dtype)   # (B,H,W,C)
    xh = jnp.pad(xh, ((0, 0), (pad, pad), (pad, pad), (0, 0)))    # (B,Hp,Wp,C)

    # Row tiles with a (k-1)-row halo.  With nt == 1 (default for small
    # images) this is a pure reshape: no activation bytes duplicated in HBM.
    # TODO(synk): for nt > 1 replace the stack with a pl.Element row-offset
    # window (or a manual halo DMA) to avoid duplicating halo rows in HBM.
    xh_tiles = jnp.stack([xh[:, t * TH: t * TH + THk] for t in range(nt)],
                         axis=1)                                  # (B,nt,THk,Wp,C)

    # Cell state stays NCHW with spatial flattened -> lane-dense (B, Hd, H*W).
    c = c_nchw.reshape(B, Hd, H * W).astype(jnp.float32)

    # Conv weight -> (G, Kp) im2col weight, column order (di, dj, c).
    w_mat = jnp.transpose(weight, (0, 2, 3, 1)).reshape(G, kkC)
    w_mat = jnp.pad(w_mat, ((0, 0), (0, Kp - kkC))).astype(compute_dtype)
    b_vec = bias.reshape(G, 1).astype(jnp.float32)

    kernel = functools.partial(_convlstm_kernel, ksize=k, n_kpad=Kp - kkC)

    act_bytes = jnp.dtype(compute_dtype).itemsize
    h_bytes = jnp.dtype(h_out_dtype).itemsize
    flops = 2 * B * H * W * kkC * G
    bytes_accessed = int(
        B * nt * THk * Wp * C * act_bytes      # xh tiles
        + G * Kp * act_bytes                   # weight (resident)
        + G * 4                                # bias
        + B * Hd * H * W * 4                   # c in
        + B * Hd * H * W * h_bytes             # h out
        + B * Hd * H * W * 4)                  # c out

    h_flat, c_flat = pl.pallas_call(
        kernel,
        grid=(B, nt),
        in_specs=[
            pl.BlockSpec((None, None, THk, Wp, C),
                         lambda b, t: (b, t, 0, 0, 0)),
            pl.BlockSpec((G, Kp), lambda b, t: (0, 0)),           # resident
            pl.BlockSpec((G, 1), lambda b, t: (0, 0)),            # resident
            pl.BlockSpec((None, Hd, S), lambda b, t: (b, 0, t)),
        ],
        out_specs=(
            pl.BlockSpec((None, Hd, S), lambda b, t: (b, 0, t)),
            pl.BlockSpec((None, Hd, S), lambda b, t: (b, 0, t)),
        ),
        out_shape=(
            jax.ShapeDtypeStruct((B, Hd, H * W), h_out_dtype),
            jax.ShapeDtypeStruct((B, Hd, H * W), jnp.float32),
        ),
        input_output_aliases={3: 1},   # reuse c_cur's HBM buffer for c_next
        compiler_params=pltpu.CompilerParams(
            dimension_semantics=("parallel", "parallel"),
            vmem_limit_bytes=32 * 1024 * 1024,   # fits v7x's 64 MiB physical
        ),
        cost_estimate=pl.CostEstimate(
            flops=flops,
            transcendentals=5 * B * H * W * Hd,
            bytes_accessed=bytes_accessed,
        ),
    )(xh_tiles, w_mat, b_vec, c)

    # NCHW outputs are just reshapes (no transpose passes).
    h_next = h_flat.reshape(B, Hd, H, W)
    c_next = c_flat.reshape(B, Hd, H, W)
    return h_next, c_next


# --------------------------- Pure-JAX reference ----------------------------- #
def _reference_forward(x_nchw, h_nchw, c_nchw, weight, bias, *, kernel_size):
    pad = kernel_size // 2
    combined = jnp.concatenate([x_nchw, h_nchw], axis=1)
    gates = jax.lax.conv_general_dilated(
        combined, weight, window_strides=(1, 1),
        padding=((pad, pad), (pad, pad)),
        dimension_numbers=("NCHW", "OIHW", "NCHW"),
    ) + bias[None, :, None, None]
    Hd = h_nchw.shape[1]
    i = jax.nn.sigmoid(gates[:, 0 * Hd:1 * Hd])
    f = jax.nn.sigmoid(gates[:, 1 * Hd:2 * Hd])
    g = jnp.tanh(gates[:, 2 * Hd:3 * Hd])
    o = jax.nn.sigmoid(gates[:, 3 * Hd:4 * Hd])
    c_next = f * c_nchw + i * g
    h_next = o * jnp.tanh(c_next)
    return h_next, c_next


# ---------------------------------- Main ------------------------------------ #
if __name__ == "__main__":
    B, Cin, Hd, H, W, K = 2, 4, 8, 16, 16, 3

    key = jax.random.PRNGKey(0)
    kx, kh, kc, kw, kb = jax.random.split(key, 5)

    x = jax.random.normal(kx, (B, Cin, H, W), dtype=jnp.float32)
    h_cur = jax.random.normal(kh, (B, Hd, H, W), dtype=jnp.float32)
    c_cur = jax.random.normal(kc, (B, Hd, H, W), dtype=jnp.float32)

    # Deterministic Conv2d(input+hidden -> 4*hidden, k, stride=1, pad=k//2) params.
    fan_in = (Cin + Hd) * K * K
    bound = 1.0 / jnp.sqrt(fan_in)
    weight = jax.random.uniform(kw, (4 * Hd, Cin + Hd, K, K),
                                minval=-bound, maxval=bound, dtype=jnp.float32)
    bias = jax.random.uniform(kb, (4 * Hd,),
                              minval=-bound, maxval=bound, dtype=jnp.float32)

    fwd = jax.jit(functools.partial(conv_lstm_cell_forward, kernel_size=K))
    h_next, c_next = fwd(x, h_cur, c_cur, weight, bias)
    jax.block_until_ready((h_next, c_next))

    h_ref, c_ref = _reference_forward(x, h_cur, c_cur, weight, bias,
                                      kernel_size=K)
    # bf16 matmul inputs (f32 accumulate) + bf16 h output vs f32 reference.
    assert jnp.allclose(h_next.astype(jnp.float32), h_ref, atol=3e-2, rtol=3e-2)
    assert jnp.allclose(c_next, c_ref, atol=3e-2, rtol=3e-2)

    print("KERNEL_OK")
</pallas_src>

<mosaic_0001>
module attributes {stable_mosaic.version = 11 : i64} {
  func.func @_convlstm_kernel(%arg0: i32, %arg1: i32, %arg2: memref<1x1x18x18x12xbf16, #tpu.memory_space<vmem>>, %arg3: memref<32x128xbf16, #tpu.memory_space<vmem>>, %arg4: memref<32x1xf32, #tpu.memory_space<vmem>>, %arg5: memref<1x8x256xf32, #tpu.memory_space<vmem>>, %arg6: memref<1x8x256xbf16, #tpu.memory_space<vmem>>, %arg7: memref<1x8x256xf32, #tpu.memory_space<vmem>>) attributes {dimension_semantics = [#tpu.dimension_semantics<parallel>, #tpu.dimension_semantics<parallel>], iteration_bounds = array<i64: 2, 1>, scalar_prefetch = 0 : i64, scratch_operands = 0 : i64, tpu.core_type = #tpu.core_type<tc>, window_params = [{transform_indices = @transform_0, window_bounds = array<i64: 1, 1, 18, 18, 12>}, {pipeline_mode = #tpu.pipeline_mode<synchronous>, transform_indices = @transform_1, window_bounds = array<i64: 32, 128>}, {pipeline_mode = #tpu.pipeline_mode<synchronous>, transform_indices = @transform_2, window_bounds = array<i64: 32, 1>}, {transform_indices = @transform_3, window_bounds = array<i64: 1, 8, 256>}, {transform_indices = @transform_4, window_bounds = array<i64: 1, 8, 256>}, {transform_indices = @transform_5, window_bounds = array<i64: 1, 8, 256>}]} {
    %c0 = arith.constant 0 : index
    %c0_0 = arith.constant 0 : index
    %c0_1 = arith.constant 0 : index
    %c0_2 = arith.constant 0 : index
    %c0_3 = arith.constant 0 : index
    %0 = vector.load %arg2[%c0, %c0_0, %c0_1, %c0_2, %c0_3] : memref<1x1x18x18x12xbf16, #tpu.memory_space<vmem>>, vector<1x1x16x16x12xbf16>
    %1 = vector.shape_cast %0 : vector<1x1x16x16x12xbf16> to vector<16x16x12xbf16>
    %2 = vector.shape_cast %1 : vector<16x16x12xbf16> to vector<256x12xbf16>
    %c0_4 = arith.constant 0 : index
    %c0_5 = arith.constant 0 : index
    %c0_6 = arith.constant 0 : index
    %c1 = arith.constant 1 : index
    %c0_7 = arith.constant 0 : index
    %3 = vector.load %arg2[%c0_4, %c0_5, %c0_6, %c1, %c0_7] : memref<1x1x18x18x12xbf16, #tpu.memory_space<vmem>>, vector<1x1x16x16x12xbf16>
    %4 = vector.shape_cast %3 : vector<1x1x16x16x12xbf16> to vector<16x16x12xbf16>
    %5 = vector.shape_cast %4 : vector<16x16x12xbf16> to vector<256x12xbf16>
    %c0_8 = arith.constant 0 : index
    %c0_9 = arith.constant 0 : index
    %c0_10 = arith.constant 0 : index
    %c2 = arith.constant 2 : index
    %c0_11 = arith.constant 0 : index
    %6 = vector.load %arg2[%c0_8, %c0_9, %c0_10, %c2, %c0_11] : memref<1x1x18x18x12xbf16, #tpu.memory_space<vmem>>, vector<1x1x16x16x12xbf16>
    %7 = vector.shape_cast %6 : vector<1x1x16x16x12xbf16> to vector<16x16x12xbf16>
    %8 = vector.shape_cast %7 : vector<16x16x12xbf16> to vector<256x12xbf16>
    %c0_12 = arith.constant 0 : index
    %c0_13 = arith.constant 0 : index
    %c1_14 = arith.constant 1 : index
    %c0_15 = arith.constant 0 : index
    %c0_16 = arith.constant 0 : index
    %9 = vector.load %arg2[%c0_12, %c0_13, %c1_14, %c0_15, %c0_16] : memref<1x1x18x18x12xbf16, #tpu.memory_space<vmem>>, vector<1x1x16x16x12xbf16>
    %10 = vector.shape_cast %9 : vector<1x1x16x16x12xbf16> to vector<16x16x12xbf16>
    %11 = vector.shape_cast %10 : vector<16x16x12xbf16> to vector<256x12xbf16>
    %c0_17 = arith.constant 0 : index
    %c0_18 = arith.constant 0 : index
    %c1_19 = arith.constant 1 : index
    %c1_20 = arith.constant 1 : index
    %c0_21 = arith.constant 0 : index
    %12 = vector.load %arg2[%c0_17, %c0_18, %c1_19, %c1_20, %c0_21] : memref<1x1x18x18x12xbf16, #tpu.memory_space<vmem>>, vector<1x1x16x16x12xbf16>
    %13 = vector.shape_cast %12 : vector<1x1x16x16x12xbf16> to vector<16x16x12xbf16>
    %14 = vector.shape_cast %13 : vector<16x16x12xbf16> to vector<256x12xbf16>
    %c0_22 = arith.constant 0 : index
    %c0_23 = arith.constant 0 : index
    %c1_24 = arith.constant 1 : index
    %c2_25 = arith.constant 2 : index
    %c0_26 = arith.constant 0 : index
    %15 = vector.load %arg2[%c0_22, %c0_23, %c1_24, %c2_25, %c0_26] : memref<1x1x18x18x12xbf16, #tpu.memory_space<vmem>>, vector<1x1x16x16x12xbf16>
    %16 = vector.shape_cast %15 : vector<1x1x16x16x12xbf16> to vector<16x16x12xbf16>
    %17 = vector.shape_cast %16 : vector<16x16x12xbf16> to vector<256x12xbf16>
    %c0_27 = arith.constant 0 : index
    %c0_28 = arith.constant 0 : index
    %c2_29 = arith.constant 2 : index
    %c0_30 = arith.constant 0 : index
    %c0_31 = arith.constant 0 : index
    %18 = vector.load %arg2[%c0_27, %c0_28, %c2_29, %c0_30, %c0_31] : memref<1x1x18x18x12xbf16, #tpu.memory_space<vmem>>, vector<1x1x16x16x12xbf16>
    %19 = vector.shape_cast %18 : vector<1x1x16x16x12xbf16> to vector<16x16x12xbf16>
    %20 = vector.shape_cast %19 : vector<16x16x12xbf16> to vector<256x12xbf16>
    %c0_32 = arith.constant 0 : index
    %c0_33 = arith.constant 0 : index
    %c2_34 = arith.constant 2 : index
    %c1_35 = arith.constant 1 : index
    %c0_36 = arith.constant 0 : index
    %21 = vector.load %arg2[%c0_32, %c0_33, %c2_34, %c1_35, %c0_36] : memref<1x1x18x18x12xbf16, #tpu.memory_space<vmem>>, vector<1x1x16x16x12xbf16>
    %22 = vector.shape_cast %21 : vector<1x1x16x16x12xbf16> to vector<16x16x12xbf16>
    %23 = vector.shape_cast %22 : vector<16x16x12xbf16> to vector<256x12xbf16>
    %c0_37 = arith.constant 0 : index
    %c0_38 = arith.constant 0 : index
    %c2_39 = arith.constant 2 : index
    %c2_40 = arith.constant 2 : index
    %c0_41 = arith.constant 0 : index
    %24 = vector.load %arg2[%c0_37, %c0_38, %c2_39, %c2_40, %c0_41] : memref<1x1x18x18x12xbf16, #tpu.memory_space<vmem>>, vector<1x1x16x16x12xbf16>
    %25 = vector.shape_cast %24 : vector<1x1x16x16x12xbf16> to vector<16x16x12xbf16>
    %26 = vector.shape_cast %25 : vector<16x16x12xbf16> to vector<256x12xbf16>
    %cst = arith.constant 0.000000e+00 : bf16
    %27 = vector.broadcast %cst : bf16 to vector<256x20xbf16>
    %28 = tpu.concatenate %2, %5, %8, %11, %14, %17, %20, %23, %26, %27 in 1 : vector<256x12xbf16>, vector<256x12xbf16>, vector<256x12xbf16>, vector<256x12xbf16>, vector<256x12xbf16>, vector<256x12xbf16>, vector<256x12xbf16>, vector<256x12xbf16>, vector<256x12xbf16>, vector<256x20xbf16> -> vector<256x128xbf16>
    %c0_42 = arith.constant 0 : index
    %c0_43 = arith.constant 0 : index
    %29 = vector.load %arg3[%c0_42, %c0_43] : memref<32x128xbf16, #tpu.memory_space<vmem>>, vector<32x128xbf16>
    %cst_44 = arith.constant dense<0.000000e+00> : vector<32x256xf32>
    %30 = tpu.matmul %29, %28, %cst_44 {dimension_numbers = #tpu.dot_dimension_numbers<[1], [1], [0], [0], [0, 0, 1, 0], [], []>} : vector<32x128xbf16>, vector<256x128xbf16>, vector<32x256xf32> -> vector<32x256xf32>
    %c0_45 = arith.constant 0 : index
    %c0_46 = arith.constant 0 : index
    %31 = vector.load %arg4[%c0_45, %c0_46] : memref<32x1xf32, #tpu.memory_space<vmem>>, vector<32x1xf32>
    %32 = vector.broadcast %31 : vector<32x1xf32> to vector<32x256xf32>
    %33 = arith.addf %30, %32 : vector<32x256xf32>
    %34 = vector.extract_strided_slice %33 {offsets = [0, 0], sizes = [8, 256], strides = [1, 1]} : vector<32x256xf32> to vector<8x256xf32>
    %35 = arith.negf %34 : vector<8x256xf32>
    %36 = math.exp %35 : vector<8x256xf32>
    %cst_47 = arith.constant 1.000000e+00 : f32
    %37 = vector.broadcast %cst_47 : f32 to vector<8x256xf32>
    %38 = arith.addf %37, %36 : vector<8x256xf32>
    %39 = arith.divf %37, %38 : vector<8x256xf32>
    %40 = vector.extract_strided_slice %33 {offsets = [8, 0], sizes = [8, 256], strides = [1, 1]} : vector<32x256xf32> to vector<8x256xf32>
    %41 = arith.negf %40 : vector<8x256xf32>
    %42 = math.exp %41 : vector<8x256xf32>
    %cst_48 = arith.constant 1.000000e+00 : f32
    %43 = vector.broadcast %cst_48 : f32 to vector<8x256xf32>
    %44 = arith.addf %43, %42 : vector<8x256xf32>
    %45 = arith.divf %43, %44 : vector<8x256xf32>
    %46 = vector.extract_strided_slice %33 {offsets = [16, 0], sizes = [8, 256], strides = [1, 1]} : vector<32x256xf32> to vector<8x256xf32>
    %47 = math.tanh %46 : vector<8x256xf32>
    %48 = vector.extract_strided_slice %33 {offsets = [24, 0], sizes = [8, 256], strides = [1, 1]} : vector<32x256xf32> to vector<8x256xf32>
    %49 = arith.negf %48 : vector<8x256xf32>
    %50 = math.exp %49 : vector<8x256xf32>
    %cst_49 = arith.constant 1.000000e+00 : f32
    %51 = vector.broadcast %cst_49 : f32 to vector<8x256xf32>
    %52 = arith.addf %51, %50 : vector<8x256xf32>
    %53 = arith.divf %51, %52 : vector<8x256xf32>
    %c0_50 = arith.constant 0 : index
    %c0_51 = arith.constant 0 : index
    %c0_52 = arith.constant 0 : index
    %54 = vector.load %arg5[%c0_50, %c0_51, %c0_52] : memref<1x8x256xf32, #tpu.memory_space<vmem>>, vector<1x8x256xf32>
    %55 = vector.shape_cast %54 : vector<1x8x256xf32> to vector<8x256xf32>
    %56 = arith.mulf %45, %55 : vector<8x256xf32>
    %57 = arith.mulf %39, %47 : vector<8x256xf32>
    %58 = arith.addf %56, %57 : vector<8x256xf32>
    %59 = math.tanh %58 : vector<8x256xf32>
    %60 = arith.mulf %53, %59 : vector<8x256xf32>
    %c0_53 = arith.constant 0 : index
    %c0_54 = arith.constant 0 : index
    %c0_55 = arith.constant 0 : index
    %61 = vector.load %arg7[%c0_53, %c0_54, %c0_55] : memref<1x8x256xf32, #tpu.memory_space<vmem>>, vector<1x8x256xf32>
    %62 = vector.shape_cast %61 : vector<1x8x256xf32> to vector<8x256xf32>
    %63 = vector.shape_cast %58 : vector<8x256xf32> to vector<1x8x256xf32>
    tpu.vector_store %arg7[%c0_53, %c0_54, %c0_55], %63 {strides = array<i32>} : memref<1x8x256xf32, #tpu.memory_space<vmem>>, vector<1x8x256xf32>,
    %64 = arith.truncf %60 : vector<8x256xf32> to vector<8x256xbf16>
    %c0_56 = arith.constant 0 : index
    %c0_57 = arith.constant 0 : index
    %c0_58 = arith.constant 0 : index
    %65 = vector.load %arg6[%c0_56, %c0_57, %c0_58] : memref<1x8x256xbf16, #tpu.memory_space<vmem>>, vector<1x8x256xbf16>
    %66 = vector.shape_cast %65 : vector<1x8x256xbf16> to vector<8x256xbf16>
    %67 = vector.shape_cast %64 : vector<8x256xbf16> to vector<1x8x256xbf16>
    tpu.vector_store %arg6[%c0_56, %c0_57, %c0_58], %67 {strides = array<i32>} : memref<1x8x256xbf16, #tpu.memory_space<vmem>>, vector<1x8x256xbf16>,
    return
  }
  func.func @transform_0(%arg0: i32, %arg1: i32) -> (i32, i32, i32, i32, i32) {
    %c0_i32 = arith.constant 0 : i32
    %c0_i32_0 = arith.constant 0 : i32
    %c0_i32_1 = arith.constant 0 : i32
    %c0_i32_2 = arith.constant 0 : i32
    return %arg0, %arg1, %c0_i32, %c0_i32_0, %c0_i32_1 : i32, i32, i32, i32, i32
  }
  func.func @transform_1(%arg0: i32, %arg1: i32) -> (i32, i32) {
    %c0_i32 = arith.constant 0 : i32
    %c0_i32_0 = arith.constant 0 : i32
    %c0_i32_1 = arith.constant 0 : i32
    return %c0_i32, %c0_i32_0 : i32, i32
  }
  func.func @transform_2(%arg0: i32, %arg1: i32) -> (i32, i32) {
    %c0_i32 = arith.constant 0 : i32
    %c0_i32_0 = arith.constant 0 : i32
    %c0_i32_1 = arith.constant 0 : i32
    return %c0_i32, %c0_i32_0 : i32, i32
  }
  func.func @transform_3(%arg0: i32, %arg1: i32) -> (i32, i32, i32) {
    %c0_i32 = arith.constant 0 : i32
    %c0_i32_0 = arith.constant 0 : i32
    return %arg0, %c0_i32, %arg1 : i32, i32, i32
  }
  func.func @transform_4(%arg0: i32, %arg1: i32) -> (i32, i32, i32) {
    %c0_i32 = arith.constant 0 : i32
    %c0_i32_0 = arith.constant 0 : i32
    return %arg0, %c0_i32, %arg1 : i32, i32, i32
  }
  func.func @transform_5(%arg0: i32, %arg1: i32) -> (i32, i32, i32) {
    %c0_i32 = arith.constant 0 : i32
    %c0_i32_0 = arith.constant 0 : i32
    return %arg0, %c0_i32, %arg1 : i32, i32, i32
  }
}

</mosaic_0001>

<bundles_post_ra>
// kernel: conv_lstm_cell_forward.1
= control target key start
LH: loop header
LB: loop body
LE: loop exit
PB: predicated region body
PF: predicated region fallthrough
CT: control target
= control target key end

     0   :  { %s4170_s18 = smov 0   ;;  %s4172_s19 = smov 0   ;;  %s6127_s0 = inlined_call_operand.vmem [shape: bf16[2,1,18,18,12], index: 0, kind: input, shape index: {}]   ;;  %s6128_s1 = inlined_call_operand.vmem [shape: bf16[32,128], index: 1, kind: input, shape index: {}]   ;;  %s6129_s2 = inlined_call_operand.vmem [shape: f32[32,1], index: 2, kind: input, shape index: {}]   ;;  %s6130_s3 = inlined_call_operand.vmem [shape: f32[2,8,256], index: 3, kind: input, shape index: {}, may-alias: {3,5}]   ;;  %s6131_s4 = inlined_call_operand.vmem [shape: bf16[2,8,256], index: 4, kind: output, shape index: {0}]   ;;  %s6132_s5 = inlined_call_operand.vmem [shape: f32[2,8,256], index: 5, kind: output, shape index: {1}, may-alias: {3,5}]  }
   0x1   :  { %s4174_s20 = smov 0  }
   0x2 LB: > { %s28_s21 = sadd.s32 1, %s4125_s19  ;;  %p3577_p0 = scmp.ge.s32.totalorder %s4129_s20, 1  ;;  %s4129_s20 = sphi %s4174_s20, %s16_s20   ;;  %s4125_s19 = sphi %s4172_s19, %s6146_s19   ;;  %s4121_s18 = sphi %s4170_s18, %s6145_s18  }
   0x3   : > { %p30_p1 = scmp.ge.s32.totalorder %s28_s21, 2  ;;  %p229_p2 = scmp.lt.s32.totalorder %s4129_s20, 3 }
   0x5   : > { %s6148_s21 = smov (%p30_p1, %s28_s21), 0  ;;  %p230_p3 = pnand %p3577_p0, %p229_p2 }
   0x7   : > { %233 = sbr.rel (%p230_p3) target bundleno = 708 (0x2c4), region = 36 }
   0xc   : > { %p283_p4 = scmp.lt.s32.totalorder %s4121_s18, 1  ;;  %vm371_vm0 = vsmask.f32 3328  ;;  %vm372_vm1 = vsmask.f32 7440  ;;  %s4131_s26 = smov 12  }
   0xd   : > { %vm4222_vm2 = vmor %vm371_vm0, %vm372_vm1  ;;  %vm822_vm3 = vcmask 1042432   ;;  %vm823_vm4 = vcmask 1046532   ;;  %s4132_s27 = smov 24   ;;  %s4133_s28 = smov 36   ;;  %vm2891_vm6 = vcmask 97280   ;;  %vm2940_vm7 = vcmask 195584  }
   0xe   : > { %s6150_s18 = smov (!%p283_p4, %s4121_s18), 1  ;;  %vm4424_vm5 = vmor %vm822_vm3, %vm823_vm4  ;;  %s4134_s29 = smov 48   ;;  %vm2973_vm8 = vcmask 293888   ;;  %vm3006_vm9 = vcmask 392192   ;;  %vm3039_vm10 = vcmask 490496   ;;  %vm3072_vm11 = vcmask 588800  }
   0xf   : > { %s4038_s22 = smul.u32 216, %s6150_s18  ;;  %s4135_s30 = smov 60   ;;  %vm3105_vm12 = vcmask 687104   ;;  %vm3138_vm13 = vcmask 785408   ;;  %vm3171_vm14 = vcmask 883712  }
  0x10   : > { %s4136_s6 = smov 84   ;;  %s4137_s7 = smov 72  }
  0x11   : > { %s4194_s25 = scalar_lea.vmem %s6127_s0, %s4038_s22  ;;  %s4138_s8 = smov 96  }
  0x12   : > { %v331_v0 = vld [vmem:[%s4194_s25 + $0x30] sm:$0xf]  ;;  %v4198_v1 = vld [vmem:[%s4194_s25 + $0x34] sm:$0xf]  ;;  %v4201_v2 = vld [vmem:[%s4194_s25 + $0x38] sm:$0x1] }
  0x13   : > { %v471_v3 = vshrl.u32 %v331_v0, 16  ;;  %v474_v4 = vshll.u32 %v331_v0, 16  ;;  %v480_v5 = vshll.u32 %v4198_v1, 16  ;;  %v484_v6 = vshrl.u32 %v4198_v1, 16  ;;  %v327_v7 = vld [vmem:[%s4194_s25 + $0x18] sm:$0xf] }
  0x14   : > { %v490_v8 = vshll.u32 %v4201_v2, 16  ;;  %v4208_v9 = vld [vmem:[%s4194_s25 + $0x1c] sm:$0xf]  ;;  %v4211_v10 = vld [vmem:[%s4194_s25 + $0x20] sm:$0x1]  ;;  %v423_v11 = vshrl.u32 %v327_v7, 16 }
  0x15   : > { %v473_v12 = vrot.slane %v471_v3, 4  ;;  %v476_v13 = vrot.slane %v474_v4, 5  ;;  %v482_v14 = vrot.slane %v480_v5, 5  ;;  %v486_v15 = vrot.slane %v484_v6, 4  ;;  %v323_v16 = vld [vmem:[%s4194_s25] sm:$0xf] }
  0x16   : > { %v492_v17 = vrot.slane %v490_v8, 5  ;;  %v425_v18 = vrot.slane %v423_v11, 4  ;;  %v426_v19 = vshll.u32 %v327_v7, 16  ;;  %v432_v20 = vshll.u32 %v4208_v9, 16  ;;  %v4218_v25 = vld [vmem:[%s4194_s25 + $0x4] sm:$0xf] }
  0x17   : > { %v477_v21 = vor.u32 %v476_v13, %v473_v12  ;;  %v487_v22 = vor.u32 %v486_v15, %v482_v14  ;;  %v436_v23 = vshrl.u32 %v4208_v9, 16  ;;  %v442_v24 = vshll.u32 %v4211_v10, 16  ;;  %v4227_v36 = vld [vmem:[%s4194_s25 + $0x8] sm:$0x1]  ;;  %v333_v44 = vld [vmem:[%s4194_s25 + $0x3c] sm:$0xf] }
  0x18   : > { %v428_v27 = vrot.slane %v426_v19, 5  ;;  %v434_v28 = vrot.slane %v432_v20, 5  ;;  %v375_v29 = vshrl.u32 %v323_v16, 16  ;;  %v378_v30 = vshll.u32 %v323_v16, 16  ;;  %v4240_v56 = vld [vmem:[%s4194_s25 + $0x40] sm:$0xf] }
  0x19   : > { %v478_v31 = vrot.slane %v477_v21, 4  ;;  %v488_v32 = vrot.slane %v487_v22, 4  ;;  %v438_v33 = vrot.slane %v436_v23, 4  ;;  %v444_v34 = vrot.slane %v442_v24, 5  ;;  %v4245_v62 = vld [vmem:[%s4194_s25 + $0x44] sm:$0x1] }
  0x1a   : > { %v429_v35 = vor.u32 %v428_v27, %v425_v18  ;;  %v377_v37 = vrot.slane %v375_v29, 4  ;;  %v380_v38 = vrot.slane %v378_v30, 5  ;;  %v384_v39 = vshll.u32 %v4218_v25, 16  ;;  %v329_v63 = vld [vmem:[%s4194_s25 + $0x24] sm:$0xf] }
  0x1b   : > { %v483_v40 = vsel %vm4222_vm2, %v478_v31, %v482_v14  ;;  %v493_v41 = vsel %vm4222_vm2, %v488_v32, %v492_v17  ;;  %v439_v42 = vor.u32 %v438_v33, %v434_v28  ;;  %v388_v43 = vshrl.u32 %v4218_v25, 16  ;;  %v4254_v12 = vld [vmem:[%s4194_s25 + $0x28] sm:$0xf]  ;;  %v4258_v16 = vld [vmem:[%s4194_s25 + $0x2c] sm:$0x1] }
  0x1c   : > { %v2227_v45 = vunpack.c.l.b16 %v483_v40  ;;  %v2228_v46 = vunpack.c.l.b16 %v493_v41  ;;  %v430_v47 = vrot.slane %v429_v35, 4  ;;  %v381_v48 = vor.u32 %v380_v38, %v377_v37  ;;  %v325_v22 = vld [vmem:[%s4194_s25 + $0xc] sm:$0xf]  ;;  %v4268_v37 = vld [vmem:[%s4194_s25 + $0x10] sm:$0xf] }
  0x1d   : > { %v440_v49 = vrot.slane %v439_v42, 4  ;;  %v386_v50 = vrot.slane %v384_v39, 5  ;;  %v390_v51 = vrot.slane %v388_v43, 4  ;;  %v394_v52 = vshll.u32 %v4227_v36, 16  ;;  %v4271_v43 = vld [vmem:[%s4194_s25 + $0x14] sm:$0x1] }
  0x1e   : > { %v2255_v53 = vpack.c.b16 %v2228_v46, %v2227_v45  ;;  %v435_v54 = vsel %vm4222_vm2, %v430_v47, %v434_v28  ;;  %v382_v55 = vrot.slane %v381_v48, 4  ;;  %v495_v57 = vshrl.u32 %v333_v44, 16  ;;  %v339_v48 = vld [vmem:[%s4194_s25 + $0x60] sm:$0xf] }
  0x1f   : > { %v445_v58 = vsel %vm4222_vm2, %v440_v49, %v444_v34  ;;  %v2223_v59 = vunpack.c.l.b16 %v435_v54  ;;  %v391_v60 = vor.u32 %v390_v51, %v386_v50  ;;  %v396_v61 = vrot.slane %v394_v52, 5 }
  0x20   : > { %2275 = vrot.lane.b32.xlu2 %v2255_v53, %s4131_s26  ;;  %v2224_v0 = vunpack.c.l.b16 %v445_v58  ;;  %v387_v3 = vsel %vm4222_vm2, %v382_v55, %v386_v50  ;;  %v497_v4 = vrot.slane %v495_v57, 4  ;;  %v498_v5 = vshll.u32 %v333_v44, 16 }
  0x21   : > { %v392_v6 = vrot.slane %v391_v60, 4  ;;  %v2219_v7 = vunpack.c.l.b16 %v387_v3  ;;  %v504_v8 = vshll.u32 %v4240_v56, 16  ;;  %v508_v11 = vshrl.u32 %v4240_v56, 16 }
  0x22   : > { %v2253_v13 = vpack.c.b16 %v2224_v0, %v2223_v59  ;;  %v500_v14 = vrot.slane %v498_v5, 5  ;;  %v514_v15 = vshll.u32 %v4245_v62, 16  ;;  %v447_v17 = vshrl.u32 %v329_v63, 16 }
  0x23   : > { %v397_v18 = vsel %vm4222_vm2, %v392_v6, %v396_v61  ;;  %v506_v19 = vrot.slane %v504_v8, 5  ;;  %v510_v20 = vrot.slane %v508_v11, 4  ;;  %v450_v21 = vshll.u32 %v329_v63, 16  ;;  %v4285_v61 = vld [vmem:[%s4194_s25 + $0x64] sm:$0xf] }
  0x24   : > { %2271 = vrot.lane.b32.xlu1 %v2253_v13, %s4131_s26  ;;  %v2220_v23 = vunpack.c.l.b16 %v397_v18  ;;  %v501_v24 = vor.u32 %v500_v14, %v497_v4  ;;  %v516_v27 = vrot.slane %v514_v15, 5  ;;  %v449_v28 = vrot.slane %v447_v17, 4  ;;  %v4288_v6 = vld [vmem:[%s4194_s25 + $0x68] sm:$0x1] }
  0x25   : > { %v511_v29 = vor.u32 %v510_v20, %v506_v19  ;;  %v452_v30 = vrot.slane %v450_v21, 5  ;;  %v456_v31 = vshll.u32 %v4254_v12, 16  ;;  %v460_v32 = vshrl.u32 %v4254_v12, 16 }
  0x26   : > { %v2251_v33 = vpack.c.b16 %v2220_v23, %v2219_v7  ;;  %v502_v34 = vrot.slane %v501_v24, 4  ;;  %v466_v35 = vshll.u32 %v4258_v16, 16  ;;  %v399_v38 = vshrl.u32 %v325_v22, 16  ;;  %v337_v7 = vld [vmem:[%s4194_s25 + $0x54] sm:$0xf] }
  0x27   : > { %v512_v39 = vrot.slane %v511_v29, 4  ;;  %v453_v40 = vor.u32 %v452_v30, %v449_v28  ;;  %v458_v41 = vrot.slane %v456_v31, 5  ;;  %v462_v42 = vrot.slane %v460_v32, 4  ;;  %v4298_v23 = vld [vmem:[%s4194_s25 + $0x58] sm:$0xf] }
  0x28   : > { %2267 = vrot.lane.b32.xlu0 %v2251_v33, %s4131_s26  ;;  %v507_v44 = vsel %vm4222_vm2, %v502_v34, %v506_v19  ;;  %v468_v45 = vrot.slane %v466_v35, 5  ;;  %v401_v46 = vrot.slane %v399_v38, 4  ;;  %v402_v47 = vshll.u32 %v325_v22, 16  ;;  %v4303_v31 = vld [vmem:[%s4194_s25 + $0x5c] sm:$0x1] }
  0x29   : > { %v517_v49 = vsel %vm4222_vm2, %v512_v39, %v516_v27  ;;  %v2229_v50 = vunpack.c.l.b16 %v507_v44  ;;  %v454_v51 = vrot.slane %v453_v40, 4  ;;  %v463_v52 = vor.u32 %v462_v42, %v458_v41  ;;  %v335_v42 = vld [vmem:[%s4194_s25 + $0x48] sm:$0xf] }
  0x2a   : > { %v2230_v53 = vunpack.c.l.b16 %v517_v49  ;;  %v404_v54 = vrot.slane %v402_v47, 5  ;;  %v408_v55 = vshll.u32 %v4268_v37, 16  ;;  %v412_v57 = vshrl.u32 %v4268_v37, 16 }
  0x2b   : > { %v459_v58 = vsel %vm4222_vm2, %v454_v51, %v458_v41  ;;  %v464_v59 = vrot.slane %v463_v52, 4  ;;  %v418_v60 = vshll.u32 %v4271_v43, 16  ;;  %v567_v63 = vshrl.u32 %v339_v48, 16 }
  0x2c   : > { %v2256_v0 = vpack.c.b16 %v2230_v53, %v2229_v50  ;;  %v2225_v3 = vunpack.c.l.b16 %v459_v58  ;;  %v405_v4 = vor.u32 %v404_v54, %v401_v46  ;;  %v410_v5 = vrot.slane %v408_v55, 5  ;;  %v4313_v55 = vld [vmem:[%s4194_s25 + $0x4c] sm:$0xf] }
  0x2d   : > { %v469_v8 = vsel %vm4222_vm2, %v464_v59, %v468_v45  ;;  %v414_v11 = vrot.slane %v412_v57, 4  ;;  %v420_v13 = vrot.slane %v418_v60, 5  ;;  %v569_v14 = vrot.slane %v567_v63, 4  ;;  %v4318_v63 = vld [vmem:[%s4194_s25 + $0x50] sm:$0x1] }
  0x2e   : > { %2277 = vrot.lane.b32.xlu2 %v2256_v0, %s4131_s26  ;;  %v2226_v15 = vunpack.c.l.b16 %v469_v8  ;;  %v406_v17 = vrot.slane %v405_v4, 4  ;;  %v570_v18 = vshll.u32 %v339_v48, 16  ;;  %v576_v19 = vshll.u32 %v4285_v61, 16 }
  0x2f   : > { %v415_v20 = vor.u32 %v414_v11, %v410_v5  ;;  %v580_v21 = vshrl.u32 %v4285_v61, 16  ;;  %v586_v22 = vshll.u32 %v4288_v6, 16  ;;  %v543_v24 = vshrl.u32 %v337_v7, 16 }
  0x30   : > { %v2254_v27 = vpack.c.b16 %v2226_v15, %v2225_v3  ;;  %v411_v28 = vsel %vm4222_vm2, %v406_v17, %v410_v5  ;;  %v572_v29 = vrot.slane %v570_v18, 5  ;;  %v578_v30 = vrot.slane %v576_v19, 5  ;;  %v345_v3 = vld [vmem:[%s4194_s25 + $0x84] sm:$0xf] }
  0x31   : > { %v416_v32 = vrot.slane %v415_v20, 4  ;;  %v2221_v33 = vunpack.c.l.b16 %v411_v28  ;;  %v582_v34 = vrot.slane %v580_v21, 4  ;;  %v588_v35 = vrot.slane %v586_v22, 5  ;;  %v4330_v28 = vld [vmem:[%s4194_s25 + $0x88] sm:$0xf] }
  0x32   : > { %2273 = vrot.lane.b32.xlu1 %v2254_v27, %s4131_s26  ;;  %v573_v38 = vor.u32 %v572_v29, %v569_v14  ;;  %v545_v39 = vrot.slane %v543_v24, 4  ;;  %v546_v40 = vshll.u32 %v337_v7, 16  ;;  %v552_v41 = vshll.u32 %v4298_v23, 16  ;;  %v4333_v29 = vld [vmem:[%s4194_s25 + $0x8c] sm:$0x1] }
  0x33   : > { %v421_v44 = vsel %vm4222_vm2, %v416_v32, %v420_v13  ;;  %v583_v45 = vor.u32 %v582_v34, %v578_v30  ;;  %v556_v46 = vshrl.u32 %v4298_v23, 16  ;;  %v562_v47 = vshll.u32 %v4303_v31, 16 }
  0x34   : > { %v2222_v48 = vunpack.c.l.b16 %v421_v44  ;;  %v574_v49 = vrot.slane %v573_v38, 4  ;;  %v548_v50 = vrot.slane %v546_v40, 5  ;;  %v554_v51 = vrot.slane %v552_v41, 5 }
  0x35   : > { %v584_v52 = vrot.slane %v583_v45, 4  ;;  %v558_v53 = vrot.slane %v556_v46, 4  ;;  %v564_v54 = vrot.slane %v562_v47, 5  ;;  %v519_v57 = vshrl.u32 %v335_v42, 16 }
  0x36   : > { %v2252_v58 = vpack.c.b16 %v2222_v48, %v2221_v33  ;;  %v579_v59 = vsel %vm4222_vm2, %v574_v49, %v578_v30  ;;  %v549_v60 = vor.u32 %v548_v50, %v545_v39  ;;  %v522_v0 = vshll.u32 %v335_v42, 16  ;;  %v4345_v50 = vld [vmem:[%s4194_s25 + $0x7c] sm:$0xf] }
  0x37   : > { %v589_v4 = vsel %vm4222_vm2, %v584_v52, %v588_v35  ;;  %v2235_v5 = vunpack.c.l.b16 %v579_v59  ;;  %v559_v7 = vor.u32 %v558_v53, %v554_v51  ;;  %v521_v8 = vrot.slane %v519_v57, 4  ;;  %v343_v35 = vld [vmem:[%s4194_s25 + $0x78] sm:$0xf] }
  0x38   : > { %2269 = vrot.lane.b32.xlu0 %v2252_v58, %s4131_s26  ;;  %v2236_v11 = vunpack.c.l.b16 %v589_v4  ;;  %v550_v13 = vrot.slane %v549_v60, 4  ;;  %v524_v14 = vrot.slane %v522_v0, 5  ;;  %v528_v15 = vshll.u32 %v4313_v55, 16  ;;  %v4348_v58 = vld [vmem:[%s4194_s25 + $0x80] sm:$0x1] }
  0x39   : > { %v560_v17 = vrot.slane %v559_v7, 4  ;;  %v532_v18 = vshrl.u32 %v4313_v55, 16  ;;  %v538_v19 = vshll.u32 %v4318_v63, 16  ;;  %v639_v20 = vshrl.u32 %v345_v3, 16  ;;  %v341_v4 = vld [vmem:[%s4194_s25 + $0x6c] sm:$0xf] }
  0x3a   : > { %v2259_v21 = vpack.c.b16 %v2236_v11, %v2235_v5  ;;  %v555_v22 = vsel %vm4222_vm2, %v550_v13, %v554_v51  ;;  %v525_v24 = vor.u32 %v524_v14, %v521_v8  ;;  %v530_v27 = vrot.slane %v528_v15, 5 }
  0x3b   : > { %v565_v30 = vsel %vm4222_vm2, %v560_v17, %v564_v54  ;;  %v2233_v32 = vunpack.c.l.b16 %v555_v22  ;;  %v534_v33 = vrot.slane %v532_v18, 4  ;;  %v540_v34 = vrot.slane %v538_v19, 5 }
  0x3c   : > { %2283 = vrot.lane.b32.xlu2 %v2259_v21, %s4131_s26  ;;  %v2234_v38 = vunpack.c.l.b16 %v565_v30  ;;  %v526_v39 = vrot.slane %v525_v24, 4  ;;  %v641_v40 = vrot.slane %v639_v20, 4  ;;  %v642_v41 = vshll.u32 %v345_v3, 16  ;;  %v4358_v21 = vld [vmem:[%s4194_s25 + $0x70] sm:$0xf] }
  0x3d   : > { %v535_v42 = vor.u32 %v534_v33, %v530_v27  ;;  %v648_v44 = vshll.u32 %v4330_v28, 16  ;;  %v652_v45 = vshrl.u32 %v4330_v28, 16  ;;  %v658_v46 = vshll.u32 %v4333_v29, 16  ;;  %v4363_v33 = vld [vmem:[%s4194_s25 + $0x74] sm:$0x1] }
  0x3e   : > { %v2258_v47 = vpack.c.b16 %v2234_v38, %v2233_v32  ;;  %v531_v48 = vsel %vm4222_vm2, %v526_v39, %v530_v27  ;;  %v644_v49 = vrot.slane %v642_v41, 5  ;;  %v615_v51 = vshrl.u32 %v343_v35, 16 }
  0x3f   : > { %v536_v52 = vrot.slane %v535_v42, 4  ;;  %v2231_v53 = vunpack.c.l.b16 %v531_v48  ;;  %v650_v54 = vrot.slane %v648_v44, 5  ;;  %v654_v57 = vrot.slane %v652_v45, 4 }
  0x40   : > { %2281 = vrot.lane.b32.xlu1 %v2258_v47, %s4131_s26  ;;  %v645_v59 = vor.u32 %v644_v49, %v641_v40  ;;  %v660_v60 = vrot.slane %v658_v46, 5  ;;  %v617_v0 = vrot.slane %v615_v51, 4  ;;  %v618_v3 = vshll.u32 %v343_v35, 16 }
  0x41   : > { %v541_v5 = vsel %vm4222_vm2, %v536_v52, %v540_v34  ;;  %v655_v7 = vor.u32 %v654_v57, %v650_v54  ;;  %v624_v8 = vshll.u32 %v4345_v50, 16  ;;  %v628_v11 = vshrl.u32 %v4345_v50, 16  ;;  %v351_v34 = vld [vmem:[%s4194_s25 + $0xa8] sm:$0xf]  ;;  %v4375_v57 = vld [vmem:[%s4194_s25 + $0xac] sm:$0xf] }
  0x42   : > { %v2232_v13 = vunpack.c.l.b16 %v541_v5  ;;  %v646_v14 = vrot.slane %v645_v59, 4  ;;  %v620_v15 = vrot.slane %v618_v3, 5  ;;  %v634_v17 = vshll.u32 %v4348_v58, 16  ;;  %v4378_v59 = vld [vmem:[%s4194_s25 + $0xb0] sm:$0x1] }
  0x43   : > { %v656_v18 = vrot.slane %v655_v7, 4  ;;  %v626_v19 = vrot.slane %v624_v8, 5  ;;  %v630_v20 = vrot.slane %v628_v11, 4  ;;  %v591_v22 = vshrl.u32 %v341_v4, 16  ;;  %v349_v5 = vld [vmem:[%s4194_s25 + $0x9c] sm:$0xf] }
  0x44   : > { %v2257_v24 = vpack.c.b16 %v2232_v13, %v2231_v53  ;;  %v651_v27 = vsel %vm4222_vm2, %v646_v14, %v650_v54  ;;  %v621_v30 = vor.u32 %v620_v15, %v617_v0  ;;  %v636_v32 = vrot.slane %v634_v17, 5 }
  0x45   : > { %v661_v35 = vsel %vm4222_vm2, %v656_v18, %v660_v60  ;;  %v2241_v38 = vunpack.c.l.b16 %v651_v27  ;;  %v631_v39 = vor.u32 %v630_v20, %v626_v19  ;;  %v593_v40 = vrot.slane %v591_v22, 4 }
  0x46   : > { %2279 = vrot.lane.b32.xlu0 %v2257_v24, %s4131_s26  ;;  %v2242_v41 = vunpack.c.l.b16 %v661_v35  ;;  %v622_v42 = vrot.slane %v621_v30, 4  ;;  %v594_v44 = vshll.u32 %v341_v4, 16  ;;  %v600_v45 = vshll.u32 %v4358_v21, 16  ;;  %v4388_v24 = vld [vmem:[%s4194_s25 + $0xa0] sm:$0xf] }
  0x47   : > { %v632_v46 = vrot.slane %v631_v39, 4  ;;  %v604_v47 = vshrl.u32 %v4358_v21, 16  ;;  %v610_v48 = vshll.u32 %v4363_v33, 16  ;;  %v711_v49 = vshrl.u32 %v351_v34, 16 }
  0x48   : > { %v2262_v51 = vpack.c.b16 %v2242_v41, %v2241_v38  ;;  %v627_v52 = vsel %vm4222_vm2, %v622_v42, %v626_v19  ;;  %v596_v53 = vrot.slane %v594_v44, 5  ;;  %v602_v54 = vrot.slane %v600_v45, 5  ;;  %v347_v44 = vld [vmem:[%s4194_s25 + $0x90] sm:$0xf] }
  0x49   : > { %v637_v60 = vsel %vm4222_vm2, %v632_v46, %v636_v32  ;;  %v2239_v0 = vunpack.c.l.b16 %v627_v52  ;;  %v606_v3 = vrot.slane %v604_v47, 4  ;;  %v612_v4 = vrot.slane %v610_v48, 5 }
  0x4a   : > { %2289 = vrot.lane.b32.xlu2 %v2262_v51, %s4131_s26  ;;  %v2240_v7 = vunpack.c.l.b16 %v637_v60  ;;  %v597_v8 = vor.u32 %v596_v53, %v593_v40  ;;  %v713_v11 = vrot.slane %v711_v49, 4  ;;  %v714_v13 = vshll.u32 %v351_v34, 16  ;;  %v4394_v40 = vld [vmem:[%s4194_s25 + $0xa4] sm:$0x1] }
  0x4b   : > { %v607_v14 = vor.u32 %v606_v3, %v602_v54  ;;  %v720_v15 = vshll.u32 %v4375_v57, 16  ;;  %v724_v17 = vshrl.u32 %v4375_v57, 16  ;;  %v730_v18 = vshll.u32 %v4378_v59, 16 }
  0x4c   : > { %v2261_v19 = vpack.c.b16 %v2240_v7, %v2239_v0  ;;  %v598_v20 = vrot.slane %v597_v8, 4  ;;  %v716_v22 = vrot.slane %v714_v13, 5  ;;  %v687_v27 = vshrl.u32 %v349_v5, 16  ;;  %v4408_v13 = vld [vmem:[%s4194_s25 + $0x98] sm:$0x1] }
  0x4d   : > { %v608_v30 = vrot.slane %v607_v14, 4  ;;  %v722_v32 = vrot.slane %v720_v15, 5  ;;  %v726_v35 = vrot.slane %v724_v17, 4  ;;  %v732_v38 = vrot.slane %v730_v18, 5 }
  0x4e   : > { %2287 = vrot.lane.b32.xlu1 %v2261_v19, %s4131_s26  ;;  %v603_v34 = vsel %vm4222_vm2, %v598_v20, %v602_v54  ;;  %v717_v39 = vor.u32 %v716_v22, %v713_v11  ;;  %v689_v41 = vrot.slane %v687_v27, 4  ;;  %v690_v42 = vshll.u32 %v349_v5, 16  ;;  %v4405_v11 = vld [vmem:[%s4194_s25 + $0x94] sm:$0xf] }
  0x4f   : > { %v613_v45 = vsel %vm4222_vm2, %v608_v30, %v612_v4  ;;  %v2237_v46 = vunpack.c.l.b16 %v603_v34  ;;  %v727_v47 = vor.u32 %v726_v35, %v722_v32  ;;  %v696_v48 = vshll.u32 %v4388_v24, 16  ;;  %v759_v34 = vld [vmem:[%s4194_s25 + $0xc] sm:$0xe] }
  0x50   : > { %v2238_v49 = vunpack.c.l.b16 %v613_v45  ;;  %v718_v51 = vrot.slane %v717_v39, 4  ;;  %v692_v52 = vrot.slane %v690_v42, 5  ;;  %v700_v53 = vshrl.u32 %v4388_v24, 16 }
  0x51   : > { %v728_v54 = vrot.slane %v727_v47, 4  ;;  %v698_v60 = vrot.slane %v696_v48, 5  ;;  %v706_v0 = vshll.u32 %v4394_v40, 16  ;;  %v663_v3 = vshrl.u32 %v347_v44, 16 }
  0x52   : > { %v2260_v5 = vpack.c.b16 %v2238_v49, %v2237_v46  ;;  %v723_v4 = vsel %vm4222_vm2, %v718_v51, %v722_v32  ;;  %v693_v7 = vor.u32 %v692_v52, %v689_v41  ;;  %v702_v8 = vrot.slane %v700_v53, 4  ;;  %v758_v49 = vld [vmem:[%s4194_s25] sm:$0xe] }
  0x53   : > { %v733_v14 = vsel %vm4222_vm2, %v728_v54, %v732_v38  ;;  %v2247_v15 = vunpack.c.l.b16 %v723_v4  ;;  %v708_v17 = vrot.slane %v706_v0, 5  ;;  %v665_v18 = vrot.slane %v663_v3, 4 }
  0x54   : > { %2285 = vrot.lane.b32.xlu0 %v2260_v5, %s4131_s26  ;;  %v2248_v19 = vunpack.c.l.b16 %v733_v14  ;;  %v694_v20 = vrot.slane %v693_v7, 4  ;;  %v703_v22 = vor.u32 %v702_v8, %v698_v60  ;;  %v666_v27 = vshll.u32 %v347_v44, 16 }
  0x55   : > { %v672_v30 = vshll.u32 %v4405_v11, 16  ;;  %v676_v32 = vshrl.u32 %v4405_v11, 16  ;;  %v682_v35 = vshll.u32 %v4408_v13, 16  ;;  %v3586_v52 = vrot.slane %v759_v34, 9 }
  0x56   : > { %v2265_v39 = vpack.c.b16 %v2248_v19, %v2247_v15  ;;  %v699_v38 = vsel %vm4222_vm2, %v694_v20, %v698_v60  ;;  %v704_v41 = vrot.slane %v703_v22, 4  ;;  %v668_v42 = vrot.slane %v666_v27, 5  ;;  %v353_v19 = vld [vmem:[%s4194_s25 + $0xb4] sm:$0xf] }
  0x57   : > { %v2245_v45 = vunpack.c.l.b16 %v699_v38  ;;  %v674_v46 = vrot.slane %v672_v30, 5  ;;  %v678_v47 = vrot.slane %v676_v32, 4  ;;  %v684_v48 = vrot.slane %v682_v35, 5  ;;  %v4448_v35 = vld [vmem:[%s4194_s25 + $0xbc] sm:$0x1] }
  0x58   : > { %2295 = vrot.lane.b32.xlu2 %v2265_v39, %s4131_s26  ;;  %v709_v44 = vsel %vm4222_vm2, %v704_v41, %v708_v17  ;;  %v669_v51 = vor.u32 %v668_v42, %v665_v18  ;;  %v834_v0 = vrot.slane %v4268_v37, 5  ;;  %v837_v3 = vrot.slane %v4271_v43, 5 }
  0x59   : > { %v2246_v53 = vunpack.c.l.b16 %v709_v44  ;;  %v679_v54 = vor.u32 %v678_v47, %v674_v46  ;;  %v3585_v4 = vrot.slane %v758_v49, 9  ;;  %v827_v7 = vrot.slane %v4218_v25, 5  ;;  %v4440_v25 = vld [vmem:[%s4194_s25 + $0xb8] sm:$0xf] }
  0x5a   : > { %v670_v5 = vrot.slane %v669_v51, 4  ;;  %v830_v8 = vrot.slane %v4227_v36, 5  ;;  %v835_v17 = vsel %vm4424_vm5, %v3586_v52, %v834_v0  ;;  %v836_v18 = vrot.slane %v834_v0, 4 }
  0x5b   : > { %v2264_v14 = vpack.c.b16 %v2246_v53, %v2245_v45  ;;  %v680_v15 = vrot.slane %v679_v54, 4  ;;  %v2301_v37 = vunpack.c.l.b16 %v835_v17  ;;  %v828_v43 = vsel %vm4424_vm5, %v3585_v4, %v827_v7  ;;  %v761_v53 = vld [vmem:[%s4194_s25 + $0x24] sm:$0xe]  ;;  %v760_v4 = vld [vmem:[%s4194_s25 + $0x18] sm:$0xe] }
  0x5c   : > { %v675_v20 = vsel %vm4222_vm2, %v670_v5, %v674_v46  ;;  %v829_v22 = vrot.slane %v827_v7, 4  ;;  %v838_v30 = vsel %vm4424_vm5, %v836_v18, %v837_v3  ;;  %v2299_v32 = vunpack.c.l.b16 %v828_v43 }
  0x5d   : > { %2293 = vrot.lane.b32.xlu1 %v2264_v14, %s4131_s26  ;;  %v685_v36 = vsel %vm4222_vm2, %v680_v15, %v684_v48  ;;  %v2243_v27 = vunpack.c.l.b16 %v675_v20  ;;  %v2302_v39 = vunpack.c.l.b16 %v838_v30  ;;  %v735_v41 = vshrl.u32 %v353_v19, 16  ;;  %v762_v48 = vld [vmem:[%s4194_s25 + $0x30] sm:$0xe] }
  0x5e   : > { %v2244_v34 = vunpack.c.l.b16 %v685_v36  ;;  %v831_v38 = vsel %vm4424_vm5, %v829_v22, %v830_v8  ;;  %v738_v45 = vshll.u32 %v353_v19, 16  ;;  %v744_v46 = vshll.u32 %v4440_v25, 16 }
  0x5f   : > { %v2300_v42 = vunpack.c.l.b16 %v831_v38  ;;  %v748_v47 = vshrl.u32 %v4440_v25, 16  ;;  %v2332_v44 = vpack.c.b16 %v2302_v39, %v2301_v37  ;;  %v737_v51 = vrot.slane %v735_v41, 4 }
  0x60   : > { %v2263_v49 = vpack.c.b16 %v2244_v34, %v2243_v27  ;;  %v754_v52 = vshll.u32 %v4448_v35, 16  ;;  %v740_v0 = vrot.slane %v738_v45, 5  ;;  %v746_v3 = vrot.slane %v744_v46, 5  ;;  %v765_v45 = vld [vmem:[%s4194_s25 + $0x54] sm:$0xe] }
  0x61   : > { %v2331_v54 = vpack.c.b16 %v2300_v42, %v2299_v32  ;;  %v750_v5 = vrot.slane %v748_v47, 4  ;;  %2349 = vrot.lane.b32.xlu2 %v2332_v44, %s4132_s27  ;;  %v3589_v8 = vrot.slane %v762_v48, 9  ;;  %v855_v14 = vrot.slane %v4198_v1, 5 }
  0x62   : > { %2291 = vrot.lane.b32.xlu0 %v2263_v49, %s4131_s26  ;;  %v756_v7 = vrot.slane %v754_v52, 5  ;;  %v858_v15 = vrot.slane %v4201_v2, 5  ;;  %v741_v17 = vor.u32 %v740_v0, %v737_v51  ;;  %v3588_v19 = vrot.slane %v761_v53, 9 }
  0x63   : > { %v751_v18 = vor.u32 %v750_v5, %v746_v3  ;;  %v848_v20 = vrot.slane %v4254_v12, 5  ;;  %v856_v37 = vsel %vm4424_vm5, %v3589_v8, %v855_v14  ;;  %v857_v43 = vrot.slane %v855_v14, 4  ;;  %v763_v5 = vld [vmem:[%s4194_s25 + $0x3c] sm:$0xe] }
  0x64   : > { %v851_v22 = vrot.slane %v4258_v16, 5  ;;  %v3587_v36 = vrot.slane %v760_v4, 9  ;;  %v742_v27 = vrot.slane %v741_v17, 4  ;;  %v2307_v1 = vunpack.c.l.b16 %v856_v37 }
  0x65   : > { %2347 = vrot.lane.b32.xlu1 %v2331_v54, %s4132_s27  ;;  %v752_v30 = vrot.slane %v751_v18, 4  ;;  %v849_v2 = vsel %vm4424_vm5, %v3588_v19, %v848_v20  ;;  %v859_v12 = vsel %vm4424_vm5, %v857_v43, %v858_v15  ;;  %v850_v32 = vrot.slane %v848_v20, 4  ;;  %v768_v18 = vld [vmem:[%s4194_s25 + $0x78] sm:$0xe] }
  0x66   : > { %v2305_v34 = vunpack.c.l.b16 %v849_v2  ;;  %v841_v39 = vrot.slane %v4208_v9, 5  ;;  %v747_v16 = vsel %vm4222_vm2, %v742_v27, %v746_v3  ;;  %v2308_v41 = vunpack.c.l.b16 %v859_v12  ;;  %v764_v9 = vld [vmem:[%s4194_s25 + $0x48] sm:$0xe] }
  0x67   : > { %v757_v38 = vsel %vm4222_vm2, %v752_v30, %v756_v7  ;;  %v844_v42 = vrot.slane %v4211_v10, 5  ;;  %v2249_v46 = vunpack.c.l.b16 %v747_v16  ;;  %v852_v48 = vsel %vm4424_vm5, %v850_v32, %v851_v22  ;;  %v767_v30 = vld [vmem:[%s4194_s25 + $0x6c] sm:$0xe] }
  0x68   : > { %v2250_v47 = vunpack.c.l.b16 %v757_v38  ;;  %v842_v49 = vsel %vm4424_vm5, %v3587_v36, %v841_v39  ;;  %v2335_v44 = vpack.c.b16 %v2308_v41, %v2307_v1  ;;  %v2306_v51 = vunpack.c.l.b16 %v852_v48 }
  0x69   : > { %v843_v52 = vrot.slane %v841_v39, 4  ;;  %v2303_v53 = vunpack.c.l.b16 %v842_v49  ;;  %v3592_v0 = vrot.slane %v765_v45, 9  ;;  %v876_v3 = vrot.slane %v4298_v23, 5 }
  0x6a   : > { %v2266_v54 = vpack.c.b16 %v2250_v47, %v2249_v46  ;;  %v879_v10 = vrot.slane %v4303_v31, 5  ;;  %2355 = vrot.lane.b32.xlu2 %v2335_v44, %s4132_s27  ;;  %v2334_v4 = vpack.c.b16 %v2306_v51, %v2305_v34  ;;  %v3591_v8 = vrot.slane %v764_v9, 9 }
  0x6b   : > { %v845_v7 = vsel %vm4424_vm5, %v843_v52, %v844_v42  ;;  %v869_v14 = vrot.slane %v4313_v55, 5  ;;  %v877_v17 = vsel %vm4424_vm5, %v3592_v0, %v876_v3  ;;  %v878_v23 = vrot.slane %v876_v3, 4  ;;  %v766_v42 = vld [vmem:[%s4194_s25 + $0x60] sm:$0xe]  ;;  %v770_v3 = vld [vmem:[%s4194_s25 + $0x90] sm:$0xe] }
  0x6c   : > { %2297 = vrot.lane.b32.xlu0 %v2266_v54, %s4131_s26  ;;  %v2304_v15 = vunpack.c.l.b16 %v845_v7  ;;  %v872_v31 = vrot.slane %v4318_v63, 5  ;;  %v2313_v19 = vunpack.c.l.b16 %v877_v17  ;;  %v3590_v43 = vrot.slane %v763_v5, 9 }
  0x6d   : > { %2353 = vrot.lane.b32.xlu1 %v2334_v4, %s4132_s27  ;;  %v870_v20 = vsel %vm4424_vm5, %v3591_v8, %v869_v14  ;;  %v871_v37 = vrot.slane %v869_v14, 4  ;;  %v880_v22 = vsel %vm4424_vm5, %v878_v23, %v879_v10  ;;  %v862_v27 = vrot.slane %v4240_v56, 5 }
  0x6e   : > { %v2333_v55 = vpack.c.b16 %v2304_v15, %v2303_v53  ;;  %v2311_v36 = vunpack.c.l.b16 %v870_v20  ;;  %v2314_v1 = vunpack.c.l.b16 %v880_v22  ;;  %v865_v2 = vrot.slane %v4245_v62, 5  ;;  %v769_v15 = vld [vmem:[%s4194_s25 + $0x84] sm:$0xe] }
  0x6f   : > { %v873_v63 = vsel %vm4424_vm5, %v871_v37, %v872_v31  ;;  %v3595_v12 = vrot.slane %v768_v18, 9  ;;  %v863_v34 = vsel %vm4424_vm5, %v3590_v43, %v862_v27  ;;  %v864_v39 = vrot.slane %v862_v27, 4 }
  0x70   : > { %v2312_v32 = vunpack.c.l.b16 %v873_v63  ;;  %v897_v16 = vrot.slane %v4345_v50, 5  ;;  %v2338_v38 = vpack.c.b16 %v2314_v1, %v2313_v19  ;;  %v900_v41 = vrot.slane %v4348_v58, 5  ;;  %v771_v58 = vld [vmem:[%s4194_s25 + $0x9c] sm:$0xe] }
  0x71   : > { %v3594_v56 = vrot.slane %v767_v30, 9  ;;  %v866_v46 = vsel %vm4424_vm5, %v864_v39, %v865_v2  ;;  %v2309_v48 = vunpack.c.l.b16 %v863_v34  ;;  %v890_v50 = vrot.slane %v4358_v21, 5 }
  0x72   : > { %v2337_v45 = vpack.c.b16 %v2312_v32, %v2311_v36  ;;  %v898_v62 = vsel %vm4424_vm5, %v3595_v12, %v897_v16  ;;  %v899_v47 = vrot.slane %v897_v16, 4  ;;  %2361 = vrot.lane.b32.xlu2 %v2338_v38, %s4132_s27  ;;  %v893_v9 = vrot.slane %v4363_v33, 5  ;;  %v773_v36 = vld [vmem:[%s4194_s25 + $0xb4] sm:$0xe] }
  0x73   : > { %v2319_v49 = vunpack.c.l.b16 %v898_v62  ;;  %v2310_v44 = vunpack.c.l.b16 %v866_v46  ;;  %v3593_v52 = vrot.slane %v766_v42, 9  ;;  %v883_v53 = vrot.slane %v4285_v61, 5  ;;  %v772_v62 = vld [vmem:[%s4194_s25 + $0xa8] sm:$0xe] }
  0x74   : > { %2351 = vrot.lane.b32.xlu0 %v2333_v55, %s4132_s27  ;;  %v901_v51 = vsel %vm4424_vm5, %v899_v47, %v900_v41  ;;  %v891_v0 = vsel %vm4424_vm5, %v3594_v56, %v890_v50  ;;  %v892_v21 = vrot.slane %v890_v50, 4  ;;  %v886_v33 = vrot.slane %v4288_v6, 5  ;;  %v4562_v50 = vld [vmem:[%s4194_s25 + $0x64] sm:$0xf] }
  0x75   : > { %2359 = vrot.lane.b32.xlu1 %v2337_v45, %s4132_s27  ;;  %v2320_v54 = vunpack.c.l.b16 %v901_v51  ;;  %v2317_v10 = vunpack.c.l.b16 %v891_v0  ;;  %v885_v5 = vrot.slane %v883_v53, 4  ;;  %v3598_v4 = vrot.slane %v771_v58, 9 }
  0x76   : > { %v894_v8 = vsel %vm4424_vm5, %v892_v21, %v893_v9  ;;  %v884_v61 = vsel %vm4424_vm5, %v3593_v52, %v883_v53  ;;  %v918_v14 = vrot.slane %v4388_v24, 5  ;;  %v2336_v17 = vpack.c.b16 %v2310_v44, %v2309_v48 }
  0x77   : > { %v2341_v7 = vpack.c.b16 %v2320_v54, %v2319_v49  ;;  %v2318_v23 = vunpack.c.l.b16 %v894_v8  ;;  %v921_v31 = vrot.slane %v4394_v40, 5  ;;  %v3597_v6 = vrot.slane %v770_v3, 9  ;;  %v3631_v3 = vld [vmem:[%s4194_s25 + $0xc0] sm:$0xf] }
  0x78   : > { %v887_v18 = vsel %vm4424_vm5, %v885_v5, %v886_v33  ;;  %v919_v19 = vsel %vm4424_vm5, %v3598_v4, %v918_v14  ;;  %v920_v20 = vrot.slane %v918_v14, 4  ;;  %v911_v37 = vrot.slane %v4405_v11, 5  ;;  %v4579_v4 = vld [vmem:[%s4194_s25 + $0x68] sm:$0x1] }
  0x79   : > { %v2340_v43 = vpack.c.b16 %v2318_v23, %v2317_v10  ;;  %v2315_v55 = vunpack.c.l.b16 %v884_v61  ;;  %v914_v22 = vrot.slane %v4408_v13, 5  ;;  %v3596_v24 = vrot.slane %v769_v15, 9  ;;  %v3988_v10 = vld [vmem:[%s4194_s25 + $0xc] sm:$0xff]  ;;  %v3632_v15 = vld [vmem:[%s4194_s25 + $0xc4] sm:$0xf] }
  0x7a   : > { %2367 = vrot.lane.b32.xlu2 %v2341_v7, %s4132_s27  ;;  %v922_v40 = vsel %vm4424_vm5, %v920_v20, %v921_v31  ;;  %v2325_v27 = vunpack.c.l.b16 %v919_v19  ;;  %v912_v30 = vsel %vm4424_vm5, %v3597_v6, %v911_v37  ;;  %v913_v1 = vrot.slane %v911_v37, 4 }
  0x7b   : > { %v2316_v63 = vunpack.c.l.b16 %v887_v18  ;;  %v2326_v11 = vunpack.c.l.b16 %v922_v40  ;;  %v904_v2 = vrot.slane %v4330_v28, 5  ;;  %v907_v13 = vrot.slane %v4333_v29, 5 }
  0x7c   : > { %2357 = vrot.lane.b32.xlu0 %v2336_v17, %s4132_s27  ;;  %v915_v12 = vsel %vm4424_vm5, %v913_v1, %v914_v22  ;;  %v2323_v32 = vunpack.c.l.b16 %v912_v30  ;;  %v3600_v34 = vrot.slane %v773_v36, 9  ;;  %v932_v39 = vrot.slane %v4440_v25, 5  ;;  %v3615_v25 = vld [vmem:[%s4194_s25 + $0x60] sm:$0xf] }
  0x7d   : > { %2365 = vrot.lane.b32.xlu1 %v2340_v43, %s4132_s27  ;;  %v2324_v16 = vunpack.c.l.b16 %v915_v12  ;;  %v905_v38 = vsel %vm4424_vm5, %v3596_v24, %v904_v2  ;;  %v906_v41 = vrot.slane %v904_v2, 4  ;;  %v935_v28 = vrot.slane %v4448_v35, 5  ;;  %v3664_v1 = vld [vmem:[%s4194_s25 + $0xc0] sm:$0xe]  ;;  %v3695_v12 = vld [vmem:[%s4194_s25 + $0x6c] sm:$0xf] }
  0x7e   : > { %v2344_v56 = vpack.c.b16 %v2326_v11, %v2325_v27  ;;  %v2321_v29 = vunpack.c.l.b16 %v905_v38  ;;  %v934_v42 = vrot.slane %v932_v39, 4  ;;  %v2339_v45 = vpack.c.b16 %v2316_v63, %v2315_v55  ;;  %v3991_v27 = vld [vmem:[%s4194_s25 + $0x30] sm:$0xff]  ;;  %v3656_v11 = vld [vmem:[%s4194_s25 + $0x60] sm:$0xe] }
  0x7f   : > { %v908_v46 = vsel %vm4424_vm5, %v906_v41, %v907_v13  ;;  %v2343_v47 = vpack.c.b16 %v2324_v16, %v2323_v32  ;;  %v925_v49 = vrot.slane %v4375_v57, 5  ;;  %v933_v9 = vsel %vm4424_vm5, %v3600_v34, %v932_v39  ;;  %v3648_v16 = vld [vmem:[%s4194_s25 + $0xc8] sm:$0x1]  ;;  %v4602_v38 = vld [vmem:[%s4194_s25 + $0x70] sm:$0xf] }
  0x80   : > { %v2322_v48 = vunpack.c.l.b16 %v908_v46  ;;  %v936_v35 = vsel %vm4424_vm5, %v934_v42, %v935_v28  ;;  %v3599_v44 = vrot.slane %v772_v62, 9  ;;  %v1155_v51 = vshrl.u32 %v3615_v25, 16  ;;  %v3990_v41 = vld [vmem:[%s4194_s25 + $0x24] sm:$0xff] }
  0x81   : > { %v1158_v57 = vshll.u32 %v3615_v25, 16  ;;  %v1164_v52 = vshll.u32 %v4562_v50, 16  ;;  %v1168_v53 = vshrl.u32 %v4562_v50, 16  ;;  %v2329_v54 = vunpack.c.l.b16 %v933_v9 }
  0x82   : > { %2373 = vrot.lane.b32.xlu2 %v2344_v56, %s4132_s27  ;;  %v2342_v58 = vpack.c.b16 %v2322_v48, %v2321_v29  ;;  %v2330_v0 = vunpack.c.l.b16 %v936_v35  ;;  %v927_v21 = vrot.slane %v925_v49, 4  ;;  %v928_v33 = vrot.slane %v4378_v59, 5  ;;  %v4586_v59 = vpop.permute.xlu2 %2275 }
  0x83   : > { %v926_v5 = vsel %vm4424_vm5, %v3599_v44, %v925_v49  ;;  %v1157_v7 = vrot.slane %v1155_v51, 4  ;;  %v1160_v8 = vrot.slane %v1158_v57, 5  ;;  %v4581_v61 = vrot.slane %v1164_v52, 5  ;;  %v4618_v57 = vld [vmem:[%s4194_s25 + $0x74] sm:$0x1] }
  0x84   : > { %2363 = vrot.lane.b32.xlu0 %v2339_v45, %s4132_s27  ;;  %v1170_v14 = vrot.slane %v1168_v53, 4  ;;  %v2346_v17 = vpack.c.b16 %v2330_v0, %v2329_v54  ;;  %v929_v23 = vsel %vm4424_vm5, %v927_v21, %v928_v33  ;;  %v1347_v31 = vshrl.u32 %v3631_v3, 16 }
  0x85   : > { %2371 = vrot.lane.b32.xlu1 %v2343_v47, %s4132_s27  ;;  %v1350_v6 = vshll.u32 %v3631_v3, 16  ;;  %v1174_v18 = vshll.u32 %v4579_v4, 16  ;;  %v1356_v19 = vshll.u32 %v3632_v15, 16  ;;  %v1360_v20 = vshrl.u32 %v3632_v15, 16  ;;  %v4629_v3 = vld [vmem:[%s4194_s25 + $0xd0] sm:$0xf] }
  0x86   : > { %v2327_v37 = vunpack.c.l.b16 %v926_v5  ;;  %v2328_v43 = vunpack.c.l.b16 %v929_v23  ;;  %v1161_v55 = vor.u32 %v1160_v8, %v1157_v7  ;;  %v1171_v22 = vor.u32 %v1170_v14, %v4581_v61  ;;  %v3994_v5 = vld [vmem:[%s4194_s25 + $0x54] sm:$0xff] }
  0x87   : > { %v1541_v24 = vrot.slane %v3632_v15, 5  ;;  %v1349_v36 = vrot.slane %v1347_v31, 4  ;;  %v1352_v40 = vrot.slane %v1350_v6, 5  ;;  %v1176_v30 = vrot.slane %v1174_v18, 5  ;;  %v3989_v14 = vld [vmem:[%s4194_s25 + $0x18] sm:$0xff]  ;;  %v3993_v6 = vld [vmem:[%s4194_s25 + $0x48] sm:$0xff] }
  0x88   : > { %v1485_v63 = vrot.slane %v4562_v50, 5  ;;  %v4597_v2 = vrot.slane %v1356_v19, 5  ;;  %v1362_v13 = vrot.slane %v1360_v20, 4  ;;  %v2345_v32 = vpack.c.b16 %v2328_v43, %v2327_v37  ;;  %v3976_v37 = vld [vmem:[%s4194_s25 + $0x30] sm:$0xff] }
  0x89   : > { %v1162_v34 = vrot.slane %v1161_v55, 4  ;;  %v1172_v39 = vrot.slane %v1171_v22, 4  ;;  %v3680_v28 = vrot.slane %v3664_v1, 9  ;;  %v1543_v56 = vrot.slane %v1541_v24, 4 }
  0x8a   : > { %2443 = vrot.lane.b32.xlu2 %v3988_v10, %s4133_s28  ;;  %v1544_v29 = vrot.slane %v3648_v16, 5  ;;  %v1353_v42 = vor.u32 %v1352_v40, %v1349_v36  ;;  %v3672_v45 = vrot.slane %v3656_v11, 9  ;;  %v1487_v46 = vrot.slane %v1485_v63, 4  ;;  %v4611_v9 = vpop.permute.xlu2 %2277  ;;  %v3711_v10 = vld [vmem:[%s4194_s25 + $0xcc] sm:$0xf] }
  0x8b   : > { %v1764_v62 = vshrl.u32 %v3695_v12, 16  ;;  %v1767_v47 = vshll.u32 %v3695_v12, 16  ;;  %v1488_v48 = vrot.slane %v4579_v4, 5  ;;  %v1363_v49 = vor.u32 %v1362_v13, %v4597_v2 }
  0x8c   : > { %2369 = vrot.lane.b32.xlu0 %v2342_v58, %s4132_s27  ;;  %v1773_v25 = vshll.u32 %v4602_v38, 16  ;;  %v1777_v50 = vshrl.u32 %v4602_v38, 16  ;;  %v1366_v35 = vshll.u32 %v3648_v16, 16  ;;  %v1167_v51 = vsel %vm4222_vm2, %v1162_v34, %v4581_v61 }
  0x8d   : > { %2377 = vrot.lane.b32.xlu1 %v2346_v17, %s4132_s27  ;;  %v1766_v58 = vrot.slane %v1764_v62, 4  ;;  %v1769_v44 = vrot.slane %v1767_v47, 5  ;;  %v1177_v54 = vsel %vm4222_vm2, %v1172_v39, %v1176_v30  ;;  %v1542_v0 = vsel %vm4424_vm5, %v3680_v28, %v1541_v24 }
  0x8e   : > { %v4620_v52 = vrot.slane %v1773_v25, 5  ;;  %v1779_v53 = vrot.slane %v1777_v50, 4  ;;  %v1545_v21 = vsel %vm4424_vm5, %v1543_v56, %v1544_v29  ;;  %v1354_v33 = vrot.slane %v1353_v42, 4  ;;  %v3728_v42 = vld [vmem:[%s4194_s25 + $0xd4] sm:$0x1] }
  0x8f   : > { %v1486_v4 = vsel %vm4424_vm5, %v3672_v45, %v1485_v63  ;;  %v1489_v7 = vsel %vm4424_vm5, %v1487_v46, %v1488_v48  ;;  %v1364_v8 = vrot.slane %v1363_v49, 4  ;;  %v1770_v61 = vor.u32 %v1769_v44, %v1766_v58  ;;  %v3629_v46 = vld [vmem:[%s4194_s25 + $0xb4] sm:$0xf]  ;;  %v3744_v49 = vld [vmem:[%s4194_s25 + $0xcc] sm:$0xe] }
  0x90   : > { %v1368_v15 = vrot.slane %v1366_v35, 5  ;;  %v1780_v17 = vor.u32 %v1779_v53, %v4620_v52  ;;  %v1783_v23 = vshll.u32 %v4618_v57, 16  ;;  %v1956_v31 = vshrl.u32 %v3711_v10, 16  ;;  %v3736_v25 = vld [vmem:[%s4194_s25 + $0x6c] sm:$0xe]  ;;  %v4003_v35 = vld [vmem:[%s4194_s25 + $0xc0] sm:$0xff] }
  0x91   : > { %v1959_v18 = vshll.u32 %v3711_v10, 16  ;;  %v1965_v19 = vshll.u32 %v4629_v3, 16  ;;  %v1969_v20 = vshrl.u32 %v4629_v3, 16  ;;  %v2489_v43 = vunpack.c.l.b16 %v1167_v51  ;;  %v4681_v50 = vld [vmem:[%s4194_s25 + $0xb8] sm:$0xf] }
  0x92   : > { %2449 = vrot.lane.b32.xlu2 %v3991_v27, %s4133_s28  ;;  %v2490_v55 = vunpack.c.l.b16 %v1177_v54  ;;  %v2585_v22 = vunpack.c.l.b16 %v1542_v0  ;;  %v2586_v24 = vunpack.c.l.b16 %v1545_v21  ;;  %v2569_v36 = vunpack.c.l.b16 %v1486_v4 }
  0x93   : > { %v2570_v40 = vunpack.c.l.b16 %v1489_v7  ;;  %v1359_v27 = vsel %vm4222_vm2, %v1354_v33, %v4597_v2  ;;  %v1771_v30 = vrot.slane %v1770_v61, 4  ;;  %v1369_v1 = vsel %vm4222_vm2, %v1364_v8, %v1368_v15 }
  0x94   : > { %2375 = vrot.lane.b32.xlu0 %v2345_v32, %s4132_s27  ;;  %v1781_v63 = vrot.slane %v1780_v17, 4  ;;  %v1785_v11 = vrot.slane %v1783_v23, 5  ;;  %v1958_v13 = vrot.slane %v1956_v31, 4  ;;  %v2150_v12 = vrot.slane %v4629_v3, 5 }
  0x95   : > { %2447 = vrot.lane.b32.xlu1 %v3990_v41, %s4133_s28  ;;  %v1961_v32 = vrot.slane %v1959_v18, 5  ;;  %v4653_v34 = vrot.slane %v1965_v19, 5  ;;  %v1971_v2 = vrot.slane %v1969_v20, 4  ;;  %v4657_v39 = vsel %vm2891_vm6, %v3976_v37, %v4586_v59  ;;  %v3992_v41 = vld [vmem:[%s4194_s25 + $0x3c] sm:$0xff] }
  0x96   : > { %v4659_v16 = vpop.permute.xlu2 %2283  ;;  %v2514_v28 = vpack.c.b16 %v2490_v55, %v2489_v43  ;;  %v4662_v56 = vpack.c.b16 %v2586_v24, %v2585_v22  ;;  %v1776_v29 = vsel %vm4222_vm2, %v1771_v30, %v4620_v52  ;;  %v2094_v45 = vrot.slane %v4602_v38, 5  ;;  %v4707_v18 = vld [vmem:[%s4194_s25 + $0xbc] sm:$0x1]  ;;  %v4709_v55 = vpop.permute.xlu1 %2271 }
  0x97   : > { %v4670_v62 = vpack.c.b16 %v2570_v40, %v2569_v36  ;;  %v4672_v47 = vunpack.c.l.b16 %v1359_v27  ;;  %v4674_v59 = vunpack.c.l.b16 %v1369_v1  ;;  %v1786_v48 = vsel %vm4222_vm2, %v1781_v63, %v1785_v11  ;;  %v3995_v27 = vld [vmem:[%s4194_s25 + $0x60] sm:$0xff] }
  0x98   : > { %v2152_v58 = vrot.slane %v2150_v12, 4  ;;  %v2153_v44 = vrot.slane %v3728_v42, 5  ;;  %v1962_v51 = vor.u32 %v1961_v32, %v1958_v13  ;;  %v1972_v38 = vor.u32 %v1971_v2, %v4653_v34  ;;  %v4723_v13 = vld [vmem:[%s4194_s25 + $0x5c] sm:$0x1] }
  0x99   : > { %v4685_v52 = vunpack.c.l.b16 %v1776_v29  ;;  %v2097_v53 = vrot.slane %v4618_v57, 5  ;;  %v1323_v54 = vshrl.u32 %v3629_v46, 16  ;;  %v1326_v0 = vshll.u32 %v3629_v46, 16 }
  0x9a   : > { %2455 = vrot.lane.b32.xlu2 %v3994_v5, %s4133_s28  ;;  %v3760_v21 = vrot.slane %v3744_v49, 9  ;;  %v3752_v33 = vrot.slane %v3736_v25, 9  ;;  %v1975_v3 = vshll.u32 %v3728_v42, 16  ;;  %v1332_v10 = vshll.u32 %v4681_v50, 16  ;;  %v3613_v5 = vld [vmem:[%s4194_s25 + $0x54] sm:$0xf]  ;;  %v4692_v4 = vpop.permute.xlu0 %2267 }
  0x9b   : > { %v2096_v7 = vrot.slane %v2094_v45, 4  ;;  %v1325_v57 = vrot.slane %v1323_v54, 4  ;;  %v1328_v8 = vrot.slane %v1326_v0, 5  ;;  %v1336_v61 = vshrl.u32 %v4681_v50, 16 }
  0x9c   : > { %2445 = vrot.lane.b32.xlu0 %v3989_v14, %s4133_s28  ;;  %v4696_v14 = vld [vmem:[%s4194_s25 + $0x58] sm:$0xf]  ;;  %v4699_v15 = vunpack.c.l.b16 %v1786_v48  ;;  %v2154_v17 = vsel %vm4424_vm5, %v2152_v58, %v2153_v44  ;;  %v1963_v23 = vrot.slane %v1962_v51, 4  ;;  %v4703_v31 = vrot.slane %v1972_v38, 4 }
  0x9d   : > { %2453 = vrot.lane.b32.xlu1 %v3993_v6, %s4133_s28  ;;  %v3977_v6 = vld [vmem:[%s4194_s25 + $0x3c] sm:$0xff]  ;;  %v1329_v19 = vor.u32 %v1328_v8, %v1325_v57  ;;  %v1334_v20 = vrot.slane %v1332_v10, 5  ;;  %v1338_v37 = vrot.slane %v1336_v61, 4  ;;  %v1131_v43 = vshrl.u32 %v3613_v5, 16 }
  0x9e   : > { %v1977_v22 = vrot.slane %v1975_v3, 5  ;;  %v1134_v24 = vshll.u32 %v3613_v5, 16  ;;  %v1140_v36 = vshll.u32 %v4696_v14, 16  ;;  %v1144_v40 = vshrl.u32 %v4696_v14, 16 }
  0x9f   : > { %v2151_v1 = vsel %vm4424_vm5, %v3760_v21, %v2150_v12  ;;  %v2095_v63 = vsel %vm4424_vm5, %v3752_v33, %v2094_v45  ;;  %v2098_v11 = vsel %vm4424_vm5, %v2096_v7, %v2097_v53  ;;  %v1133_v32 = vrot.slane %v1131_v43, 4  ;;  %v3973_v53 = vld [vmem:[%s4194_s25 + $0xc] sm:$0xff]  ;;  %v3709_v7 = vld [vmem:[%s4194_s25 + $0xc0] sm:$0xf] }
  0xa0   : > { %v1342_v2 = vshll.u32 %v4707_v18, 16  ;;  %v1146_v29 = vrot.slane %v1144_v40, 4  ;;  %v4730_v42 = vsel %vm2891_vm6, %v3977_v6, %v4611_v9  ;;  %v2842_v12 = vunpack.c.l.b16 %v2154_v17  ;;  %v4019_v17 = vld [vmem:[%s4194_s25 + $0xcc] sm:$0xff]  ;;  %v3693_v40 = vld [vmem:[%s4194_s25 + $0x60] sm:$0xf] }
  0xa1   : > { %v1330_v46 = vrot.slane %v1329_v19, 4  ;;  %v1339_v45 = vor.u32 %v1338_v37, %v1334_v20  ;;  %v2841_v48 = vunpack.c.l.b16 %v2151_v1  ;;  %v2825_v9 = vunpack.c.l.b16 %v2095_v63 }
  0xa2   : > { %2537 = vrot.lane.b32.xlu2 %v2514_v28, %s4134_s29  ;;  %v4726_v28 = vrot.slane %v1140_v36, 5  ;;  %v2826_v58 = vunpack.c.l.b16 %v2098_v11  ;;  %v1968_v44 = vsel %vm4222_vm2, %v1963_v23, %v4653_v34  ;;  %v1534_v51 = vrot.slane %v4681_v50, 5  ;;  %v3663_v34 = vld [vmem:[%s4194_s25 + $0xb4] sm:$0xe] }
  0xa3   : > { %v2770_v38 = vpack.c.b16 %v4699_v15, %v4685_v52  ;;  %v1978_v54 = vsel %vm4222_vm2, %v4703_v31, %v1977_v22  ;;  %v4751_v0 = vrot.slane %v1342_v2, 5  ;;  %v1340_v21 = vrot.slane %v1339_v45, 4 }
  0xa4   : > { %2451 = vrot.lane.b32.xlu0 %v3992_v41, %s4133_s28  ;;  %v4714_v30 = vpop.permute.xlu2 %2289  ;;  %v1136_v41 = vrot.slane %v1134_v24, 5  ;;  %v1147_v25 = vor.u32 %v1146_v29, %v4726_v28  ;;  %v4760_v52 = vunpack.c.l.b16 %v1968_v44  ;;  %v3679_v5 = vrot.slane %v3663_v34, 9  ;;  %v4795_v24 = vld [vmem:[%s4194_s25 + $0xc8] sm:$0x1] }
  0xa5   : > { %2473 = vrot.lane.b32.xlu1 %v4003_v35, %s4133_s28  ;;  %v1150_v35 = vshll.u32 %v4723_v13, 16  ;;  %v4767_v57 = vpack.c.b16 %v2842_v12, %v2841_v48  ;;  %v4769_v8 = vpack.c.b16 %v2826_v58, %v2825_v9  ;;  %v1536_v61 = vrot.slane %v1534_v51, 4  ;;  %v4825_v44 = vld [vmem:[%s4194_s25 + $0x68] sm:$0x1] }
  0xa6   : > { %v1137_v49 = vor.u32 %v1136_v41, %v1133_v32  ;;  %v4762_v3 = vrot.slane %v1147_v25, 4  ;;  %v1537_v15 = vrot.slane %v4707_v18, 5  ;;  %v4778_v31 = vunpack.c.l.b16 %v1978_v54  ;;  %v4809_v32 = vld [vmem:[%s4194_s25 + $0x64] sm:$0xf] }
  0xa7   : > { %v4764_v10 = vrot.slane %v1150_v35, 5  ;;  %v1345_v18 = vsel %vm4222_vm2, %v1340_v21, %v4751_v0  ;;  %v1932_v36 = vshrl.u32 %v3709_v7, 16  ;;  %v4805_v1 = vsel %vm4424_vm5, %v3679_v5, %v1534_v51 }
  0xa8   : > { %v4756_v33 = vrot.slane %v1137_v49, 4  ;;  %v1481_v63 = vrot.slane %v4723_v13, 5  ;;  %v1935_v11 = vshll.u32 %v3709_v7, 16  ;;  %v4814_v2 = vsel %vm4424_vm5, %v1536_v61, %v1537_v15 }
  0xa9   : > { %v1934_v41 = vrot.slane %v1932_v36, 4  ;;  %v1951_v12 = vshll.u32 %v4795_v24, 16  ;;  %v1743_v45 = vshll.u32 %v3693_v40, 16  ;;  %v1749_v25 = vshll.u32 %v4809_v32, 16 }
  0xaa   : > { %2633 = vrot.lane.b32.xlu2 %v4662_v56, %s4135_s30  ;;  %v2522_v56 = vpack.c.b16 %v4674_v59, %v4672_v47  ;;  %v2270_v50 = vpop.permute.xlu0 %2269  ;;  %v3655_v47 = vld [vmem:[%s4194_s25 + $0x54] sm:$0xe]  ;;  %v1478_v59 = vrot.slane %v4696_v14, 5  ;;  %v4773_v14 = vpop.permute.xlu1 %2273  ;;  %v1143_v43 = vsel %vm4222_vm2, %v4756_v33, %v4726_v28  ;;  %v1937_v13 = vrot.slane %v1935_v11, 5 }
  0xab   : > { %v4776_v23 = vsel %vm2891_vm6, %v3973_v53, %v2270_v50  ;;  %v3671_v19 = vrot.slane %v3655_v47, 9  ;;  %v1753_v35 = vshrl.u32 %v4809_v32, 16  ;;  %v1953_v54 = vrot.slane %v1951_v12, 5  ;;  %v3980_v50 = vld [vmem:[%s4194_s25 + $0x60] sm:$0xff] }
  0xac   : > { %2457 = vrot.lane.b32.xlu0 %v3995_v27, %s4133_s28  ;;  %v1480_v22 = vrot.slane %v1478_v59, 4  ;;  %v1153_v27 = vsel %vm4222_vm2, %v4762_v3, %v4764_v10  ;;  %v1938_v58 = vor.u32 %v1937_v13, %v1934_v41  ;;  %v1751_v0 = vrot.slane %v1749_v25, 5  ;;  %v3972_v3 = vld [vmem:[%s4194_s25] sm:$0xff] }
  0xad   : > { %2617 = vrot.lane.b32.xlu1 %v4670_v62, %s4135_s30  ;;  %v1335_v62 = vsel %vm4222_vm2, %v1330_v46, %v1334_v20  ;;  %v4783_v20 = vld [vmem:[%s4194_s25 + $0xc4] sm:$0xf]  ;;  %v1740_v46 = vshrl.u32 %v3693_v40, 16  ;;  %v1479_v9 = vsel %vm4424_vm5, %v3671_v19, %v1478_v59  ;;  %v1755_v34 = vrot.slane %v1753_v35, 4  ;;  %v4886_v35 = vld [vmem:[%s4194_s25 + $0xac] sm:$0xf] }
  0xae   : > { %v4780_v6 = vunpack.c.l.b16 %v1335_v62  ;;  %v1941_v28 = vshll.u32 %v4783_v20, 16  ;;  %v1945_v29 = vshrl.u32 %v4783_v20, 16  ;;  %v3974_v62 = vld [vmem:[%s4194_s25 + $0x18] sm:$0xff]  ;;  %v2504_v21 = vunpack.c.l.b16 %v1345_v18  ;;  %v3975_v10 = vld [vmem:[%s4194_s25 + $0x24] sm:$0xff] }
  0xaf   : > { %v1742_v51 = vrot.slane %v1740_v46, 4  ;;  %v1482_v33 = vsel %vm4424_vm5, %v1480_v22, %v1481_v63  ;;  %v1939_v47 = vrot.slane %v1938_v58, 4  ;;  %v2487_v5 = vunpack.c.l.b16 %v1143_v43 }
  0xb0   : > { %v1943_v48 = vrot.slane %v1941_v28, 5  ;;  %v1947_v49 = vrot.slane %v1945_v29, 4  ;;  %v1756_v61 = vor.u32 %v1755_v34, %v1751_v0  ;;  %v1759_v15 = vshll.u32 %v4825_v44, 16 }
  0xb1   : > { %v2488_v19 = vunpack.c.l.b16 %v1153_v27  ;;  %v2583_v18 = vunpack.c.l.b16 %v4805_v1  ;;  %v2584_v22 = vunpack.c.l.b16 %v4814_v2  ;;  %v2567_v36 = vunpack.c.l.b16 %v1479_v9  ;;  %v3735_v9 = vld [vmem:[%s4194_s25 + $0x60] sm:$0xe] }
  0xb2   : > { %v4785_v37 = vpop.permute.xlu2 %2295  ;;  %2793 = vrot.lane.b32.xlu2 %v2770_v38, %s4136_s6  ;;  %v4011_v38 = vld [vmem:[%s4194_s25 + $0x6c] sm:$0xff]  ;;  %v1948_v53 = vor.u32 %v1947_v49, %v1943_v48  ;;  %v2568_v40 = vunpack.c.l.b16 %v1482_v33  ;;  %v1944_v63 = vsel %vm4222_vm2, %v1939_v47, %v1943_v48  ;;  %v4848_v27 = vsel %vm2891_vm6, %v3980_v50, %v4659_v16 }
  0xb3   : > { %v4852_v1 = vsel %vm2891_vm6, %v3974_v62, %v4709_v55  ;;  %v2143_v41 = vrot.slane %v4783_v20, 5  ;;  %v4863_v28 = vsel %vm2891_vm6, %v3972_v3, %v4692_v4  ;;  %v4867_v16 = vsel %vm2891_vm6, %v3975_v10, %v4773_v14  ;;  %v3978_v55 = vld [vmem:[%s4194_s25 + $0x48] sm:$0xff] }
  0xb4   : > { %2553 = vrot.lane.b32.xlu0 %v2522_v56, %s4134_s29  ;;  %v1745_v56 = vrot.slane %v1743_v45, 5  ;;  %v1949_v7 = vrot.slane %v1948_v53, 4  ;;  %v1757_v29 = vrot.slane %v1756_v61, 4  ;;  %v1761_v13 = vrot.slane %v1759_v15, 5  ;;  %v3627_v45 = vld [vmem:[%s4194_s25 + $0xa8] sm:$0xf] }
  0xb5   : > { %2729 = vrot.lane.b32.xlu1 %v4019_v17, %s4137_s7  ;;  %v4837_v17 = vpop.permute.xlu1 %2281  ;;  %v2521_v20 = vpack.c.b16 %v2504_v21, %v4780_v6  ;;  %v4874_v46 = vunpack.c.l.b16 %v1944_v63  ;;  %v2513_v14 = vpack.c.b16 %v2488_v19, %v2487_v5  ;;  %v4879_v48 = vpack.c.b16 %v2584_v22, %v2583_v18  ;;  %v4898_v53 = vld [vmem:[%s4194_s25 + $0xb0] sm:$0x1]  ;;  %v3654_v62 = vld [vmem:[%s4194_s25 + $0x48] sm:$0xe]  ;;  %v3982_v19 = vld [vmem:[%s4194_s25 + $0x78] sm:$0xff] }
  0xb6   : > { %v1746_v59 = vor.u32 %v1745_v56, %v1742_v51  ;;  %v4881_v49 = vpack.c.b16 %v2568_v40, %v2567_v36  ;;  %v2146_v6 = vrot.slane %v4795_v24, 5  ;;  %v2087_v58 = vrot.slane %v4809_v32, 5  ;;  %v4010_v22 = vld [vmem:[%s4194_s25 + $0x60] sm:$0xff]  ;;  %v3611_v63 = vld [vmem:[%s4194_s25 + $0x48] sm:$0xf] }
  0xb7   : > { %v1762_v56 = vsel %vm4222_vm2, %v1757_v29, %v1761_v13  ;;  %v1308_v50 = vshll.u32 %v4886_v35, 16  ;;  %v1312_v47 = vshrl.u32 %v4886_v35, 16  ;;  %v3751_v15 = vrot.slane %v3735_v9, 9  ;;  %v4002_v13 = vld [vmem:[%s4194_s25 + $0xb4] sm:$0xff] }
  0xb8   : > { %v1747_v11 = vrot.slane %v1746_v59, 4  ;;  %v2280_v12 = vpop.permute.xlu0 %2279  ;;  %v1318_v59 = vshll.u32 %v4898_v53, 16  ;;  %v4911_v5 = vunpack.c.l.b16 %v1762_v56 }
  0xb9   : > { %v4892_v51 = vsel %vm2891_vm6, %v3978_v55, %v2280_v12  ;;  %v1314_v40 = vrot.slane %v1312_v47, 4  ;;  %v3670_v55 = vrot.slane %v3654_v62, 9 }
  0xba   : > { %2889 = vrot.lane.b32.xlu2 %v4767_v57, %s4138_s8  ;;  %v1954_v57 = vsel %vm4222_vm2, %v1949_v7, %v1953_v54  ;;  %v1752_v25 = vsel %vm4222_vm2, %v1747_v11, %v1751_v0  ;;  %v1299_v54 = vshrl.u32 %v3627_v45, 16  ;;  %v1302_v0 = vshll.u32 %v3627_v45, 16 }
  0xbb   : > { %v2350_v43 = vpop.permute.xlu2 %2349  ;;  %v4876_v4 = vunpack.c.l.b16 %v1954_v57  ;;  %v4903_v24 = vunpack.c.l.b16 %v1752_v25  ;;  %v2089_v57 = vrot.slane %v2087_v58, 4  ;;  %v2090_v11 = vrot.slane %v4825_v44, 5 }
  0xbc   : > { %2713 = vrot.lane.b32.xlu0 %v4011_v38, %s4137_s7  ;;  %v4858_v2 = vsel %vm2940_vm7, %v4776_v23, %v2350_v43  ;;  %v2778_v23 = vpack.c.b16 %v4778_v31, %v4760_v52  ;;  %v2145_v31 = vrot.slane %v2143_v41, 4  ;;  %v3612_v38 = vld [vmem:[%s4194_s25 + $0x4c] sm:$0xf]  ;;  %v1301_v21 = vrot.slane %v1299_v54, 4 }
  0xbd   : > { %2873 = vrot.lane.b32.xlu1 %v4769_v8, %s4138_s8  ;;  %v3743_v8 = vld [vmem:[%s4194_s25 + $0xc0] sm:$0xe]  ;;  %v2777_v34 = vpack.c.b16 %v4876_v4, %v4874_v46  ;;  %v1471_v32 = vrot.slane %v3612_v38, 5  ;;  %v1304_v33 = vrot.slane %v1302_v0, 5  ;;  %v1310_v43 = vrot.slane %v1308_v50, 5 }
  0xbe   : > { %v3759_v52 = vrot.slane %v3743_v8, 9  ;;  %v4919_v61 = vsel %vm4424_vm5, %v2145_v31, %v2146_v6  ;;  %v1107_v45 = vshrl.u32 %v3611_v63, 16  ;;  %v1120_v25 = vshrl.u32 %v3612_v38, 16 }
  0xbf   : > { %v1305_v36 = vor.u32 %v1304_v33, %v1301_v21  ;;  %v1473_v29 = vrot.slane %v1471_v32, 4  ;;  %v1315_v12 = vor.u32 %v1314_v40, %v1310_v43  ;;  %v2088_v44 = vsel %vm4424_vm5, %v3751_v15, %v2087_v58 }
  0xc0   : > { %v2288_v3 = vpop.permute.xlu1 %2287  ;;  %v4915_v7 = vsel %vm4424_vm5, %v3759_v52, %v2143_v41  ;;  %v3638_v41 = vld [vmem:[%s4194_s25 + $0x50] sm:$0x1]  ;;  %v2091_v56 = vsel %vm4424_vm5, %v2089_v57, %v2090_v11  ;;  %v1109_v54 = vrot.slane %v1107_v45, 4  ;;  %v1122_v21 = vrot.slane %v1120_v25, 4  ;;  %v4966_v11 = vld [vmem:[%s4194_s25 + $0xb8] sm:$0xf] }
  0xc1   : > { %v1474_v8 = vrot.slane %v3638_v41, 5  ;;  %v4932_v52 = vsel %vm2891_vm6, %v3982_v19, %v2288_v3  ;;  %v2839_v6 = vunpack.c.l.b16 %v4915_v7  ;;  %v1316_v9 = vrot.slane %v1315_v12, 4  ;;  %v3662_v3 = vld [vmem:[%s4194_s25 + $0xa8] sm:$0xe] }
  0xc2   : > { %2551 = vrot.lane.b32.xlu2 %v2521_v20, %s4134_s29  ;;  %v1320_v20 = vrot.slane %v1318_v59, 5  ;;  %v2840_v47 = vunpack.c.l.b16 %v4919_v61  ;;  %v2823_v7 = vunpack.c.l.b16 %v2088_v44  ;;  %v2824_v15 = vunpack.c.l.b16 %v2091_v56 }
  0xc3   : > { %v1475_v58 = vsel %vm4424_vm5, %v1473_v29, %v1474_v8  ;;  %v2769_v61 = vpack.c.b16 %v4911_v5, %v4903_v24  ;;  %v3678_v29 = vrot.slane %v3662_v3, 9  ;;  %v3691_v24 = vld [vmem:[%s4194_s25 + $0x54] sm:$0xf]  ;;  %v1921_v46 = vshrl.u32 %v4966_v11, 16 }
  0xc4   : > { %2809 = vrot.lane.b32.xlu0 %v2778_v23, %s4136_s6  ;;  %v2356_v10 = vpop.permute.xlu2 %2355  ;;  %v1306_v23 = vrot.slane %v1305_v36, 4  ;;  %v1321_v59 = vsel %vm4222_vm2, %v1316_v9, %v1320_v20  ;;  %v3707_v36 = vld [vmem:[%s4194_s25 + $0xb4] sm:$0xf]  ;;  %v1917_v20 = vshll.u32 %v4966_v11, 16  ;;  %v2857_v5 = vpack.c.b16 %v2840_v47, %v2839_v6  ;;  %v4001_v47 = vld [vmem:[%s4194_s25 + $0xa8] sm:$0xff] }
  0xc5   : > { %2535 = vrot.lane.b32.xlu1 %v2513_v14, %s4134_s29  ;;  %v4924_v18 = vsel %vm2940_vm7, %v4657_v39, %v2356_v10  ;;  %v1110_v14 = vshll.u32 %v3611_v63, 16  ;;  %v1116_v39 = vshll.u32 %v3612_v38, 16  ;;  %v1472_v38 = vsel %vm4424_vm5, %v3670_v55, %v1471_v32  ;;  %v3985_v55 = vld [vmem:[%s4194_s25 + $0x9c] sm:$0xff] }
  0xc6   : > { %v2286_v31 = vpop.permute.xlu0 %2285  ;;  %v1311_v62 = vsel %vm4222_vm2, %v1306_v23, %v1310_v43  ;;  %v1527_v10 = vrot.slane %v4886_v35, 5  ;;  %v2565_v40 = vunpack.c.l.b16 %v1472_v38  ;;  %v2566_v63 = vunpack.c.l.b16 %v1475_v58  ;;  %v3692_v58 = vld [vmem:[%s4194_s25 + $0x58] sm:$0xf] }
  0xc7   : > { %v1112_v0 = vrot.slane %v1110_v14, 5  ;;  %v4940_v50 = vrot.slane %v1116_v39, 5  ;;  %v4963_v57 = vunpack.c.l.b16 %v1311_v62  ;;  %v4969_v35 = vunpack.c.l.b16 %v1321_v59 }
  0xc8   : > { %v1529_v23 = vrot.slane %v1527_v10, 4  ;;  %v1911_v12 = vshll.u32 %v3707_v36, 16  ;;  %v4974_v45 = vpack.c.b16 %v2824_v15, %v2823_v7  ;;  %v1528_v56 = vsel %vm4424_vm5, %v3678_v29, %v1527_v10  ;;  %v3734_v7 = vld [vmem:[%s4194_s25 + $0x54] sm:$0xe] }
  0xc9   : > { %v1113_v32 = vor.u32 %v1112_v0, %v1109_v54  ;;  %v1123_v19 = vor.u32 %v1122_v21, %v4940_v50  ;;  %v4994_v54 = vld [vmem:[%s4194_s25 + $0xbc] sm:$0x1]  ;;  %v1716_v4 = vshrl.u32 %v3691_v24, 16  ;;  %v5005_v62 = vrot.slane %v1917_v20, 5  ;;  %v5029_v20 = vld [vmem:[%s4194_s25 + $0x40] sm:$0xf] }
  0xca   : > { %2711 = vrot.lane.b32.xlu2 %v4010_v22, %s4137_s7  ;;  %v1126_v22 = vshll.u32 %v3638_v41, 16  ;;  %v1908_v41 = vshrl.u32 %v3707_v36, 16  ;;  %v1913_v9 = vrot.slane %v1911_v12, 5  ;;  %v1923_v3 = vrot.slane %v1921_v46, 4  ;;  %v3609_v36 = vld [vmem:[%s4194_s25 + $0x3c] sm:$0xf] }
  0xcb   : > { %v1114_v8 = vrot.slane %v1113_v32, 4  ;;  %v1124_v14 = vrot.slane %v1123_v19, 4  ;;  %v2080_v32 = vrot.slane %v3692_v58, 5  ;;  %v1927_v19 = vshll.u32 %v4994_v54, 16 }
  0xcc   : > { %2471 = vrot.lane.b32.xlu0 %v4002_v13, %s4133_s28  ;;  %v4951_v33 = vpop.permute.xlu2 %2361  ;;  %v1530_v13 = vrot.slane %v4898_v53, 5  ;;  %v1128_v39 = vrot.slane %v1126_v22, 5  ;;  %v4983_v53 = vpack.c.b16 %v2566_v63, %v2565_v40  ;;  %v1910_v44 = vrot.slane %v1908_v41, 4  ;;  %v3718_v40 = vld [vmem:[%s4194_s25 + $0x5c] sm:$0x1] }
  0xcd   : > { %2631 = vrot.lane.b32.xlu1 %v4879_v48, %s4135_s30  ;;  %v3981_v48 = vld [vmem:[%s4194_s25 + $0x6c] sm:$0xff]  ;;  %v1719_v22 = vshll.u32 %v3691_v24, 16  ;;  %v1718_v63 = vrot.slane %v1716_v4, 4  ;;  %v1924_v29 = vor.u32 %v1923_v3, %v5005_v62  ;;  %v1725_v41 = vshll.u32 %v3692_v58, 16 }
  0xce   : > { %v4977_v25 = vsel %vm2891_vm6, %v3981_v48, %v2286_v31  ;;  %v2520_v31 = vpack.c.b16 %v4969_v35, %v4963_v57  ;;  %v1531_v38 = vsel %vm4424_vm5, %v1529_v23, %v1530_v13  ;;  %v1129_v59 = vsel %vm4222_vm2, %v1124_v14, %v1128_v39  ;;  %v4018_v48 = vld [vmem:[%s4194_s25 + $0xc0] sm:$0xff] }
  0xcf   : > { %v2294_v43 = vpop.permute.xlu1 %2293  ;;  %v1914_v15 = vor.u32 %v1913_v9, %v1910_v44  ;;  %v1721_v13 = vrot.slane %v1719_v22, 5  ;;  %v2082_v23 = vrot.slane %v2080_v32, 4  ;;  %v1729_v12 = vshrl.u32 %v3692_v58, 16 }
  0xd0   : > { %v1083_v24 = vshrl.u32 %v3609_v36, 16  ;;  %v1929_v39 = vrot.slane %v1927_v19, 5  ;;  %v1735_v44 = vshll.u32 %v3718_v40, 16  ;;  %v1925_v9 = vrot.slane %v1924_v29, 4 }
  0xd1   : > { %v1915_v14 = vrot.slane %v1914_v15, 4  ;;  %v5033_v46 = vrot.slane %v1725_v41, 5  ;;  %v1731_v4 = vrot.slane %v1729_v12, 4  ;;  %v1086_v58 = vshll.u32 %v3609_v36, 16 }
  0xd2   : > { %2807 = vrot.lane.b32.xlu2 %v2777_v34, %s4136_s6  ;;  %v2933_v34 = vsel %vm2891_vm6, %v3985_v55, %v2294_v43  ;;  %v5025_v55 = vunpack.c.l.b16 %v1129_v59  ;;  %v3984_v59 = vld [vmem:[%s4194_s25 + $0x90] sm:$0xff]  ;;  %v1737_v29 = vrot.slane %v1735_v44, 5  ;;  %v2139_v44 = vrot.slane %v4994_v54, 5 }
  0xd3   : > { %v1732_v15 = vor.u32 %v1731_v4, %v5033_v46  ;;  %v1920_v36 = vsel %vm4222_vm2, %v1915_v14, %v5005_v62 }
  0xd4   : > { %2615 = vrot.lane.b32.xlu0 %v4881_v49, %s4135_s30  ;;  %v4987_v6 = vpop.permute.xlu0 %2291  ;;  %v2368_v0 = vpop.permute.xlu2 %2367  ;;  %v1119_v49 = vsel %vm4222_vm2, %v1114_v8, %v4940_v50  ;;  %v2581_v50 = vunpack.c.l.b16 %v1528_v56  ;;  %v3750_v8 = vrot.slane %v3734_v7, 9  ;;  %v1722_v56 = vor.u32 %v1721_v13, %v1718_v63 }
  0xd5   : > { %2791 = vrot.lane.b32.xlu1 %v2769_v61, %s4136_s6  ;;  %v5009_v21 = vsel %vm2940_vm7, %v4932_v52, %v2368_v0  ;;  %v5022_v43 = vunpack.c.l.b16 %v1119_v49  ;;  %v2582_v61 = vunpack.c.l.b16 %v1531_v38  ;;  %v1085_v38 = vrot.slane %v1083_v24, 4 }
  0xd6   : > { %v2081_v7 = vsel %vm4424_vm5, %v3750_v8, %v2080_v32  ;;  %v1723_v63 = vrot.slane %v1722_v56, 4  ;;  %v1733_v13 = vrot.slane %v1732_v15, 4  ;;  %v5067_v62 = vsel %vm2891_vm6, %v3984_v59, %v4987_v6 }
  0xd7   : > { %v2348_v10 = vpop.permute.xlu1 %2347  ;;  %v5036_v49 = vpack.c.b16 %v2582_v61, %v2581_v50  ;;  %v1096_v50 = vshrl.u32 %v5029_v20, 16  ;;  %v3742_v61 = vld [vmem:[%s4194_s25 + $0xb4] sm:$0xe]  ;;  %v2821_v12 = vunpack.c.l.b16 %v2081_v7 }
  0xd8   : > { %v5020_v52 = vsel %vm2940_vm7, %v4863_v28, %v2348_v10  ;;  %v2083_v28 = vrot.slane %v3718_v40, 5  ;;  %v1930_v40 = vsel %vm4222_vm2, %v1925_v9, %v1929_v39  ;;  %v3758_v24 = vrot.slane %v3742_v61, 9 }
  0xd9   : > { %v1098_v8 = vrot.slane %v1096_v50, 4  ;;  %v5075_v9 = vunpack.c.l.b16 %v1920_v36  ;;  %v5077_v6 = vunpack.c.l.b16 %v1930_v40 }
  0xda   : > { %2469 = vrot.lane.b32.xlu2 %v4001_v47, %s4133_s28  ;;  %v1092_v47 = vshll.u32 %v5029_v20, 16  ;;  %v2084_v22 = vsel %vm4424_vm5, %v2082_v23, %v2083_v28 }
  0xdb   : > { %v2822_v28 = vunpack.c.l.b16 %v2084_v22 }
  0xdc   : > { %2727 = vrot.lane.b32.xlu0 %v4018_v48, %s4137_s7  ;;  %v2374_v0 = vpop.permute.xlu2 %2373  ;;  %v1088_v48 = vrot.slane %v1086_v58, 5 }
  0xdd   : > { %2887 = vrot.lane.b32.xlu1 %v2857_v5, %s4138_s8  ;;  %v5043_v10 = vsel %vm2940_vm7, %v2933_v34, %v2374_v0  ;;  %v5049_v5 = vld [vmem:[%s4194_s25 + $0x44] sm:$0x1]  ;;  %v1094_v34 = vrot.slane %v1092_v47, 5  ;;  %v3661_v0 = vld [vmem:[%s4194_s25 + $0x9c] sm:$0xe]  ;;  %v2848_v22 = vpack.c.b16 %v2822_v28, %v2821_v12 }
  0xde   : > { %v5040_v3 = vpop.permute.xlu0 %2297  ;;  %v1089_v41 = vor.u32 %v1088_v48, %v1085_v38  ;;  %v1102_v23 = vshll.u32 %v5049_v5, 16  ;;  %v1738_v38 = vsel %vm4222_vm2, %v1733_v13, %v1737_v29  ;;  %v3626_v47 = vld [vmem:[%s4194_s25 + $0xa0] sm:$0xf]  ;;  %v3677_v35 = vrot.slane %v3661_v0, 9  ;;  %v4009_v48 = vld [vmem:[%s4194_s25 + $0x54] sm:$0xff] }
  0xdf   : > { %v2354_v19 = vpop.permute.xlu1 %2353  ;;  %v1099_v39 = vor.u32 %v1098_v8, %v1094_v34  ;;  %v5123_v61 = vunpack.c.l.b16 %v1738_v38  ;;  %v3653_v8 = vld [vmem:[%s4194_s25 + $0x3c] sm:$0xe]  ;;  %v3689_v12 = vld [vmem:[%s4194_s25 + $0x48] sm:$0xf]  ;;  %v5145_v38 = vld [vmem:[%s4194_s25 + $0x4c] sm:$0xf] }
  0xe0   : > { %v5060_v32 = vsel %vm2940_vm7, %v4867_v16, %v2354_v19  ;;  %v2136_v16 = vrot.slane %v4966_v11, 5  ;;  %v1090_v14 = vrot.slane %v1089_v41, 4  ;;  %v1104_v56 = vrot.slane %v1102_v23, 5  ;;  %v3625_v11 = vld [vmem:[%s4194_s25 + $0x9c] sm:$0xf] }
  0xe1   : > { %v1100_v58 = vrot.slane %v1099_v39, 4  ;;  %v1275_v50 = vshrl.u32 %v3625_v11, 16  ;;  %v1464_v23 = vrot.slane %v5029_v20, 5  ;;  %v3669_v0 = vrot.slane %v3653_v8, 9 }
  0xe2   : > { %2613 = vrot.lane.b32.xlu2 %v4983_v53, %s4135_s30  ;;  %v2138_v4 = vrot.slane %v2136_v16, 4  ;;  %v2512_v53 = vpack.c.b16 %v5025_v55, %v5022_v43  ;;  %v5099_v57 = vsel %vm4424_vm5, %v3758_v24, %v2136_v16  ;;  %v1095_v15 = vsel %vm4222_vm2, %v1090_v14, %v1094_v34 }
  0xe3   : > { %v1105_v36 = vsel %vm4222_vm2, %v1100_v58, %v1104_v56  ;;  %v2837_v40 = vunpack.c.l.b16 %v5099_v57  ;;  %v1277_v28 = vrot.slane %v1275_v50, 4  ;;  %v1278_v14 = vshll.u32 %v3625_v11, 16 }
  0xe4   : > { %2871 = vrot.lane.b32.xlu0 %v4974_v45, %s4138_s8  ;;  %v2444_v54 = vpop.permute.xlu2 %2443  ;;  %v1728_v45 = vsel %vm4222_vm2, %v1723_v63, %v5033_v46  ;;  %v4017_v46 = vld [vmem:[%s4194_s25 + $0xb4] sm:$0xff]  ;;  %v3645_v63 = vld [vmem:[%s4194_s25 + $0xa4] sm:$0x1]  ;;  %v5138_v24 = vunpack.c.l.b16 %v1105_v36  ;;  %v1288_v56 = vshrl.u32 %v3626_v47, 16  ;;  %v1692_v58 = vshrl.u32 %v3689_v12, 16 }
  0xe5   : > { %2549 = vrot.lane.b32.xlu1 %v2520_v31, %s4134_s29  ;;  %v5095_v7 = vsel %vm2973_vm8, %v5020_v52, %v2444_v54  ;;  %v1520_v31 = vrot.slane %v3626_v47, 5  ;;  %v5110_v52 = vsel %vm4424_vm5, %v2138_v4, %v2139_v44  ;;  %v5121_v34 = vunpack.c.l.b16 %v1728_v45 }
  0xe6   : > { %v2352_v59 = vpop.permute.xlu0 %2351  ;;  %6137 = vst [vmem:[#allocation2_spill] sm:$0xff] %v5095_v7  ;;  %v2838_v13 = vunpack.c.l.b16 %v5110_v52  ;;  %v1523_v16 = vrot.slane %v3645_v63, 5  ;;  %v1284_v44 = vshll.u32 %v3626_v47, 16  ;;  %v1294_v4 = vshll.u32 %v3645_v63, 16  ;;  %v5152_v47 = vld [vmem:[%s4194_s25 + $0x50] sm:$0x1] }
  0xe7   : > { %v5103_v43 = vsel %vm2940_vm7, %v4852_v1, %v2352_v59  ;;  %v2360_v55 = vpop.permute.xlu1 %2359  ;;  %v2776_v1 = vpack.c.b16 %v5077_v6, %v5075_v9  ;;  %v5129_v29 = vsel %vm4424_vm5, %v3677_v35, %v1520_v31  ;;  %v1522_v41 = vrot.slane %v1520_v31, 4 }
  0xe8   : > { %v5114_v19 = vsel %vm2940_vm7, %v4892_v51, %v2360_v55  ;;  %v5131_v51 = vunpack.c.l.b16 %v1095_v15  ;;  %v2579_v39 = vunpack.c.l.b16 %v5129_v29  ;;  %v1467_v54 = vrot.slane %v5049_v5, 5 }
  0xe9   : > { %v1280_v45 = vrot.slane %v1278_v14, 5  ;;  %v1286_v35 = vrot.slane %v1284_v44, 5  ;;  %v1290_v31 = vrot.slane %v1288_v56, 4  ;;  %v1524_v5 = vsel %vm4424_vm5, %v1522_v41, %v1523_v16 }
  0xea   : > { %2725 = vrot.lane.b32.xlu2 %v4017_v46, %s4137_s7  ;;  %v1296_v50 = vrot.slane %v1294_v4, 5  ;;  %v1695_v63 = vshll.u32 %v3689_v12, 16  ;;  %v1701_v14 = vshll.u32 %v5145_v38, 16  ;;  %v1711_v44 = vshll.u32 %v5152_v47, 16 }
  0xeb   : > { %v1281_v15 = vor.u32 %v1280_v45, %v1277_v28  ;;  %v1465_v41 = vsel %vm4424_vm5, %v3669_v0, %v1464_v23  ;;  %v2511_v12 = vpack.c.b16 %v5138_v24, %v5131_v51  ;;  %v3706_v45 = vld [vmem:[%s4194_s25 + $0xac] sm:$0xf] }
  0xec   : > { %2533 = vrot.lane.b32.xlu0 %v2512_v53, %s4134_s29  ;;  %v2450_v20 = vpop.permute.xlu2 %2449  ;;  %v1466_v53 = vrot.slane %v1464_v23, 4  ;;  %v1697_v28 = vrot.slane %v1695_v63, 5  ;;  %v1703_v4 = vrot.slane %v1701_v14, 5  ;;  %v2580_v23 = vunpack.c.l.b16 %v1524_v5  ;;  %v3986_v51 = vld [vmem:[%s4194_s25 + $0xa8] sm:$0xff] }
  0xed   : > { %2709 = vrot.lane.b32.xlu1 %v4009_v48, %s4137_s7  ;;  %v5149_v11 = vsel %vm2973_vm8, %v5060_v32, %v2450_v20  ;;  %v1291_v32 = vor.u32 %v1290_v31, %v1286_v35  ;;  %v1694_v48 = vrot.slane %v1692_v58, 4  ;;  %v1282_v8 = vrot.slane %v1281_v15, 4 }
  0xee   : > { %v2358_v59 = vpop.permute.xlu0 %2357  ;;  %v2129_v58 = vrot.slane %v3706_v45, 5  ;;  %v1713_v31 = vrot.slane %v1711_v44, 5  ;;  %v2768_v44 = vpack.c.b16 %v5123_v61, %v5121_v34  ;;  %v2599_v34 = vpack.c.b16 %v2580_v23, %v2579_v39 }
  0xef   : > { %v5156_v55 = vsel %vm2940_vm7, %v4730_v42, %v2358_v59  ;;  %v2366_v46 = vpop.permute.xlu1 %2365  ;;  %v1705_v42 = vshrl.u32 %v5145_v38, 16  ;;  %v1292_v16 = vrot.slane %v1291_v32, 4  ;;  %v1287_v56 = vsel %vm4222_vm2, %v1282_v8, %v1286_v35  ;;  %v3983_v59 = vld [vmem:[%s4194_s25 + $0x84] sm:$0xff] }
  0xf0   : > { %v5162_v36 = vsel %vm2940_vm7, %v4977_v25, %v2366_v46  ;;  %v1468_v25 = vsel %vm4424_vm5, %v1466_v53, %v1467_v54  ;;  %v1698_v54 = vor.u32 %v1697_v28, %v1694_v48  ;;  %v2563_v53 = vunpack.c.l.b16 %v1465_v41  ;;  %v3705_v46 = vld [vmem:[%s4194_s25 + $0xa8] sm:$0xf]  ;;  %v5196_v48 = vld [vmem:[%s4194_s25 + $0xb0] sm:$0x1] }
  0xf1   : > { %v1707_v20 = vrot.slane %v1705_v42, 4  ;;  %v1297_v0 = vsel %vm4222_vm2, %v1292_v16, %v1296_v50  ;;  %v5191_v15 = vunpack.c.l.b16 %v1287_v56  ;;  %v2131_v8 = vrot.slane %v2129_v58, 4  ;;  %v3733_v42 = vld [vmem:[%s4194_s25 + $0x48] sm:$0xe]  ;;  %v4000_v56 = vld [vmem:[%s4194_s25 + $0x9c] sm:$0xff] }
  0xf2   : > { %2869 = vrot.lane.b32.xlu2 %v2848_v22, %s4138_s8  ;;  %v3741_v22 = vld [vmem:[%s4194_s25 + $0xa8] sm:$0xe]  ;;  %v5193_v50 = vunpack.c.l.b16 %v1297_v0  ;;  %v1699_v32 = vrot.slane %v1698_v54, 4  ;;  %v2132_v14 = vrot.slane %v5196_v48, 5  ;;  %v1887_v16 = vshll.u32 %v3705_v46, 16 }
  0xf3   : > { %v1708_v35 = vor.u32 %v1707_v20, %v1703_v4  ;;  %v3757_v63 = vrot.slane %v3741_v22, 9  ;;  %v5214_v28 = vsel %vm2891_vm6, %v3986_v51, %v4785_v37  ;;  %v2856_v20 = vpack.c.b16 %v2838_v13, %v2837_v40  ;;  %v3623_v0 = vld [vmem:[%s4194_s25 + $0x90] sm:$0xf] }
  0xf4   : > { %2629 = vrot.lane.b32.xlu0 %v5036_v49, %s4135_s30  ;;  %v5188_v24 = vpop.permute.xlu2 %2455  ;;  %v2564_v49 = vunpack.c.l.b16 %v1468_v25  ;;  %v1884_v25 = vshrl.u32 %v3705_v46, 16  ;;  %v1704_v61 = vsel %vm4222_vm2, %v1699_v32, %v1703_v4  ;;  %v3749_v37 = vrot.slane %v3733_v42, 9 }
  0xf5   : > { %2805 = vrot.lane.b32.xlu1 %v2776_v1, %s4136_s6  ;;  %v1709_v1 = vrot.slane %v1708_v35, 4  ;;  %v2519_v57 = vpack.c.b16 %v5193_v50, %v5191_v15  ;;  %v5237_v40 = vsel %vm4424_vm5, %v2131_v8, %v2132_v14  ;;  %v1893_v29 = vshll.u32 %v3706_v45, 16  ;;  %v3652_v50 = vld [vmem:[%s4194_s25 + $0x30] sm:$0xe] }
  0xf6   : > { %v2364_v5 = vpop.permute.xlu0 %2363  ;;  %v2073_v13 = vrot.slane %v5145_v38, 5  ;;  %v1886_v39 = vrot.slane %v1884_v25, 4  ;;  %v1889_v4 = vrot.slane %v1887_v16, 5  ;;  %v1897_v23 = vshrl.u32 %v3706_v45, 16  ;;  %v5268_v25 = vld [vmem:[%s4194_s25 + $0x34] sm:$0xf] }
  0xf7   : > { %v5200_v9 = vsel %vm2940_vm7, %v4848_v27, %v2364_v5  ;;  %v2372_v6 = vpop.permute.xlu1 %2371  ;;  %v2927_v27 = vsel %vm2891_vm6, %v3983_v59, %v4714_v30  ;;  %v5227_v30 = vsel %vm4424_vm5, %v3757_v63, %v2129_v58  ;;  %v1714_v52 = vsel %vm4222_vm2, %v1709_v1, %v1713_v31  ;;  %v3607_v31 = vld [vmem:[%s4194_s25 + $0x30] sm:$0xf]  ;;  %v5261_v63 = vld [vmem:[%s4194_s25 + $0x98] sm:$0x1] }
  0xf8   : > { %v5208_v41 = vsel %vm2940_vm7, %v5067_v62, %v2372_v6  ;;  %v2591_v62 = vpack.c.b16 %v2564_v49, %v2563_v53  ;;  %v5247_v22 = vunpack.c.l.b16 %v1704_v61  ;;  %v2835_v58 = vunpack.c.l.b16 %v5227_v30  ;;  %v5332_v30 = vld [vmem:[%s4194_s25 + $0xa0] sm:$0xf] }
  0xf9   : > { %v5250_v59 = vrot.slane %v1893_v29, 5  ;;  %v1251_v51 = vshrl.u32 %v3623_v0, 16  ;;  %v2740_v38 = vunpack.c.l.b16 %v1714_v52  ;;  %v2836_v49 = vunpack.c.l.b16 %v5237_v40 }
  0xfa   : > { %2531 = vrot.lane.b32.xlu2 %v2511_v12, %s4134_s29  ;;  %v5242_v12 = vld [vmem:[%s4194_s25 + $0x94] sm:$0xf]  ;;  %v1899_v45 = vrot.slane %v1897_v23, 4  ;;  %v1254_v35 = vshll.u32 %v3623_v0, 16  ;;  %v2076_v32 = vrot.slane %v5152_v47, 5  ;;  %v2074_v8 = vsel %vm4424_vm5, %v3749_v37, %v2073_v13 }
  0xfb   : > { %v1253_v6 = vrot.slane %v1251_v51, 4  ;;  %v1260_v1 = vshll.u32 %v5242_v12, 16  ;;  %v2075_v14 = vrot.slane %v2073_v13, 4  ;;  %v1890_v42 = vor.u32 %v1889_v4, %v1886_v39  ;;  %v5276_v39 = vld [vmem:[%s4194_s25 + $0x38] sm:$0x1] }
  0xfc   : > { %2789 = vrot.lane.b32.xlu0 %v2768_v44, %s4136_s6  ;;  %v5245_v54 = vpop.permute.xlu2 %2537  ;;  %v1903_v44 = vshll.u32 %v5196_v48, 16  ;;  %v1900_v16 = vor.u32 %v1899_v45, %v5250_v59  ;;  %v1264_v47 = vshrl.u32 %v5242_v12, 16  ;;  %v2767_v61 = vpack.c.b16 %v2740_v38, %v5247_v22 }
  0xfd   : > { %2467 = vrot.lane.b32.xlu1 %v4000_v56, %s4133_s28  ;;  %v1262_v56 = vrot.slane %v1260_v1, 5  ;;  %v1270_v0 = vshll.u32 %v5261_v63, 16  ;;  %v1059_v52 = vshrl.u32 %v3607_v31, 16  ;;  %v1062_v29 = vshll.u32 %v3607_v31, 16 }
  0xfe   : > { %v2370_v53 = vpop.permute.xlu0 %2369  ;;  %v1266_v13 = vrot.slane %v1264_v47, 4  ;;  %v1068_v48 = vshll.u32 %v5268_v25, 16  ;;  %v1072_v4 = vshrl.u32 %v5268_v25, 16  ;;  %v2077_v23 = vsel %vm4424_vm5, %v2075_v14, %v2076_v32 }
  0xff   : > { %v5255_v46 = vsel %vm2940_vm7, %v2927_v27, %v2370_v53  ;;  %v5257_v5 = vpop.permute.xlu1 %2377  ;;  %v1256_v27 = vrot.slane %v1254_v35, 5  ;;  %v1891_v22 = vrot.slane %v1890_v42, 4  ;;  %v1061_v51 = vrot.slane %v1059_v52, 4 }
 0x100   : > { %v1064_v53 = vrot.slane %v1062_v29, 5  ;;  %v1905_v45 = vrot.slane %v1903_v44, 5  ;;  %v1267_v35 = vor.u32 %v1266_v13, %v1262_v56  ;;  %v1070_v31 = vrot.slane %v1068_v48, 5  ;;  %v4016_v13 = vld [vmem:[%s4194_s25 + $0xa8] sm:$0xff] }
 0x101   : > { %v1257_v37 = vor.u32 %v1256_v27, %v1253_v6  ;;  %v1074_v47 = vrot.slane %v1072_v4, 4  ;;  %v2819_v42 = vunpack.c.l.b16 %v2074_v8  ;;  %v1272_v52 = vrot.slane %v1270_v0, 5 }
 0x102   : > { %2627 = vrot.lane.b32.xlu2 %v2599_v34, %s4135_s30  ;;  %v1901_v34 = vrot.slane %v1900_v16, 4  ;;  %v1065_v27 = vor.u32 %v1064_v53, %v1061_v51  ;;  %v2820_v16 = vunpack.c.l.b16 %v2077_v23  ;;  %v1896_v48 = vsel %vm4222_vm2, %v1891_v22, %v5250_v59  ;;  %v5309_v51 = vld [vmem:[%s4194_s25 + $0x90] sm:$0xe] }
 0x103   : > { %v1258_v1 = vrot.slane %v1257_v37, 4  ;;  %v1075_v37 = vor.u32 %v1074_v47, %v1070_v31  ;;  %v2855_v59 = vpack.c.b16 %v2836_v49, %v2835_v58  ;;  %v5323_v53 = vunpack.c.l.b16 %v1896_v48  ;;  %v5349_v47 = vld [vmem:[%s4194_s25 + $0xa4] sm:$0x1] }
 0x104   : > { %2885 = vrot.lane.b32.xlu0 %v2856_v20, %s4138_s8  ;;  %v5284_v38 = vpop.permute.xlu2 %2633  ;;  %v1078_v20 = vshll.u32 %v5276_v39, 16  ;;  %v1066_v29 = vrot.slane %v1065_v27, 4  ;;  %v1513_v15 = vrot.slane %v5242_v12, 5  ;;  %v1457_v27 = vrot.slane %v5268_v25, 5 }
 0x105   : > { %2611 = vrot.lane.b32.xlu1 %v2591_v62, %s4135_s30  ;;  %v1268_v62 = vrot.slane %v1267_v35, 4  ;;  %v1263_v8 = vsel %vm4222_vm2, %v1258_v1, %v1262_v56  ;;  %v1076_v0 = vrot.slane %v1075_v37, 4  ;;  %v2847_v56 = vpack.c.b16 %v2820_v16, %v2819_v42 }
 0x106   : > { %v2376_v6 = vpop.permute.xlu0 %2375  ;;  %v1080_v4 = vrot.slane %v1078_v20, 5  ;;  %v1071_v23 = vsel %vm4222_vm2, %v1066_v29, %v1070_v31  ;;  %v3676_v35 = vrot.slane %v5309_v51, 9  ;;  %v3687_v31 = vld [vmem:[%s4194_s25 + $0x3c] sm:$0xf]  ;;  %v1516_v1 = vrot.slane %v5261_v63, 5 }
 0x107   : > { %v5289_v32 = vsel %vm2940_vm7, %v5214_v28, %v2376_v6  ;;  %v2448_v14 = vpop.permute.xlu1 %2447  ;;  %v1906_v28 = vsel %vm4222_vm2, %v1901_v34, %v1905_v45  ;;  %v5327_v45 = vunpack.c.l.b16 %v1263_v8  ;;  %v5338_v49 = vunpack.c.l.b16 %v1071_v23 }
 0x108   : > { %v5293_v44 = vsel %vm2973_vm8, %v5103_v43, %v2448_v14  ;;  %v1273_v43 = vsel %vm4222_vm2, %v1268_v62, %v1272_v52  ;;  %v5325_v34 = vunpack.c.l.b16 %v1906_v28  ;;  %v1081_v58 = vsel %vm4222_vm2, %v1076_v0, %v1080_v4  ;;  %v4008_v14 = vld [vmem:[%s4194_s25 + $0x48] sm:$0xff]  ;;  %v5364_v4 = vld [vmem:[%s4194_s25 + $0x44] sm:$0x1] }
 0x109   : > { %v5334_v40 = vunpack.c.l.b16 %v1273_v43  ;;  %v3668_v62 = vrot.slane %v3652_v50, 9  ;;  %v1869_v16 = vshll.u32 %v5332_v30, 16  ;;  %v2482_v29 = vunpack.c.l.b16 %v1081_v58 }
 0x10a   : > { %2787 = vrot.lane.b32.xlu2 %v2767_v61, %s4136_s6  ;;  %v3703_v61 = vld [vmem:[%s4194_s25 + $0x9c] sm:$0xf]  ;;  %v1515_v37 = vrot.slane %v1513_v15, 4  ;;  %v1873_v25 = vshrl.u32 %v5332_v30, 16  ;;  %v1879_v28 = vshll.u32 %v5349_v47, 16  ;;  %v1668_v8 = vshrl.u32 %v3687_v31, 16 }
 0x10b   : > { %v1860_v20 = vshrl.u32 %v3703_v61, 16  ;;  %v1863_v52 = vshll.u32 %v3703_v61, 16  ;;  %v1871_v48 = vrot.slane %v1869_v16, 5  ;;  %v1671_v43 = vshll.u32 %v3687_v31, 16 }
 0x10c   : > { %2547 = vrot.lane.b32.xlu0 %v2519_v57, %s4134_s29  ;;  %v5321_v22 = vpop.permute.xlu2 %2793  ;;  %v1875_v0 = vrot.slane %v1873_v25, 4  ;;  %v1460_v51 = vrot.slane %v5276_v39, 5  ;;  %v1670_v50 = vrot.slane %v1668_v8, 4  ;;  %v2775_v16 = vpack.c.b16 %v5325_v34, %v5323_v53 }
 0x10d   : > { %2723 = vrot.lane.b32.xlu1 %v4016_v13, %s4137_s7  ;;  %v1862_v63 = vrot.slane %v1860_v20, 4  ;;  %v1865_v13 = vrot.slane %v1863_v52, 5  ;;  %v1673_v20 = vrot.slane %v1671_v43, 5  ;;  %v1687_v39 = vshll.u32 %v5364_v4, 16 }
 0x10e   : > { %v2446_v57 = vpop.permute.xlu0 %2445  ;;  %v1514_v53 = vsel %vm4424_vm5, %v3676_v35, %v1513_v15  ;;  %v1517_v34 = vsel %vm4424_vm5, %v1515_v37, %v1516_v1  ;;  %v1458_v43 = vsel %vm4424_vm5, %v3668_v62, %v1457_v27  ;;  %v3987_v15 = vld [vmem:[%s4194_s25 + $0xb4] sm:$0xff]  ;;  %v3740_v37 = vld [vmem:[%s4194_s25 + $0x9c] sm:$0xe] }
 0x10f   : > { %v5344_v6 = vsel %vm2973_vm8, %v4858_v2, %v2446_v57  ;;  %v2454_v12 = vpop.permute.xlu1 %2453  ;;  %v5358_v2 = vld [vmem:[%s4194_s25 + $0x40] sm:$0xf]  ;;  %v1866_v61 = vor.u32 %v1865_v13, %v1862_v63  ;;  %v3979_v63 = vld [vmem:[%s4194_s25 + $0x54] sm:$0xff]  ;;  %v1689_v1 = vrot.slane %v1687_v39, 5  ;;  %v2578_v62 = vunpack.c.l.b16 %v1517_v34 }
 0x110   : > { %v5354_v42 = vsel %vm2973_vm8, %v5156_v55, %v2454_v12  ;;  %v1459_v55 = vrot.slane %v1457_v27, 4  ;;  %v1677_v23 = vshll.u32 %v5358_v2, 16  ;;  %v1681_v57 = vshrl.u32 %v5358_v2, 16  ;;  %v3999_v34 = vld [vmem:[%s4194_s25 + $0x90] sm:$0xff] }
 0x111   : > { %v1881_v12 = vrot.slane %v1879_v28, 5  ;;  %v2518_v28 = vpack.c.b16 %v5334_v40, %v5327_v45  ;;  %v2915_v27 = vsel %vm2891_vm6, %v3979_v63, %v4837_v17  ;;  %v5424_v63 = vld [vmem:[%s4194_s25 + $0x28] sm:$0xf] }
 0x112   : > { %2883 = vrot.lane.b32.xlu2 %v2855_v59, %s4138_s8  ;;  %v1876_v59 = vor.u32 %v1875_v0, %v1871_v48  ;;  %v1679_v52 = vrot.slane %v1677_v23, 5  ;;  %v1683_v25 = vrot.slane %v1681_v57, 4  ;;  %v1674_v0 = vor.u32 %v1673_v20, %v1670_v50 }
 0x113   : > { %v2510_v23 = vpack.c.b16 %v2482_v29, %v5338_v49  ;;  %v2577_v49 = vunpack.c.l.b16 %v1514_v53  ;;  %v2122_v29 = vrot.slane %v5332_v30, 5  ;;  %v2956_v17 = vsel %vm2940_vm7, %v2915_v27, %v4951_v33  ;;  %v3621_v53 = vld [vmem:[%s4194_s25 + $0x84] sm:$0xf] }
 0x114   : > { %2707 = vrot.lane.b32.xlu0 %v4008_v14, %s4137_s7  ;;  %v5371_v58 = vpop.permute.xlu2 %2889  ;;  %v1867_v14 = vrot.slane %v1866_v61, 4  ;;  %v1877_v8 = vrot.slane %v1876_v59, 4  ;;  %v1461_v61 = vsel %vm4424_vm5, %v1459_v55, %v1460_v51  ;;  %v1675_v35 = vrot.slane %v1674_v0, 4  ;;  %v3732_v55 = vld [vmem:[%s4194_s25 + $0x3c] sm:$0xe] }
 0x115   : > { %2867 = vrot.lane.b32.xlu1 %v2847_v56, %s4138_s8  ;;  %v2562_v51 = vunpack.c.l.b16 %v1461_v61  ;;  %v3756_v30 = vrot.slane %v3740_v37, 9  ;;  %v2066_v20 = vrot.slane %v5358_v2, 5  ;;  %v3748_v39 = vrot.slane %v3732_v55, 9  ;;  %v5467_v55 = vld [vmem:[%s4194_s25 + $0x8c] sm:$0x1] }
 0x116   : > { %v2452_v31 = vpop.permute.xlu0 %2451  ;;  %v1872_v45 = vsel %vm4222_vm2, %v1867_v14, %v1871_v48  ;;  %v1882_v40 = vsel %vm4222_vm2, %v1877_v8, %v1881_v12  ;;  %v2561_v48 = vunpack.c.l.b16 %v1458_v43  ;;  %v4007_v14 = vld [vmem:[%s4194_s25 + $0x3c] sm:$0xff]  ;;  %v2598_v8 = vpack.c.b16 %v2578_v62, %v2577_v49 }
 0x117   : > { %v5379_v13 = vsel %vm2973_vm8, %v4924_v18, %v2452_v31  ;;  %v5381_v56 = vpop.permute.xlu1 %2473  ;;  %v1684_v18 = vor.u32 %v1683_v25, %v1679_v52  ;;  %v5406_v57 = vunpack.c.l.b16 %v1872_v45  ;;  %v5408_v59 = vunpack.c.l.b16 %v1882_v40 }
 0x118   : > { %v2939_v31 = vsel %vm2891_vm6, %v3987_v15, %v5040_v3  ;;  %v1680_v25 = vsel %vm4222_vm2, %v1675_v35, %v1679_v52  ;;  %v2124_v3 = vrot.slane %v2122_v29, 4  ;;  %v2125_v0 = vrot.slane %v5349_v47, 5  ;;  %v5435_v52 = vld [vmem:[%s4194_s25 + $0x88] sm:$0xf]  ;;  %v3605_v35 = vld [vmem:[%s4194_s25 + $0x24] sm:$0xf] }
 0x119   : > { %v1685_v50 = vrot.slane %v1684_v18, 4  ;;  %v5438_v43 = vpack.c.b16 %v2562_v51, %v2561_v48  ;;  %v2774_v18 = vpack.c.b16 %v5408_v59, %v5406_v57  ;;  %v1450_v61 = vrot.slane %v5424_v63, 5 }
 0x11a   : > { %2545 = vrot.lane.b32.xlu2 %v2518_v28, %s4134_s29  ;;  %v5428_v28 = vsel %vm2940_vm7, %v2939_v31, %v5257_v5  ;;  %v2069_v5 = vrot.slane %v5364_v4, 5  ;;  %v5445_v45 = vunpack.c.l.b16 %v1680_v25  ;;  %v5451_v40 = vsel %vm4424_vm5, %v3756_v30, %v2122_v29  ;;  %v5459_v4 = vld [vmem:[%s4194_s25 + $0x2c] sm:$0x1] }
 0x11b   : > { %v1690_v33 = vsel %vm4222_vm2, %v1685_v50, %v1689_v1  ;;  %v2068_v15 = vrot.slane %v2066_v20, 4  ;;  %v5456_v50 = vsel %vm4424_vm5, %v3748_v39, %v2066_v20  ;;  %v1227_v1 = vshrl.u32 %v3621_v53, 16 }
 0x11c   : > { %2803 = vrot.lane.b32.xlu0 %v2775_v16, %s4136_s6  ;;  %v5413_v12 = vpop.permute.xlu2 %2551  ;;  %v5447_v47 = vunpack.c.l.b16 %v1690_v33  ;;  %v1230_v37 = vshll.u32 %v3621_v53, 16  ;;  %v1236_v27 = vshll.u32 %v5435_v52, 16  ;;  %v2126_v49 = vsel %vm4424_vm5, %v2124_v3, %v2125_v0 }
 0x11d   : > { %2529 = vrot.lane.b32.xlu1 %v2510_v23, %s4134_s29  ;;  %v3651_v23 = vld [vmem:[%s4194_s25 + $0x24] sm:$0xe]  ;;  %v1453_v29 = vrot.slane %v5459_v4, 5  ;;  %v1240_v48 = vshrl.u32 %v5435_v52, 16  ;;  %v1452_v51 = vrot.slane %v1450_v61, 4  ;;  %v1229_v57 = vrot.slane %v1227_v1, 4 }
 0x11e   : > { %v2458_v16 = vpop.permute.xlu0 %2457  ;;  %v3667_v62 = vrot.slane %v3651_v23, 9  ;;  %v1232_v59 = vrot.slane %v1230_v37, 5  ;;  %v1238_v30 = vrot.slane %v1236_v27, 5  ;;  %v2070_v31 = vsel %vm4424_vm5, %v2068_v15, %v2069_v5 }
 0x11f   : > { %v5430_v2 = vpop.permute.xlu1 %2617  ;;  %v1035_v25 = vshrl.u32 %v3605_v35, 16  ;;  %v1038_v33 = vshll.u32 %v3605_v35, 16  ;;  %v1246_v0 = vshll.u32 %v5467_v55, 16  ;;  %v1044_v53 = vshll.u32 %v5424_v63, 16 }
 0x120   : > { %v1233_v3 = vor.u32 %v1232_v59, %v1229_v57  ;;  %v2989_v23 = vsel %vm2973_vm8, %v2956_v17, %v2458_v16  ;;  %v2833_v1 = vunpack.c.l.b16 %v5451_v40  ;;  %v2817_v37 = vunpack.c.l.b16 %v5456_v50 }
 0x121   : > { %v1451_v5 = vsel %vm4424_vm5, %v3667_v62, %v1450_v61  ;;  %v1454_v15 = vsel %vm4424_vm5, %v1452_v51, %v1453_v29  ;;  %v1037_v35 = vrot.slane %v1035_v25, 4  ;;  %v2834_v57 = vunpack.c.l.b16 %v2126_v49  ;;  %v3659_v51 = vld [vmem:[%s4194_s25 + $0x84] sm:$0xe] }
 0x122   : > { %2705 = vrot.lane.b32.xlu2 %v4007_v14, %s4137_s7  ;;  %v1242_v14 = vrot.slane %v1240_v48, 4  ;;  %v1040_v48 = vrot.slane %v1038_v33, 5  ;;  %v2818_v17 = vunpack.c.l.b16 %v2070_v31  ;;  %v1234_v16 = vrot.slane %v1233_v3, 4 }
 0x123   : > { %v1248_v40 = vrot.slane %v1246_v0, 5  ;;  %v5488_v7 = vrot.slane %v1044_v53, 5  ;;  %v3005_v61 = vsel %vm2973_vm8, %v5428_v28, %v5381_v56  ;;  %v2559_v62 = vunpack.c.l.b16 %v1451_v5 }
 0x124   : > { %2465 = vrot.lane.b32.xlu0 %v3999_v34, %s4133_s28  ;;  %v5472_v20 = vpop.permute.xlu2 %2711  ;;  %v1048_v34 = vshrl.u32 %v5424_v63, 16  ;;  %v1243_v27 = vor.u32 %v1242_v14, %v1238_v30  ;;  %v2766_v63 = vpack.c.b16 %v5447_v47, %v5445_v45  ;;  %v2560_v29 = vunpack.c.l.b16 %v1454_v15 }
 0x125   : > { %2625 = vrot.lane.b32.xlu1 %v2598_v8, %s4135_s30  ;;  %v3022_v45 = vsel %vm3006_vm9, %v2989_v23, %v5245_v54  ;;  %v1041_v49 = vor.u32 %v1040_v48, %v1037_v35  ;;  %v1239_v54 = vsel %vm4222_vm2, %v1234_v16, %v1238_v30  ;;  %v1054_v31 = vshll.u32 %v5459_v4, 16  ;;  %v4015_v23 = vld [vmem:[%s4194_s25 + $0x9c] sm:$0xff]  ;;  %v5543_v16 = vld [vmem:[%s4194_s25 + $0x98] sm:$0x1] }
 0x126   : > { %v2554_v39 = vpop.permute.xlu0 %2553  ;;  %v1244_v59 = vrot.slane %v1243_v27, 4  ;;  %v1050_v50 = vrot.slane %v1048_v34, 4  ;;  %v3055_v56 = vsel %vm3039_vm10, %v3022_v45, %v5430_v2  ;;  %v5508_v25 = vpack.c.b16 %v2818_v17, %v2817_v37  ;;  %v3998_v37 = vld [vmem:[%s4194_s25 + $0x84] sm:$0xff] }
 0x127   : > { %v2730_v8 = vpop.permute.xlu1 %2729  ;;  %v3038_v47 = vsel %vm3006_vm9, %v3005_v61, %v2554_v39  ;;  %v3675_v33 = vrot.slane %v3659_v51, 9  ;;  %v3701_v39 = vld [vmem:[%s4194_s25 + $0x90] sm:$0xf]  ;;  %v5517_v4 = vpack.c.b16 %v2560_v29, %v2559_v62  ;;  %v1506_v53 = vrot.slane %v5435_v52, 5  ;;  %v5534_v52 = vld [vmem:[%s4194_s25 + $0x34] sm:$0xf] }
 0x128   : > { %v1051_v2 = vor.u32 %v1050_v50, %v5488_v7  ;;  %v3071_v3 = vsel %vm3039_vm10, %v3038_v47, %v5284_v38  ;;  %v5525_v27 = vunpack.c.l.b16 %v1239_v54  ;;  %v1042_v5 = vrot.slane %v1041_v49, 4  ;;  %v5528_v38 = vld [vmem:[%s4194_s25 + $0x94] sm:$0xf]  ;;  %v5546_v50 = vld [vmem:[%s4194_s25 + $0x30] sm:$0xe] }
 0x129   : > { %v3104_v34 = vsel %vm3072_vm11, %v3071_v3, %v2730_v8  ;;  %v1056_v48 = vrot.slane %v1054_v31, 5  ;;  %v1836_v8 = vshrl.u32 %v3701_v39, 16  ;;  %v1845_v62 = vshll.u32 %v5528_v38, 16 }
 0x12a   : > { %2801 = vrot.lane.b32.xlu2 %v2774_v18, %s4136_s6  ;;  %v2854_v18 = vpack.c.b16 %v2834_v57, %v2833_v1  ;;  %v1052_v17 = vrot.slane %v1051_v2, 4  ;;  %v1849_v29 = vshrl.u32 %v5528_v38, 16  ;;  %v1047_v51 = vsel %vm4222_vm2, %v1042_v5, %v5488_v7 }
 0x12b   : > { %v1838_v61 = vrot.slane %v1836_v8, 4  ;;  %v1509_v54 = vrot.slane %v5467_v55, 5  ;;  %v5559_v31 = vrot.slane %v1845_v62, 5  ;;  %v3747_v7 = vrot.slane %v5546_v50, 9 }
 0x12c   : > { %2609 = vrot.lane.b32.xlu0 %v5438_v43, %s4135_s30  ;;  %v5503_v28 = vpop.permute.xlu2 %2807  ;;  %v1249_v43 = vsel %vm4222_vm2, %v1244_v59, %v1248_v40  ;;  %v1839_v59 = vshll.u32 %v3701_v39, 16  ;;  %v1508_v40 = vrot.slane %v1506_v53, 4  ;;  %v2059_v39 = vrot.slane %v5534_v52, 5 }
 0x12d   : > { %2785 = vrot.lane.b32.xlu1 %v2766_v63, %s4136_s6  ;;  %v5531_v35 = vunpack.c.l.b16 %v1249_v43  ;;  %v3685_v63 = vld [vmem:[%s4194_s25 + $0x30] sm:$0xf]  ;;  %v1653_v43 = vshll.u32 %v5534_v52, 16  ;;  %v2479_v8 = vunpack.c.l.b16 %v1047_v51 }
 0x12e   : > { %v2714_v14 = vpop.permute.xlu0 %2713  ;;  %v1841_v45 = vrot.slane %v1839_v59, 5  ;;  %v1644_v47 = vshrl.u32 %v3685_v63, 16  ;;  %v1647_v49 = vshll.u32 %v3685_v63, 16  ;;  %v2061_v62 = vrot.slane %v2059_v39, 4 }
 0x12f   : > { %v3088_v30 = vsel %vm3072_vm11, %v3055_v56, %v2714_v14  ;;  %v2874_v0 = vpop.permute.xlu1 %2873  ;;  %v1851_v14 = vrot.slane %v1849_v29, 4  ;;  %v5574_v5 = vrot.slane %v1653_v43, 5 }
 0x130   : > { %v3121_v1 = vsel %vm3105_vm12, %v3088_v30, %v5321_v22  ;;  %v5540_v22 = vsel %vm4424_vm5, %v3675_v33, %v1506_v53  ;;  %v1057_v33 = vsel %vm4222_vm2, %v1052_v17, %v1056_v48  ;;  %v1842_v55 = vor.u32 %v1841_v45, %v1838_v61 }
 0x131   : > { %v3154_v15 = vsel %vm3138_vm13, %v3121_v1, %v2874_v0  ;;  %v1852_v0 = vor.u32 %v1851_v14, %v5559_v31  ;;  %v1646_v53 = vrot.slane %v1644_v47, 4  ;;  %v2480_v63 = vunpack.c.l.b16 %v1057_v33 }
 0x132   : > { %v3187_v57 = vsel %vm3171_vm14, %v3154_v15, 0  ;;  %2463 = vrot.lane.b32.xlu2 %v3998_v37, %s4133_s28  ;;  %v1649_v37 = vrot.slane %v1647_v49, 5  ;;  %v1657_v15 = vshrl.u32 %v5534_v52, 16  ;;  %v1510_v17 = vsel %vm4424_vm5, %v1508_v40, %v1509_v54 }
 0x133   : > { %3245 = vmatpush.bf16.xpose.msra.mxu0 %v3187_v57  ;;  %4022 = vmatpush.bf16.xpose.msra.mxu2 %v3187_v57  ;;  %v3715_v57 = vld [vmem:[%s4194_s25 + $0x38] sm:$0x1]  ;;  %v1843_v29 = vrot.slane %v1842_v55, 4  ;;  %v2060_v33 = vsel %vm4424_vm5, %v3747_v7, %v2059_v39 }
 0x134   : > { %2721 = vrot.lane.b32.xlu0 %v4015_v23, %s4137_s7  ;;  %v5556_v56 = vpop.permute.xlu2 %2469  ;;  %v3603_v23 = vld [vmem:[%s4194_s25 + $0x18] sm:$0xf]  ;;  %v1659_v59 = vrot.slane %v1657_v15, 4  ;;  %v2062_v52 = vrot.slane %v3715_v57, 5  ;;  %v1663_v51 = vshll.u32 %v3715_v57, 16  ;;  %v4006_v15 = vld [vmem:[%s4194_s25 + $0x30] sm:$0xff]  ;;  %v2987_v57 = vsel %vm2973_vm8, %v5114_v19, %v5188_v24 }
 0x135   : > { %2881 = vrot.lane.b32.xlu1 %v2854_v18, %s4138_s8  ;;  %v1855_v18 = vshll.u32 %v5543_v16, 16  ;;  %v1011_v50 = vshrl.u32 %v3603_v23, 16  ;;  %v1014_v61 = vshll.u32 %v3603_v23, 16  ;;  %v2115_v24 = vrot.slane %v5528_v38, 5 }
 0x136   : > { %v2810_v2 = vpop.permute.xlu0 %2809  ;;  %v1660_v40 = vor.u32 %v1659_v59, %v5574_v5 }
 0x137   : > { %v3137_v3 = vsel %vm3105_vm12, %v3104_v34, %v2810_v2  ;;  %v5568_v30 = vpop.permute.xlu1 %2535  ;;  %v2517_v34 = vpack.c.b16 %v5531_v35, %v5525_v27  ;;  %v1857_v45 = vrot.slane %v1855_v18, 5  ;;  %v1853_v27 = vrot.slane %v1852_v0, 4  ;;  %v5600_v18 = vld [vmem:[%s4194_s25 + $0x20] sm:$0x1] }
 0x138   : > { %v3170_v1 = vsel %vm3138_vm13, %v3137_v3, %v5371_v58  ;;  %v5584_v58 = vld [vmem:[%s4194_s25 + $0x1c] sm:$0xf]  ;;  %v1650_v35 = vor.u32 %v1649_v37, %v1646_v53  ;;  %v1013_v49 = vrot.slane %v1011_v50, 4  ;;  %v1016_v54 = vrot.slane %v1014_v61, 5  ;;  %v3739_v61 = vld [vmem:[%s4194_s25 + $0x90] sm:$0xe] }
 0x139   : > { %v3203_v48 = vsel %vm3171_vm14, %v3170_v1, 0  ;;  %v1020_v14 = vshll.u32 %v5584_v58, 16  ;;  %v2576_v2 = vunpack.c.l.b16 %v1510_v17  ;;  %v2509_v3 = vpack.c.b16 %v2480_v63, %v2479_v8  ;;  %v4014_v1 = vld [vmem:[%s4194_s25 + $0x90] sm:$0xff] }
 0x13a   : > { %3264 = vmatpush.bf16.xpose.msra.mxu1 %v3203_v48  ;;  %4030 = vmatpush.bf16.xpose.msra.mxu3 %v3203_v48  ;;  %v2063_v0 = vsel %vm4424_vm5, %v2061_v62, %v2062_v52  ;;  %v1858_v7 = vsel %vm4222_vm2, %v1853_v27, %v1857_v45  ;;  %v1651_v39 = vrot.slane %v1650_v35, 4  ;;  %v1665_v37 = vrot.slane %v1663_v51, 5  ;;  %v3650_v62 = vld [vmem:[%s4194_s25 + $0x18] sm:$0xe] }
 0x13b   : > { %2607 = vrot.lane.b32.xlu2 %v5517_v4, %s4135_s30  ;;  %v2575_v4 = vunpack.c.l.b16 %v5540_v22  ;;  %v5604_v53 = vrot.slane %v1020_v14, 5  ;;  %v1848_v22 = vsel %vm4222_vm2, %v1843_v29, %v5559_v31  ;;  %v1661_v48 = vrot.slane %v1660_v40, 4  ;;  %v3619_v52 = vld [vmem:[%s4194_s25 + $0x78] sm:$0xf] }
 0x13c   : > { %2865 = vrot.lane.b32.xlu0 %v5508_v25, %s4138_s8  ;;  %v5592_v47 = vpop.permute.xlu2 %2613  ;;  %v1024_v25 = vshrl.u32 %v5584_v58, 16  ;;  %v1030_v63 = vshll.u32 %v5600_v18, 16  ;;  %v2815_v17 = vunpack.c.l.b16 %v2060_v33  ;;  %v2816_v59 = vunpack.c.l.b16 %v2063_v0 }
 0x13d   : > { %2543 = vrot.lane.b32.xlu1 %v2517_v34, %s4134_s29  ;;  %v1017_v34 = vor.u32 %v1016_v54, %v1013_v49  ;;  %v2751_v31 = vunpack.c.l.b16 %v1848_v22  ;;  %v2752_v50 = vunpack.c.l.b16 %v1858_v7  ;;  %v2597_v45 = vpack.c.b16 %v2576_v2, %v2575_v4 }
 0x13e   : > { %v2472_v43 = vpop.permute.xlu0 %2471  ;;  %v1026_v23 = vrot.slane %v1024_v25, 4  ;;  %v1656_v19 = vsel %vm4222_vm2, %v1651_v39, %v5574_v5  ;;  %v1666_v35 = vsel %vm4222_vm2, %v1661_v48, %v1665_v37  ;;  %v1032_v51 = vrot.slane %v1030_v63, 5  ;;  %v5635_v25 = vld [vmem:[%s4194_s25 + $0x7c] sm:$0xf] }
 0x13f   : > { %v2632_v55 = vpop.permute.xlu1 %2631  ;;  %v3003_v29 = vsel %vm2973_vm8, %v5289_v32, %v2472_v43  ;;  %v1018_v40 = vrot.slane %v1017_v34, 4  ;;  %v3755_v54 = vrot.slane %v3739_v61, 9  ;;  %v3666_v14 = vrot.slane %v3650_v62, 9  ;;  %v5682_v62 = vld [vmem:[%s4194_s25 + $0x80] sm:$0x1] }
 0x140   : > { %v1027_v8 = vor.u32 %v1026_v23, %v5604_v53  ;;  %v1203_v43 = vshrl.u32 %v3619_v52, 16  ;;  %v1206_v4 = vshll.u32 %v3619_v52, 16  ;;  %v2845_v38 = vpack.c.b16 %v2816_v59, %v2815_v17  ;;  %v3699_v17 = vld [vmem:[%s4194_s25 + $0x84] sm:$0xf] }
 0x141   : > { %v2773_v2 = vpack.c.b16 %v2752_v50, %v2751_v31  ;;  %v5639_v33 = vunpack.c.l.b16 %v1656_v19  ;;  %v3036_v0 = vsel %vm3006_vm9, %v3003_v29, %v5413_v12  ;;  %v5644_v23 = vunpack.c.l.b16 %v1666_v35 }
 0x142   : > { %v1028_v32 = vrot.slane %v1027_v8, 4  ;;  %v2118_v22 = vrot.slane %v5543_v16, 5  ;;  %v1023_v7 = vsel %vm4222_vm2, %v1018_v40, %v5604_v53  ;;  %v1212_v37 = vshll.u32 %v5635_v25, 16 }
 0x143   : > { %2719 = vrot.lane.b32.xlu2 %v4014_v1, %s4137_s7  ;;  %v2117_v1 = vrot.slane %v2115_v24, 4  ;;  %v5656_v12 = vsel %vm4424_vm5, %v3755_v54, %v2115_v24  ;;  %v1205_v16 = vrot.slane %v1203_v43, 4  ;;  %v1208_v48 = vrot.slane %v1206_v4, 5 }
 0x144   : > { %2527 = vrot.lane.b32.xlu0 %v2509_v3, %s4134_s29  ;;  %v5630_v27 = vpop.permute.xlu2 %2725  ;;  %v1443_v3 = vrot.slane %v5584_v58, 5  ;;  %v1033_v39 = vsel %vm4222_vm2, %v1028_v32, %v1032_v51  ;;  %v1216_v58 = vshrl.u32 %v5635_v25, 16  ;;  %v3020_v53 = vsel %vm3006_vm9, %v2987_v57, %v5568_v30  ;;  %v5674_v57 = vld [vmem:[%s4194_s25 + $0x88] sm:$0xf] }
 0x145   : > { %2703 = vrot.lane.b32.xlu1 %v4006_v15, %s4137_s7  ;;  %v3069_v34 = vsel %vm3039_vm10, %v3036_v0, %v2632_v55  ;;  %v1446_v63 = vrot.slane %v5600_v18, 5  ;;  %v2765_v59 = vpack.c.b16 %v5644_v23, %v5639_v33  ;;  %v2477_v31 = vunpack.c.l.b16 %v1023_v7  ;;  %v3730_v7 = vld [vmem:[%s4194_s25 + $0x24] sm:$0xe] }
 0x146   : > { %v2616_v49 = vpop.permute.xlu0 %2615  ;;  %v5660_v15 = vsel %vm4424_vm5, %v3666_v14, %v1443_v3  ;;  %v1445_v8 = vrot.slane %v1443_v3, 4  ;;  %v2478_v50 = vunpack.c.l.b16 %v1033_v39  ;;  %v2119_v30 = vsel %vm4424_vm5, %v2117_v1, %v2118_v22  ;;  %v3601_v3 = vld [vmem:[%s4194_s25 + $0xc] sm:$0xf]  ;;  %v3997_v1 = vld [vmem:[%s4194_s25 + $0x78] sm:$0xff] }
 0x147   : > { %v5637_v5 = vpop.permute.xlu1 %2791  ;;  %v2831_v18 = vunpack.c.l.b16 %v5656_v12  ;;  %v2557_v61 = vunpack.c.l.b16 %v5660_v15  ;;  %v5684_v52 = vrot.slane %v1212_v37, 5  ;;  %v1218_v29 = vrot.slane %v1216_v58, 4  ;;  %v5708_v58 = vld [vmem:[%s4194_s25 + $0x2c] sm:$0x1] }
 0x148   : > { %v3053_v19 = vsel %vm3039_vm10, %v3020_v53, %v2616_v49  ;;  %v1209_v35 = vor.u32 %v1208_v48, %v1205_v16  ;;  %v1812_v40 = vshrl.u32 %v3699_v17, 16  ;;  %v1815_v32 = vshll.u32 %v3699_v17, 16 }
 0x149   : > { %v2832_v14 = vunpack.c.l.b16 %v2119_v30  ;;  %v1447_v43 = vsel %vm4424_vm5, %v1445_v8, %v1446_v63  ;;  %v1821_v4 = vshll.u32 %v5674_v57, 16  ;;  %v2508_v49 = vpack.c.b16 %v2478_v50, %v2477_v31  ;;  %v5715_v50 = vld [vmem:[%s4194_s25 + $0x8c] sm:$0x1] }
 0x14a   : > { %v3086_v0 = vsel %vm3072_vm11, %v3053_v19, %v5472_v20  ;;  %v1219_v22 = vor.u32 %v1218_v29, %v5684_v52  ;;  %v1825_v39 = vshrl.u32 %v5674_v57, 16  ;;  %v1814_v12 = vrot.slane %v1812_v40, 4  ;;  %v3658_v40 = vld [vmem:[%s4194_s25 + $0x78] sm:$0xe] }
 0x14b   : > { %2863 = vrot.lane.b32.xlu2 %v2845_v38, %s4138_s8  ;;  %v1817_v16 = vrot.slane %v1815_v32, 5  ;;  %v5710_v48 = vrot.slane %v1821_v4, 5  ;;  %v987_v53 = vshrl.u32 %v3601_v3, 16  ;;  %v2558_v8 = vunpack.c.l.b16 %v1447_v43 }
 0x14c   : > { %2623 = vrot.lane.b32.xlu0 %v2597_v45, %s4135_s30  ;;  %v5677_v55 = vpop.permute.xlu2 %2869  ;;  %v5687_v45 = vld [vmem:[%s4194_s25 + $0x28] sm:$0xf]  ;;  %v1827_v20 = vrot.slane %v1825_v39, 4  ;;  %v3746_v17 = vrot.slane %v3730_v7, 9  ;;  %v3119_v30 = vsel %vm3105_vm12, %v3086_v0, %v5637_v5  ;;  %v2853_v29 = vpack.c.b16 %v2832_v14, %v2831_v18 }
 0x14d   : > { %2799 = vrot.lane.b32.xlu1 %v2773_v2, %s4136_s6  ;;  %v1222_v2 = vshll.u32 %v5682_v62, 16  ;;  %v2052_v33 = vrot.slane %v5687_v45, 5  ;;  %v989_v43 = vrot.slane %v987_v53, 4  ;;  %v1831_v14 = vshll.u32 %v5715_v50, 16  ;;  %v3683_v53 = vld [vmem:[%s4194_s25 + $0x24] sm:$0xf] }
 0x14e   : > { %v2728_v24 = vpop.permute.xlu0 %2727  ;;  %v1828_v18 = vor.u32 %v1827_v20, %v5710_v48  ;;  %v1502_v7 = vrot.slane %v5682_v62, 5 }
 0x14f   : > { %v3102_v51 = vsel %vm3072_vm11, %v3069_v34, %v2728_v24  ;;  %v2888_v54 = vpop.permute.xlu1 %2887  ;;  %v990_v34 = vshll.u32 %v3601_v3, 16  ;;  %v1224_v63 = vrot.slane %v1222_v2, 5  ;;  %v2054_v31 = vrot.slane %v2052_v33, 4 }
 0x150   : > { %v3135_v38 = vsel %vm3105_vm12, %v3102_v51, %v5503_v28  ;;  %v1210_v28 = vrot.slane %v1209_v35, 4  ;;  %v1220_v24 = vrot.slane %v1219_v22, 4  ;;  %v2055_v35 = vrot.slane %v5708_v58, 5 }
 0x151   : > { %v3168_v23 = vsel %vm3138_vm13, %v3135_v38, %v2888_v54  ;;  %v1818_v54 = vor.u32 %v1817_v16, %v1814_v12  ;;  %v992_v4 = vrot.slane %v990_v34, 5  ;;  %v2588_v3 = vpack.c.b16 %v2558_v8, %v2557_v61 }
 0x152   : > { %v3201_v37 = vsel %vm3171_vm14, %v3168_v23, 0  ;;  %v1215_v51 = vsel %vm4222_vm2, %v1210_v28, %v5684_v52  ;;  %v1225_v23 = vsel %vm4222_vm2, %v1220_v24, %v1224_v63  ;;  %v1499_v22 = vrot.slane %v5635_v25, 5 }
 0x153   : > { %3265 = vmatpush.bf16.xpose.msra.mxu1 %v3201_v37  ;;  %4031 = vmatpush.bf16.xpose.msra.mxu3 %v3201_v37  ;;  %v2053_v15 = vsel %vm4424_vm5, %v3746_v17, %v2052_v33  ;;  %v2056_v61 = vsel %vm4424_vm5, %v2054_v31, %v2055_v35  ;;  %v1819_v39 = vrot.slane %v1818_v54, 4  ;;  %v993_v37 = vor.u32 %v992_v4, %v989_v43  ;;  %v5754_v33 = vld [vmem:[%s4194_s25 + $0x14] sm:$0x1]  ;;  %v5768_v43 = vld [vmem:[%s4194_s25 + $0x70] sm:$0xf] }
 0x154   : > { %2783 = vrot.lane.b32.xlu0 %v2765_v59, %s4136_s6  ;;  %2525 = vrot.lane.b32.xlu2 %v2508_v49, %s4134_s29  ;;  %v5720_v19 = vpop.permute.xlu2 %2531  ;;  %v5724_v59 = vld [vmem:[%s4194_s25 + $0x10] sm:$0xf]  ;;  %v3674_v49 = vrot.slane %v3658_v40, 9  ;;  %v1829_v28 = vrot.slane %v1828_v18, 4  ;;  %v1833_v12 = vrot.slane %v1831_v14, 5  ;;  %v1501_v20 = vrot.slane %v1499_v22, 4 }
 0x155   : > { %2461 = vrot.lane.b32.xlu1 %v3997_v1, %s4133_s28  ;;  %v996_v0 = vshll.u32 %v5724_v59, 16  ;;  %v1000_v52 = vshrl.u32 %v5724_v59, 16  ;;  %v2493_v1 = vunpack.c.l.b16 %v1215_v51  ;;  %v2494_v25 = vunpack.c.l.b16 %v1225_v23 }
 0x156   : > { %v2872_v32 = vpop.permute.xlu0 %2871  ;;  %v1500_v16 = vsel %vm4424_vm5, %v3674_v49, %v1499_v22  ;;  %v1503_v63 = vsel %vm4424_vm5, %v1501_v20, %v1502_v7  ;;  %v1824_v31 = vsel %vm4222_vm2, %v1819_v39, %v5710_v48  ;;  %v1620_v24 = vshrl.u32 %v3683_v53, 16  ;;  %v4013_v49 = vld [vmem:[%s4194_s25 + $0x84] sm:$0xff] }
 0x157   : > { %v3152_v5 = vsel %vm3138_vm13, %v3119_v30, %v2872_v32  ;;  %v5731_v38 = vpop.permute.xlu1 %2549  ;;  %v998_v62 = vrot.slane %v996_v0, 5  ;;  %v1002_v34 = vrot.slane %v1000_v52, 4  ;;  %v2573_v8 = vunpack.c.l.b16 %v1500_v16  ;;  %v5789_v16 = vld [vmem:[%s4194_s25 + $0x74] sm:$0x1] }
 0x158   : > { %v3185_v2 = vsel %vm3171_vm14, %v3152_v5, 0  ;;  %v994_v30 = vrot.slane %v993_v37, 4  ;;  %v2813_v32 = vunpack.c.l.b16 %v2053_v15  ;;  %v2814_v51 = vunpack.c.l.b16 %v2056_v61 }
 0x159   : > { %3246 = vmatpush.bf16.xpose.msra.mxu0 %v3185_v2  ;;  %4023 = vmatpush.bf16.xpose.msra.mxu2 %v3185_v2  ;;  %v1834_v54 = vsel %vm4222_vm2, %v1829_v28, %v1833_v12  ;;  %v1623_v4 = vshll.u32 %v3683_v53, 16  ;;  %v2516_v5 = vpack.c.b16 %v2494_v25, %v2493_v1  ;;  %v1003_v18 = vor.u32 %v1002_v34, %v998_v62  ;;  %v3657_v1 = vld [vmem:[%s4194_s25 + $0x6c] sm:$0xe] }
 0x15a   : > { %v1006_v48 = vshll.u32 %v5754_v33, 16  ;;  %v5772_v2 = vunpack.c.l.b16 %v1824_v31  ;;  %v999_v0 = vsel %vm4222_vm2, %v994_v30, %v998_v62  ;;  %v1492_v52 = vrot.slane %v5768_v43, 5  ;;  %v3738_v31 = vld [vmem:[%s4194_s25 + $0x84] sm:$0xe] }
 0x15b   : > { %v1622_v23 = vrot.slane %v1620_v24, 4  ;;  %v1625_v22 = vrot.slane %v1623_v4, 5  ;;  %v1629_v7 = vshll.u32 %v5687_v45, 16  ;;  %v1633_v15 = vshrl.u32 %v5687_v45, 16  ;;  %v5795_v45 = vld [vmem:[%s4194_s25 + $0xc] sm:$0xe] }
 0x15c   : > { %2879 = vrot.lane.b32.xlu0 %v2853_v29, %s4138_s8  ;;  %v2574_v29 = vunpack.c.l.b16 %v1503_v63  ;;  %v5761_v35 = vpop.permute.xlu2 %2627  ;;  %v1639_v61 = vshll.u32 %v5708_v58, 16  ;;  %v3001_v39 = vsel %vm2973_vm8, %v5043_v10, %v5556_v56  ;;  %v2844_v37 = vpack.c.b16 %v2814_v51, %v2813_v32  ;;  %v3681_v56 = vld [vmem:[%s4194_s25 + $0x18] sm:$0xf]  ;;  %v5807_v51 = vld [vmem:[%s4194_s25 + $0x1c] sm:$0xf]  ;;  %v4005_v4 = vld [vmem:[%s4194_s25 + $0x24] sm:$0xff] }
 0x15d   : > { %2605 = vrot.lane.b32.xlu1 %v2588_v3, %s4135_s30  ;;  %v5774_v3 = vunpack.c.l.b16 %v1834_v54  ;;  %v1004_v28 = vrot.slane %v1003_v18, 4  ;;  %v1008_v12 = vrot.slane %v1006_v48, 5  ;;  %v3034_v20 = vsel %vm3006_vm9, %v3001_v39, %v5731_v38 }
 0x15e   : > { %v2534_v17 = vpop.permute.xlu0 %2533  ;;  %v2596_v14 = vpack.c.b16 %v2574_v29, %v2573_v8  ;;  %v1626_v58 = vor.u32 %v1625_v22, %v1622_v23  ;;  %v1631_v53 = vrot.slane %v1629_v7, 5  ;;  %v1635_v10 = vrot.slane %v1633_v15, 4 }
 0x15f   : > { %v5763_v40 = vpop.permute.xlu1 %2709  ;;  %v2772_v62 = vpack.c.b16 %v5774_v3, %v5772_v2  ;;  %v5800_v34 = vunpack.c.l.b16 %v999_v0  ;;  %v3673_v8 = vrot.slane %v3657_v1, 9  ;;  %v1494_v63 = vrot.slane %v1492_v52, 4 }
 0x160   : > { %2621 = vrot.lane.b32.xlu2 %v2596_v14, %s4135_s30  ;;  %v1495_v30 = vrot.slane %v5789_v16, 5  ;;  %v1627_v29 = vrot.slane %v1626_v58, 4  ;;  %v1636_v24 = vor.u32 %v1635_v10, %v1631_v53  ;;  %v1641_v32 = vrot.slane %v1639_v61, 5 }
 0x161   : > { %v3018_v54 = vsel %vm3006_vm9, %v5354_v42, %v2534_v17  ;;  %v3665_v18 = vrot.slane %v5795_v45, 9  ;;  %v1596_v48 = vshrl.u32 %v3681_v56, 16  ;;  %v1599_v23 = vshll.u32 %v3681_v56, 16 }
 0x162   : > { %v1637_v0 = vrot.slane %v1636_v24, 4  ;;  %v3754_v1 = vrot.slane %v3738_v31, 9  ;;  %v1436_v22 = vrot.slane %v5724_v59, 5  ;;  %v1605_v42 = vshll.u32 %v5807_v51, 16  ;;  %v5844_v24 = vld [vmem:[%s4194_s25 + $0x20] sm:$0x1] }
 0x163   : > { %v1609_v17 = vshrl.u32 %v5807_v51, 16  ;;  %v2108_v39 = vrot.slane %v5674_v57, 5  ;;  %v1493_v59 = vsel %vm4424_vm5, %v3673_v8, %v1492_v52  ;;  %v1496_v45 = vsel %vm4424_vm5, %v1494_v63, %v1495_v30 }
 0x164   : > { %2541 = vrot.lane.b32.xlu0 %v2516_v5, %s4134_s29  ;;  %v1009_v5 = vsel %vm4222_vm2, %v1004_v28, %v1008_v12  ;;  %v5815_v14 = vpop.permute.xlu2 %2787  ;;  %v1642_v61 = vsel %vm4222_vm2, %v1637_v0, %v1641_v32  ;;  %v2111_v28 = vrot.slane %v5715_v50, 5  ;;  %v3051_v12 = vsel %vm3039_vm10, %v3018_v54, %v5592_v47 }
 0x165   : > { %2717 = vrot.lane.b32.xlu1 %v4013_v49, %s4137_s7  ;;  %v1632_v49 = vsel %vm4222_vm2, %v1627_v29, %v1631_v53  ;;  %v2476_v15 = vunpack.c.l.b16 %v1009_v5  ;;  %v2734_v58 = vunpack.c.l.b16 %v1642_v61  ;;  %v1598_v53 = vrot.slane %v1596_v48, 4  ;;  %v3617_v48 = vld [vmem:[%s4194_s25 + $0x6c] sm:$0xf] }
 0x166   : > { %v2630_v25 = vpop.permute.xlu0 %2629  ;;  %v2733_v7 = vunpack.c.l.b16 %v1632_v49  ;;  %v1601_v10 = vrot.slane %v1599_v23, 5  ;;  %v2109_v57 = vsel %vm4424_vm5, %v3754_v1, %v2108_v39  ;;  %v2110_v50 = vrot.slane %v2108_v39, 4 }
 0x167   : > { %v5803_v38 = vpop.permute.xlu1 %2805  ;;  %v3084_v47 = vsel %vm3072_vm11, %v3051_v12, %v5763_v40  ;;  %v5838_v52 = vrot.slane %v1605_v42, 5  ;;  %v1611_v8 = vrot.slane %v1609_v17, 4  ;;  %v2572_v29 = vunpack.c.l.b16 %v1496_v45 }
 0x168   : > { %v2764_v31 = vpack.c.b16 %v2734_v58, %v2733_v7  ;;  %v2112_v32 = vsel %vm4424_vm5, %v2110_v50, %v2111_v28  ;;  %v3067_v54 = vsel %vm3039_vm10, %v3034_v20, %v2630_v25  ;;  %v2507_v0 = vpack.c.b16 %v2476_v15, %v5800_v34  ;;  %v3698_v28 = vld [vmem:[%s4194_s25 + $0x7c] sm:$0xf] }
 0x169   : > { %v2830_v5 = vunpack.c.l.b16 %v2112_v32  ;;  %v1602_v23 = vor.u32 %v1601_v10, %v1598_v53  ;;  %v5857_v1 = vsel %vm4424_vm5, %v3665_v18, %v1436_v22  ;;  %v1438_v20 = vrot.slane %v1436_v22, 4 }
 0x16a   : > { %2781 = vrot.lane.b32.xlu2 %v2764_v31, %s4136_s6  ;;  %v1615_v25 = vshll.u32 %v5844_v24, 16  ;;  %v3100_v7 = vsel %vm3072_vm11, %v3067_v54, %v5630_v27  ;;  %v1179_v34 = vshrl.u32 %v3617_v48, 16  ;;  %v1182_v15 = vshll.u32 %v3617_v48, 16  ;;  %v3996_v31 = vld [vmem:[%s4194_s25 + $0x6c] sm:$0xff] }
 0x16b   : > { %v3133_v61 = vsel %vm3105_vm12, %v3100_v7, %v5803_v38  ;;  %v1439_v18 = vrot.slane %v5754_v33, 5  ;;  %v1188_v39 = vshll.u32 %v5768_v43, 16  ;;  %v1603_v27 = vrot.slane %v1602_v23, 4 }
 0x16c   : > { %2701 = vrot.lane.b32.xlu0 %v4005_v4, %s4137_s7  ;;  %v2829_v4 = vunpack.c.l.b16 %v2109_v57  ;;  %v5863_v42 = vpop.permute.xlu2 %2883  ;;  %v1181_v12 = vrot.slane %v1179_v34, 4  ;;  %v1192_v38 = vshrl.u32 %v5768_v43, 16  ;;  %v1617_v53 = vrot.slane %v1615_v25, 5 }
 0x16d   : > { %2861 = vrot.lane.b32.xlu1 %v2844_v37, %s4138_s8  ;;  %v2571_v37 = vunpack.c.l.b16 %v1493_v59  ;;  %v1184_v59 = vrot.slane %v1182_v15, 5  ;;  %v1190_v2 = vrot.slane %v1188_v39, 5  ;;  %v1198_v3 = vshll.u32 %v5789_v16, 16 }
 0x16e   : > { %v2790_v56 = vpop.permute.xlu0 %2789  ;;  %v2852_v22 = vpack.c.b16 %v2830_v5, %v2829_v4  ;;  %v2555_v10 = vunpack.c.l.b16 %v5857_v1  ;;  %v1194_v50 = vrot.slane %v1192_v38, 4  ;;  %v1440_v43 = vsel %vm4424_vm5, %v1438_v20, %v1439_v18  ;;  %v3737_v4 = vld [vmem:[%s4194_s25 + $0x78] sm:$0xe] }
 0x16f   : > { %v3117_v63 = vsel %vm3105_vm12, %v3084_v47, %v2790_v56  ;;  %v5841_v30 = vpop.permute.xlu1 %2467  ;;  %v2595_v17 = vpack.c.b16 %v2572_v29, %v2571_v37  ;;  %v1185_v57 = vor.u32 %v1184_v59, %v1181_v12  ;;  %v3697_v47 = vld [vmem:[%s4194_s25 + $0x78] sm:$0xf]  ;;  %v2101_v16 = vrot.slane %v3698_v28, 5 }
 0x170   : > { %v3150_v40 = vsel %vm3138_vm13, %v3117_v63, %v5677_v55  ;;  %v1612_v55 = vor.u32 %v1611_v8, %v5838_v52  ;;  %v1788_v8 = vshrl.u32 %v3697_v47, 16  ;;  %v1195_v37 = vor.u32 %v1194_v50, %v1190_v2  ;;  %v3729_v50 = vld [vmem:[%s4194_s25 + $0x18] sm:$0xe] }
 0x171   : > { %v3183_v49 = vsel %vm3171_vm14, %v3150_v40, 0  ;;  %v1186_v63 = vrot.slane %v1185_v57, 4  ;;  %v1200_v29 = vrot.slane %v1198_v3, 5  ;;  %v1791_v32 = vshll.u32 %v3697_v47, 16 }
 0x172   : > { %3247 = vmatpush.bf16.xpose.msra.mxu0 %v3183_v49  ;;  %4024 = vmatpush.bf16.xpose.msra.mxu2 %v3183_v49  ;;  %v1613_v58 = vrot.slane %v1612_v55, 4  ;;  %v1608_v54 = vsel %vm4222_vm2, %v1603_v27, %v5838_v52  ;;  %v1797_v5 = vshll.u32 %v3698_v28, 16  ;;  %v1801_v48 = vshrl.u32 %v3698_v28, 16 }
 0x173   : > { %2877 = vrot.lane.b32.xlu2 %v2852_v22, %s4138_s8  ;;  %v2556_v49 = vunpack.c.l.b16 %v1440_v43  ;;  %v1191_v23 = vsel %vm4222_vm2, %v1186_v63, %v1190_v2  ;;  %v1196_v1 = vrot.slane %v1195_v37, 4  ;;  %v1790_v20 = vrot.slane %v1788_v8, 4 }
 0x174   : > { %2797 = vrot.lane.b32.xlu0 %v2772_v62, %s4136_s6  ;;  %v1618_v40 = vsel %vm4222_vm2, %v1613_v58, %v1617_v53  ;;  %v2491_v55 = vunpack.c.l.b16 %v1191_v23  ;;  %v1793_v25 = vrot.slane %v1791_v32, 5  ;;  %v1799_v7 = vrot.slane %v1797_v5, 5  ;;  %v5897_v52 = vpop.permute.xlu2 %2545  ;;  %v4004_v32 = vld [vmem:[%s4194_s25 + $0x18] sm:$0xff] }
 0x175   : > { %2523 = vrot.lane.b32.xlu1 %v2507_v0, %s4134_s29  ;;  %v3721_v0 = vld [vmem:[%s4194_s25 + $0x80] sm:$0x1]  ;;  %v1803_v34 = vrot.slane %v1801_v48, 4  ;;  %v2731_v15 = vunpack.c.l.b16 %v1608_v54  ;;  %v3753_v18 = vrot.slane %v3737_v4, 9  ;;  %v1201_v22 = vsel %vm4222_vm2, %v1196_v1, %v1200_v29  ;;  %v4012_v4 = vld [vmem:[%s4194_s25 + $0x78] sm:$0xff]  ;;  %s3969_s25 = sshll.u32 %s6150_s18, 4 }
 0x176   : > { %v2886_v45 = vpop.permute.xlu0 %2885  ;;  %v2103_v27 = vrot.slane %v2101_v16, 4  ;;  %v2104_v28 = vrot.slane %v3721_v0, 5  ;;  %v2492_v12 = vunpack.c.l.b16 %v1201_v22  ;;  %v2587_v59 = vpack.c.b16 %v2556_v49, %v2555_v10 }
 0x177   : > { %v3166_v33 = vsel %vm3138_vm13, %v3133_v61, %v2886_v45  ;;  %v5878_v62 = vpop.permute.xlu1 %2611  ;;  %v2732_v61 = vunpack.c.l.b16 %v1618_v40  ;;  %v1794_v58 = vor.u32 %v1793_v25, %v1790_v20  ;;  %v1804_v53 = vor.u32 %v1803_v34, %v1799_v7 }
 0x178   : > { %v3199_v56 = vsel %vm3171_vm14, %v3166_v33, 0  ;;  %v2515_v45 = vpack.c.b16 %v2492_v12, %v2491_v55  ;;  %v1807_v2 = vshll.u32 %v3721_v0, 16  ;;  %v2045_v33 = vrot.slane %v5807_v51, 5 }
 0x179   : > { %3266 = vmatpush.bf16.xpose.msra.mxu1 %v3199_v56  ;;  %4032 = vmatpush.bf16.xpose.msra.mxu3 %v3199_v56  ;;  %v2763_v3 = vpack.c.b16 %v2732_v61, %v2731_v15  ;;  %v2105_v57 = vsel %vm4424_vm5, %v2103_v27, %v2104_v28  ;;  %v3016_v10 = vsel %vm3006_vm9, %v5379_v13, %v5720_v19  ;;  %v1795_v56 = vrot.slane %v1794_v58, 4 }
 0x17a   : > { %v1809_v43 = vrot.slane %v1807_v2, 5  ;;  %v2828_v51 = vunpack.c.l.b16 %v2105_v57  ;;  %v2047_v8 = vrot.slane %v2045_v33, 4  ;;  %v2048_v63 = vrot.slane %v5844_v24, 5 }
 0x17b   : > { %2539 = vrot.lane.b32.xlu2 %v2515_v45, %s4134_s29  ;;  %v3049_v37 = vsel %vm3039_vm10, %v3016_v10, %v5878_v62  ;;  %v2999_v40 = vsel %vm2973_vm8, %v5208_v41, %v5841_v30  ;;  %v1800_v24 = vsel %vm4222_vm2, %v1795_v56, %v1799_v7 }
 0x17c   : > { %2459 = vrot.lane.b32.xlu0 %v3996_v31, %s4133_s28  ;;  %v1805_v31 = vrot.slane %v1804_v53, 4  ;;  %v2706_v13 = vpop.permute.xlu2 %2705  ;;  %v2049_v23 = vsel %vm4424_vm5, %v2047_v8, %v2048_v63  ;;  %s6065_s28 = scalar_lea.vmem %s6130_s3, %s3969_s25 }
 0x17d   : > { %2619 = vrot.lane.b32.xlu1 %v2595_v17, %s4135_s30  ;;  %v2102_v17 = vsel %vm4424_vm5, %v3753_v18, %v2101_v16  ;;  %v3745_v16 = vrot.slane %v3729_v50, 9  ;;  %v2812_v20 = vunpack.c.l.b16 %v2049_v23 }
 0x17e   : > { %v2548_v39 = vpop.permute.xlu0 %2547  ;;  %v2827_v47 = vunpack.c.l.b16 %v2102_v17  ;;  %v1810_v62 = vsel %vm4222_vm2, %v1805_v31, %v1809_v43 }
 0x17f   : > { %v2724_v38 = vpop.permute.xlu1 %2723  ;;  %v2046_v0 = vsel %vm4424_vm5, %v3745_v16, %v2045_v33  ;;  %v3032_v41 = vsel %vm3006_vm9, %v2999_v40, %v2548_v39  ;;  %v2748_v26 = vunpack.c.l.b16 %v1810_v62 }
 0x180   : > { %v2851_v49 = vpack.c.b16 %v2828_v51, %v2827_v47  ;;  %v2811_v1 = vunpack.c.l.b16 %v2046_v0  ;;  %v3065_v55 = vsel %vm3039_vm10, %v3032_v41, %v5761_v35 }
 0x181   : > { %v3098_v60 = vsel %vm3072_vm11, %v3065_v55, %v2724_v38 }
 0x182   : > { %v2843_v18 = vpack.c.b16 %v2812_v20, %v2811_v1 }
 0x183   : > { %2699 = vrot.lane.b32.xlu2 %v4004_v32, %s4137_s7 }
 0x184   : > { %2603 = vrot.lane.b32.xlu0 %v2587_v59, %s4135_s30  ;;  %v2802_v22 = vpop.permute.xlu2 %2801 }
 0x185   : > { %2779 = vrot.lane.b32.xlu1 %v2763_v3, %s4136_s6 }
 0x186   : > { %v2708_v29 = vpop.permute.xlu0 %2707 }
 0x187   : > { %v3082_v19 = vsel %vm3072_vm11, %v3049_v37, %v2708_v29  ;;  %v2868_v54 = vpop.permute.xlu1 %2867 }
 0x188   : > { %v3115_v5 = vsel %vm3105_vm12, %v3082_v19, %v5815_v14  ;;  %v2747_v14 = vunpack.c.l.b16 %v1800_v24 }
 0x189   : > { %v3148_v48 = vsel %vm3138_vm13, %v3115_v5, %v2868_v54 }
 0x18a   : > { %v3181_v30 = vsel %vm3171_vm14, %v3148_v48, 0  ;;  %v2771_v15 = vpack.c.b16 %v2748_v26, %v2747_v14 }
 0x18b   : > { %3248 = vmatpush.bf16.xpose.msra.mxu0 %v3181_v30  ;;  %4025 = vmatpush.bf16.xpose.msra.mxu2 %v3181_v30 }
 0x18c   : > { %2715 = vrot.lane.b32.xlu0 %v4012_v4, %s4137_s7  ;;  %2795 = vrot.lane.b32.xlu2 %v2771_v15, %s4136_s6  ;;  %v2464_v28 = vpop.permute.xlu2 %2463  ;;  %s320_s6 = scalar_lea.vmem %s6132_s5, %s3969_s25  ;;  %s3970_s7 = sshll.u32 %s6150_s18, 3 }
 0x18d   : > { %2875 = vrot.lane.b32.xlu1 %v2851_v49, %s4138_s8  ;;  %v2995_v5 = vsel %vm2973_vm8, %v5009_v21, %v2464_v28  ;;  %s310_s10 = scalar_lea.vmem %s6131_s4, %s3970_s7 }
 0x18e   : > { %v2804_v25 = vpop.permute.xlu0 %2803 }
 0x18f   : > { %v3131_v7 = vsel %vm3105_vm12, %v3098_v60, %v2804_v25  ;;  %v2530_v34 = vpop.permute.xlu1 %2529 }
 0x190   : > { %v3164_v61 = vsel %vm3138_vm13, %v3131_v7, %v5863_v42  ;;  %v3014_v33 = vsel %vm3006_vm9, %v5149_v11, %v2530_v34 }
 0x191   : > { %v3197_v39 = vsel %vm3171_vm14, %v3164_v61, 0 }
 0x192   : > { %3267 = vmatpush.bf16.xpose.msra.mxu1 %v3197_v39  ;;  %4033 = vmatpush.bf16.xpose.msra.mxu3 %v3197_v39 }
 0x194   : > { %2859 = vrot.lane.b32.xlu0 %v2843_v18, %s4138_s8 }
 0x195   : > { %v2608_v45 = vpop.permute.xlu2 %2607 }
 0x196   : > { %v2466_v35 = vpop.permute.xlu0 %2465 }
 0x197   : > { %v2626_v27 = vpop.permute.xlu1 %2625  ;;  %v2997_v38 = vsel %vm2973_vm8, %v5255_v46, %v2466_v35 }
 0x198   : > { %v3030_v42 = vsel %vm3006_vm9, %v2997_v38, %v5897_v52 }
 0x199   : > { %v3063_v58 = vsel %vm3039_vm10, %v3030_v42, %v2626_v27 }
 0x19d   : > { %v2720_v56 = vpop.permute.xlu2 %2719 }
 0x19e   : > { %v2610_v12 = vpop.permute.xlu0 %2609 }
 0x19f   : > { %v2786_v59 = vpop.permute.xlu1 %2785  ;;  %v3047_v50 = vsel %vm3039_vm10, %v3014_v33, %v2610_v12 }
 0x1a0   : > { %v3080_v52 = vsel %vm3072_vm11, %v3047_v50, %v2706_v13 }
 0x1a1   : > { %v3113_v10 = vsel %vm3105_vm12, %v3080_v52, %v2786_v59 }
 0x1a5   : > { %v2864_v8 = vpop.permute.xlu2 %2863 }
 0x1a6   : > { %v2722_v53 = vpop.permute.xlu0 %2721 }
 0x1a7   : > { %v3096_v2 = vsel %vm3072_vm11, %v3063_v58, %v2722_v53  ;;  %v2882_v3 = vpop.permute.xlu1 %2881  ;;  %v3210_v53 = vld [vmem:[%s6129_s2 + $0x8] sm:$0xff] }
 0x1a8   : > { %v3129_v17 = vsel %vm3105_vm12, %v3096_v2, %v2802_v22  ;;  %v3212_v2 = vld [vmem:[%s6129_s2 + $0x18] sm:$0xff] }
 0x1a9   : > { %v3162_v57 = vsel %vm3138_vm13, %v3129_v17, %v2882_v3  ;;  %v4139_v3 = vmov 0   ;;  %v3209_v17 = vld [vmem:[%s6129_s2] sm:$0xff] }
 0x1aa   : > { %v3195_v46 = vsel %vm3171_vm14, %v3162_v57, 0  ;;  %4073 = vset.pattern.permute.xlu0 %v4139_v3  ;;  %4074 = vset.pattern.permute.xlu1 %v4139_v3 }
 0x1ab   : > { %3268 = vmatpush.bf16.xpose.msra.mxu1 %v3195_v46  ;;  %4034 = vmatpush.bf16.xpose.msra.mxu3 %v3195_v46  ;;  %v3211_v46 = vld [vmem:[%s6129_s2 + $0x10] sm:$0xff] }
 0x1ac   : > { %3220 = vperm.xlu0 %4073, %v3210_v53   ;;  %3230 = vperm.xlu1 %4074, %v3212_v2  }
 0x1ad   : > { %4072 = vset.pattern.permute.xlu2 %v4139_v3 }
 0x1ae   : > { %v2866_v47 = vpop.permute.xlu0 %2865  ;;  %v2526_v32 = vpop.permute.xlu2 %2525  ;;  %3215 = vperm.xlu2 %4072, %v3209_v17  }
 0x1af   : > { %v3146_v31 = vsel %vm3138_vm13, %v3113_v10, %v2866_v47  ;;  %v2544_v43 = vpop.permute.xlu1 %2543  ;;  %v3010_v55 = vsel %vm3006_vm9, %v5344_v6, %v2526_v32 }
 0x1b0   : > { %v3179_v51 = vsel %vm3171_vm14, %v3146_v31, 0  ;;  %v3028_v62 = vsel %vm3006_vm9, %v2995_v5, %v2544_v43 }
 0x1b1   : > { %3249 = vmatpush.bf16.xpose.msra.mxu0 %v3179_v51  ;;  %4026 = vmatpush.bf16.xpose.msra.mxu2 %v3179_v51 }
 0x1b6   : > { %v2528_v11 = vpop.permute.xlu0 %2527  ;;  %3225 = vperm.xlu2 %4072, %v3211_v46  }
 0x1b7   : > { %v2704_v16 = vpop.permute.xlu1 %2703  ;;  %v3012_v29 = vsel %vm3006_vm9, %v5293_v44, %v2528_v11 }
 0x1b8   : > { %v3045_v13 = vsel %vm3039_vm10, %v3012_v29, %v2608_v45 }
 0x1b9   : > { %v3078_v19 = vsel %vm3072_vm11, %v3045_v13, %v2704_v16  ;;  %v6138_v16 = vld [vmem:[#allocation2_spill] sm:$0xff] }
 0x1ba   : > { %v2622_v49 = vpop.permute.xlu2 %2621 }
 0x1be   : > { %v2624_v63 = vpop.permute.xlu0 %2623 }
 0x1bf   : > { %v2800_v37 = vpop.permute.xlu1 %2799  ;;  %v3061_v44 = vsel %vm3039_vm10, %v3028_v62, %v2624_v63 }
 0x1c0   : > { %v3094_v0 = vsel %vm3072_vm11, %v3061_v44, %v2720_v56 }
 0x1c1   : > { %v3127_v23 = vsel %vm3105_vm12, %v3094_v0, %v2800_v37 }
 0x1c4   : > { %v2782_v26 = vpop.permute.xlu2 %2781 }
 0x1c6   : > { %v2784_v54 = vpop.permute.xlu0 %2783 }
 0x1c7   : > { %v3111_v40 = vsel %vm3105_vm12, %v3078_v19, %v2784_v54  ;;  %v2462_v4 = vpop.permute.xlu1 %2461  ;;  %v4020_v19 = vld [vmem:[%s6128_s1] sm:$0xff]  ;;  %v4021_v54 = vld [vmem:[%s6128_s1 + $0x8] sm:$0xff] }
 0x1c8   : > { %v3144_v24 = vsel %vm3138_vm13, %v3111_v40, %v2864_v8  ;;  %v2993_v18 = vsel %vm2973_vm8, %v5162_v36, %v2462_v4 }
 0x1c9   : > { %v3177_v48 = vsel %vm3171_vm14, %v3144_v24, 0 }
 0x1ca   : > { %3250 = vmatpush.bf16.xpose.msra.mxu0 %v3177_v48  ;;  %4027 = vmatpush.bf16.xpose.msra.mxu2 %v3177_v48 }
 0x1cd   : > { %v2878_v15 = vpop.permute.xlu2 %2877 }
 0x1ce   : > { %v2880_v41 = vpop.permute.xlu0 %2879 }
 0x1cf   : > { %v3160_v30 = vsel %vm3138_vm13, %v3127_v23, %v2880_v41  ;;  %v2606_v14 = vpop.permute.xlu1 %2605 }
 0x1d0   : > { %v3193_v21 = vsel %vm3171_vm14, %v3160_v30, 0  ;;  %v3043_v60 = vsel %vm3039_vm10, %v3010_v55, %v2606_v14 }
 0x1d1   : > { %3269 = vmatpush.bf16.xpose.msra.mxu1 %v3193_v21  ;;  %4035 = vmatpush.bf16.xpose.msra.mxu3 %v3193_v21 }
 0x1d5   : > { %v2540_v45 = vpop.permute.xlu2 %2539 }
 0x1d6   : > { %v2542_v1 = vpop.permute.xlu0 %2541 }
 0x1d7   : > { %v2718_v20 = vpop.permute.xlu1 %2717  ;;  %v3026_v39 = vsel %vm3006_vm9, %v2993_v18, %v2542_v1 }
 0x1d8   : > { %v3059_v6 = vsel %vm3039_vm10, %v3026_v39, %v2622_v49 }
 0x1d9   : > { %v3092_v27 = vsel %vm3072_vm11, %v3059_v6, %v2718_v20 }
 0x1dd   : > { %v2700_v33 = vpop.permute.xlu2 %2699 }
 0x1de   : > { %v2702_v25 = vpop.permute.xlu0 %2701 }
 0x1df   : > { %v3076_v7 = vsel %vm3072_vm11, %v3043_v60, %v2702_v25  ;;  %v2862_v34 = vpop.permute.xlu1 %2861 }
 0x1e0   : > { %v3109_v61 = vsel %vm3105_vm12, %v3076_v7, %v2782_v26 }
 0x1e1   : > { %v3142_v22 = vsel %vm3138_vm13, %v3109_v61, %v2862_v34 }
 0x1e2   : > { %v3175_v35 = vsel %vm3171_vm14, %v3142_v22, 0 }
 0x1e3   : > { %3251 = vmatpush.bf16.xpose.msra.mxu0 %v3175_v35  ;;  %4028 = vmatpush.bf16.xpose.msra.mxu2 %v3175_v35 }
 0x1e6   : > { %v2798_v28 = vpop.permute.xlu0 %2797  ;;  %v2796_v47 = vpop.permute.xlu2 %2795 }
 0x1e7   : > { %v3125_v12 = vsel %vm3105_vm12, %v3092_v27, %v2798_v28  ;;  %v2524_v59 = vpop.permute.xlu1 %2523 }
 0x1e8   : > { %v3158_v38 = vsel %vm3138_vm13, %v3125_v12, %v2878_v15  ;;  %v3008_v8 = vsel %vm3006_vm9, %v6138_v16, %v2524_v59 }
 0x1e9   : > { %v3191_v36 = vsel %vm3171_vm14, %v3158_v38, 0 }
 0x1ea   : > { %3270 = vmatpush.bf16.xpose.msra.mxu1 %v3191_v36  ;;  %4036 = vmatpush.bf16.xpose.msra.mxu3 %v3191_v36 }
 0x1ee   : > { %v2460_v42 = vpop.permute.xlu0 %2459 }
 0x1ef   : > { %v2620_v58 = vpop.permute.xlu1 %2619  ;;  %v2991_v52 = vsel %vm2973_vm8, %v5200_v9, %v2460_v42 }
 0x1f0   : > { %v3024_v10 = vsel %vm3006_vm9, %v2991_v52, %v2540_v45 }
 0x1f1   : > { %v3057_v56 = vsel %vm3039_vm10, %v3024_v10, %v2620_v58 }
 0x1f6   : > { %v2604_v57 = vpop.permute.xlu0 %2603 }
 0x1f7   : > { %v2780_v50 = vpop.permute.xlu1 %2779  ;;  %v3041_v37 = vsel %vm3039_vm10, %v3008_v8, %v2604_v57 }
 0x1f8   : > { %v3074_v29 = vsel %vm3072_vm11, %v3041_v37, %v2700_v33 }
 0x1f9   : > { %v3107_v32 = vsel %vm3105_vm12, %v3074_v29, %v2780_v50 }
 0x1fe   : > { %v2716_v31 = vpop.permute.xlu0 %2715 }
 0x1ff   : > { %v3090_v43 = vsel %vm3072_vm11, %v3057_v56, %v2716_v31  ;;  %v2876_v51 = vpop.permute.xlu1 %2875 }
 0x200   : > { %v3123_v11 = vsel %vm3105_vm12, %v3090_v43, %v2796_v47 }
 0x201   : > { %v3156_v63 = vsel %vm3138_vm13, %v3123_v11, %v2876_v51 }
 0x202   : > { %v3189_v9 = vsel %vm3171_vm14, %v3156_v63, 0 }
 0x203   : > { %3271 = vmatpush.bf16.xpose.msra.mxu1 %v3189_v9  ;;  %4037 = vmatpush.bf16.xpose.msra.mxu3 %v3189_v9 }
 0x206   : > { %v2860_v13 = vpop.permute.xlu0 %2859 }
 0x207   : > { %v3140_v40 = vsel %vm3138_vm13, %v3107_v32, %v2860_v13 }
 0x208   : > { %v3173_v4 = vsel %vm3171_vm14, %v3140_v40, 0  ;;  %v3216_v5 = vpop.permute.xlu2 %3215 }
 0x209   : > { %3252 = vmatpush.bf16.xpose.msra.mxu0 %v3173_v4  ;;  %4029 = vmatpush.bf16.xpose.msra.mxu2 %v3173_v4 }
 0x20a   : > { %3272 = vmatmul.bf16.vlgmr.msra.gmra.mxu1 %v4020_v19  ;;  %3277 = vmatmul.bf16.vlgmr.msra.gmra.mxu3 %v4021_v54 }
 0x210   : > { %3253 = vmatmul.bf16.vlgmr.msra.gmra.mxu0 %v4020_v19  ;;  %3258 = vmatmul.bf16.vlgmr.msra.gmra.mxu2 %v4021_v54  ;;  %v3226_v38 = vpop.permute.xlu2 %3225 }
 0x21e   : > { %v3221_v44 = vpop.permute.xlu0 %3220  ;;  %v3231_v55 = vpop.permute.xlu1 %3230 }
 0x287   : > { %v3273_v24 = vpop.f32.mrf.mxu1 }
 0x288   : > { %v3274_v62 = vadd.f32 %v3273_v24, %v3216_v5 }
 0x28a   : > { %v3962_v48 = vmul.f32 -1.442695, %v3274_v62 }
 0x28c   : > { %4075 = vpow2.f32 %v3962_v48 }
 0x28d   : > { %v3254_v49 = vpop.f32.mrf.mxu0  ;;  %v3278_v0 = vpop.f32.mrf.mxu3 }
 0x28e   : > { %v3255_v23 = vadd.f32 %v3254_v49, %v3216_v5  ;;  %v3279_v58 = vadd.f32 %v3278_v0, %v3226_v38 }
 0x28f   : > { %v3275_v41 = vpop.f32.mrf.mxu1 }
 0x290   : > { %v3961_v30 = vmul.f32 -1.442695, %v3255_v23  ;;  %v3276_v14 = vadd.f32 %v3275_v41, %v3221_v44 }
 0x292   : > { %v4076_v21 = vpop.eup %4075  ;;  %4077 = vpow2.f32 %v3961_v30  ;;  %v3964_v26 = vmul.f32 -1.442695, %v3276_v14 }
 0x293   : > { %v3290_v1 = vadd.f32 1.0, %v4076_v21  ;;  %v3259_v20 = vpop.f32.mrf.mxu2 }
 0x294   : > { %4079 = vpow2.f32 %v3964_v26  ;;  %v3260_v33 = vadd.f32 %v3259_v20, %v3226_v38 }
 0x295   : > { %4081 = vrcp.f32 %v3290_v1  ;;  %v3256_v60 = vpop.f32.mrf.mxu0  ;;  %v3280_v25 = vpop.f32.mrf.mxu3  ;;  %v3315_v57 = vand.u32 2147483647, %v3290_v1  ;;  %v3317_v52 = vand.u32 2147483648, %v3290_v1  ;;  %vm3311_vm0 = vweird.f32 %v3290_v1 }
 0x296   : > { %v3257_v7 = vadd.f32 %v3256_v60, %v3221_v44  ;;  %v3281_v34 = vadd.f32 %v3280_v25, %v3231_v55  ;;  %v3400_v44 = vld [vmem:[%s6065_s28 + $0x8] sm:$0xff] }
 0x297   : > { %vm6046_vm1 = vcmp.eq.f32.partialorder %v3315_v57, 8.507059e+37  ;;  %v3318_v8 = vor.u32 1.1754944e-38, %v3317_v52 }
 0x298   : > { %v4078_v15 = vpop.eup %4077  ;;  %v3963_v61 = vmul.f32 -1.442695, %v3257_v7  ;;  %v3966_v22 = vmul.f32 -1.442695, %v3281_v34 }
 0x299   : > { %v6027_v18 = vadd.f32 1.0, %v4078_v15 }
 0x29a   : > { %v4080_v39 = vpop.eup %4079  ;;  %4083 = vpow2.f32 %v3963_v61 }
 0x29b   : > { %v4082_v35 = vpop.eup %4081  ;;  %4085 = vrcp.f32 %v6027_v18  ;;  %v3261_v6 = vpop.f32.mrf.mxu2  ;;  %v6030_v28 = vadd.f32 1.0, %v4080_v39  ;;  %vm3296_vm2 = vweird.f32 %v6027_v18  ;;  %v3300_v4 = vand.u32 2147483647, %v6027_v18  ;;  %v3399_v39 = vld [vmem:[%s6065_s28] sm:$0xff] }
 0x29c   : > { %v3307_v27 = vmul.f32 %v4082_v35, %v3290_v1  ;;  %v3262_v12 = vadd.f32 %v3261_v6, %v3231_v55  ;;  %4087 = vpow2.f32 %v3966_v22  ;;  %vm3312_vm15 = vweird.f32 %v4082_v35 }
 0x29d   : > { %4089 = vrcp.f32 %v6030_v28  ;;  %vm6051_vm3 = vmor %vm3311_vm0, %vm3312_vm15  ;;  %v3355_v63 = vand.u32 2147483648, %v6030_v28  ;;  %v3353_v13 = vand.u32 2147483647, %v6030_v28  ;;  %v3302_v5 = vand.u32 2147483648, %v6027_v18 }
 0x29e   : > { %v3308_v59 = vsub.f32 1.0, %v3307_v27  ;;  %v3965_v36 = vmul.f32 -1.442695, %v3262_v12  ;;  %vm3349_vm6 = vweird.f32 %v6030_v28  ;;  %vm3301_vm11 = vcmp.eq.f32.partialorder %v3300_v4, 8.507059e+37 }
 0x29f   : > { %v3356_v23 = vor.u32 1.1754944e-38, %v3355_v63  ;;  %vm3354_vm9 = vcmp.eq.f32.partialorder %v3353_v13, 8.507059e+37  ;;  %v3303_v60 = vor.u32 1.1754944e-38, %v3302_v5 }
 0x2a0   : > { %v4084_v45 = vpop.eup %4083  ;;  %v3309_v53 = vmul.f32 %v4082_v35, %v3308_v59  ;;  %4091 = vpow2.f32 %v3965_v36 }
 0x2a1   : > { %v6033_v42 = vpop.eup %4085  ;;  %v6035_v2 = vadd.f32 1.0, %v4084_v45 }
 0x2a2   : > { %v3292_v3 = vmul.f32 %v6033_v42, %v6027_v18  ;;  %v4088_v17 = vpop.eup %4087  ;;  %v3310_v47 = vadd.f32 %v4082_v35, %v3309_v53  ;;  %vm3297_vm5 = vweird.f32 %v6033_v42 }
 0x2a3   : > { %4093 = vrcp.f32 %v6035_v2  ;;  %v4090_v50 = vpop.eup %4089  ;;  %v6040_v10 = vadd.f32 1.0, %v4088_v17  ;;  %v3340_v0 = vand.u32 2147483648, %v6035_v2  ;;  %vm6086_vm8 = vmor %vm3296_vm2, %vm3297_vm5  ;;  %v3338_v14 = vand.u32 2147483647, %v6035_v2 }
 0x2a4   : > { %v3293_v46 = vsub.f32 1.0, %v3292_v3  ;;  %4095 = vtanh.f32 %v3279_v58  ;;  %v3345_v56 = vmul.f32 %v4090_v50, %v6030_v28  ;;  %v3314_v29 = vsel %vm6051_vm3, %v4082_v35, %v3310_v47 }
 0x2a5   : > { %4097 = vrcp.f32 %v6040_v10  ;;  %vm3350_vm4 = vweird.f32 %v4090_v50  ;;  %v3319_v48 = vsel %vm6046_vm1, %v3318_v8, %v3314_v29  ;;  %vm3334_vm12 = vweird.f32 %v6035_v2 }
 0x2a6   : > { %v3294_v31 = vmul.f32 %v6033_v42, %v3293_v46  ;;  %v4092_v43 = vpop.eup %4091  ;;  %4099 = vtanh.f32 %v3260_v33  ;;  %v3346_v11 = vsub.f32 1.0, %v3345_v56  ;;  %vm3351_vm7 = vmor %vm3349_vm6, %vm3350_vm4  ;;  %v3341_v18 = vor.u32 1.1754944e-38, %v3340_v0 }
 0x2a7   : > { %v6056_v37 = vadd.f32 1.0, %v4092_v43  ;;  %vm3339_vm14 = vcmp.eq.f32.partialorder %v3338_v14, 8.507059e+37  ;;  %v3395_v53 = vand.u32 2147483648, %v6040_v10  ;;  %vm3389_vm1 = vweird.f32 %v6040_v10 }
 0x2a8   : > { %v3347_v32 = vmul.f32 %v4090_v50, %v3346_v11  ;;  %v3295_v19 = vadd.f32 %v6033_v42, %v3294_v31  ;;  %v3393_v3 = vand.u32 2147483647, %v6040_v10 }
 0x2a9   : > { %v4094_v9 = vpop.eup %4093  ;;  %4101 = vrcp.f32 %v6056_v37  ;;  %v3380_v17 = vand.u32 2147483648, %v6056_v37  ;;  %vm3374_vm3 = vweird.f32 %v6056_v37  ;;  %v3378_v33 = vand.u32 2147483647, %v6056_v37 }
 0x2aa   : > { %v3330_v54 = vmul.f32 %v4094_v9, %v6035_v2  ;;  %v4096_v40 = vpop.eup %4095  ;;  %v3348_v24 = vadd.f32 %v4090_v50, %v3347_v32  ;;  %v3299_v1 = vsel %vm6086_vm8, %v6033_v42, %v3295_v19  ;;  %vm3335_vm10 = vweird.f32 %v4094_v9 }
 0x2ab   : > { %v6075_v62 = vpop.eup %4097  ;;  %v3404_v25 = vmul.f32 %v4096_v40, %v3319_v48  ;;  %v3304_v22 = vsel %vm3301_vm11, %v3303_v60, %v3299_v1  ;;  %vm3336_vm13 = vmor %vm3334_vm12, %vm3335_vm10  ;;  %v3396_v46 = vor.u32 1.1754944e-38, %v3395_v53  ;;  %vm3394_vm5 = vcmp.eq.f32.partialorder %v3393_v3, 8.507059e+37 }
 0x2ac   : > { %v3331_v49 = vsub.f32 1.0, %v3330_v54  ;;  %v4100_v41 = vpop.eup %4099  ;;  %v3352_v21 = vsel %vm3351_vm7, %v4090_v50, %v3348_v24  ;;  %v3385_v26 = vmul.f32 %v6075_v62, %v6040_v10  ;;  %vm3390_vm15 = vweird.f32 %v6075_v62 }
 0x2ad   : > { %v3357_v55 = vsel %vm3354_vm9, %v3356_v23, %v3352_v21  ;;  %v3403_v38 = vmul.f32 %v4100_v41, %v3304_v22  ;;  %vm3391_vm2 = vmor %vm3389_vm1, %vm3390_vm15  ;;  %v3381_v47 = vor.u32 1.1754944e-38, %v3380_v17  ;;  %vm3379_vm6 = vcmp.eq.f32.partialorder %v3378_v33, 8.507059e+37 }
 0x2ae   : > { %v3332_v20 = vmul.f32 %v4094_v9, %v3331_v49  ;;  %v3402_v7 = vmul.f32 %v3400_v44, %v3357_v55  ;;  %v3386_v34 = vsub.f32 1.0, %v3385_v26 }
 0x2af   : > { %v4102_v15 = vpop.eup %4101 }
 0x2b0   : > { %v3333_v61 = vadd.f32 %v4094_v9, %v3332_v20  ;;  %v3406_v35 = vadd.f32 %v3404_v25, %v3402_v7  ;;  %v3370_v6 = vmul.f32 %v4102_v15, %v6056_v37  ;;  %v3387_v27 = vmul.f32 %v6075_v62, %v3386_v34 }
 0x2b1   : > { %vm3375_vm0 = vweird.f32 %v4102_v15 }
 0x2b2   : > { %v3337_v28 = vsel %vm3336_vm13, %v4094_v9, %v3333_v61  ;;  %3412 = vst [vmem:[%s320_s6 + $0x8] sm:$0xff] %v3406_v35  ;;  %v3371_v59 = vsub.f32 1.0, %v3370_v6  ;;  %4103 = vtanh.f32 %v3406_v35  ;;  %v3388_v42 = vadd.f32 %v6075_v62, %v3387_v27  ;;  %vm3376_vm4 = vmor %vm3374_vm3, %vm3375_vm0 }
 0x2b3   : > { %v3342_v12 = vsel %vm3339_vm14, %v3341_v18, %v3337_v28 }
 0x2b4   : > { %v3401_v36 = vmul.f32 %v3399_v39, %v3342_v12  ;;  %v3372_v45 = vmul.f32 %v4102_v15, %v3371_v59  ;;  %v3392_v57 = vsel %vm3391_vm2, %v6075_v62, %v3388_v42 }
 0x2b5   : > { %v3397_v56 = vsel %vm3394_vm5, %v3396_v46, %v3392_v57 }
 0x2b6   : > { %v3405_v58 = vadd.f32 %v3403_v38, %v3401_v36  ;;  %v3373_v2 = vadd.f32 %v4102_v15, %v3372_v45 }
 0x2b8   : > { %4105 = vtanh.f32 %v3405_v58  ;;  %3411 = vst [vmem:[%s320_s6] sm:$0xff] %v3405_v58  ;;  %v4104_v50 = vpop.eup %4103  ;;  %v3377_v52 = vsel %vm3376_vm4, %v4102_v15, %v3373_v2 }
 0x2b9   : > { %v3410_v10 = vmul.f32 %v4104_v50, %v3397_v56  ;;  %v3382_v43 = vsel %vm3379_vm6, %v3381_v47, %v3377_v52 }
 0x2be   : > { %v4106_v31 = vpop.eup %4105 }
 0x2bf   : > { %v3409_v51 = vmul.f32 %v4106_v31, %v3382_v43 }
 0x2c1   : > { %v3413_v11 = vpack.c.bf16 %v3410_v10, %v3409_v51 }
 0x2c3   : > { %3414 = vst [vmem:[%s310_s10] sm:$0xff] %v3413_v11 }
 0x2c4 PF: > { %s16_s20 = sadd.s32 1, %s4129_s20   ;;  %s6145_s18 = smov %s4125_s19 }
 0x2c5   : > { %p13_p5 = scmp.ge.s32.totalorder %s16_s20, 4   ;;  %s6146_s19 = smov %s6148_s21 }
 0x2c7   :  { %15 = sbr.rel (!%p13_p5) target bundleno = 2 (0x2), region = 83 }

</bundles_post_ra>
